<compile_context>
chip_gen: v7x
topology: tpu7x:2x2x1
jax: 0.10.0
libtpu: 0.0.40
codegen_flags: <defaults>
</compile_context>

<pallas_src>
import functools

import jax
import jax.numpy as jnp
from jax import lax
from jax.experimental import pallas as pl
from jax.experimental.pallas import tpu as pltpu

F32 = jnp.float32
MXU_DT = jnp.bfloat16               # MXU operand dtype (f32 accumulation everywhere)
VMEM_LIMIT = 48 * 1024 * 1024       # under v7x's 64 MiB physical VMEM with headroom


def _round_up(x, m):
    return ((x + m - 1) // m) * m


def _pad_rows(x, m):
    pad = _round_up(x.shape[0], m) - x.shape[0]
    if pad:
        x = jnp.pad(x, ((0, pad),) + ((0, 0),) * (x.ndim - 1))
    return x


# --------------------- Fused Conv1d(+ReLU) + encoder (LN/ReLU/Linear) ----------------- #
def _conv_encoder_kernel(p_ref, wc_ref, lng_ref, lnb_ref, ws_ref, w5_ref, b5_ref, o_ref):
    # Conv as matmul over im2col patches, then the encoder stack; the (rows, C)
    # intermediate never leaves VMEM.
    h = jnp.dot(p_ref[...].astype(MXU_DT), wc_ref[...],
                preferred_element_type=jnp.float32)
    h = jnp.maximum(h, 0.0)                                   # ReLU after conv

    def layer_norm(v, i):
        mu = jnp.mean(v, axis=-1, keepdims=True)
        var = jnp.mean((v - mu) ** 2, axis=-1, keepdims=True)
        return (v - mu) * lax.rsqrt(var + 1e-5) * lng_ref[i] + lnb_ref[i]

    for i in range(4):                      # 4x (LayerNorm -> ReLU -> Linear, no bias)
        h = layer_norm(h, i)
        h = jnp.maximum(h, 0.0)
        h = jnp.dot(h.astype(MXU_DT), ws_ref[i], preferred_element_type=jnp.float32)
    h = layer_norm(h, 4)                    # final LayerNorm -> ReLU -> Linear(+bias)
    h = jnp.maximum(h, 0.0)
    o_ref[...] = (jnp.dot(h.astype(MXU_DT), w5_ref[...],
                          preferred_element_type=jnp.float32) + b5_ref[...])


def conv_encoder(mels, params, cfg, *, tile_m=512):
    """mels: (B, Cin, T) -> z: (B, T_out, z_dim).  Conv1d(no bias) + ReLU + encoder."""
    B, Cin, T = mels.shape
    w = params["conv_w"]                               # (Cout, Cin, K) PyTorch layout
    Cout, _, K = w.shape
    stride, padding = cfg["stride"], cfg["padding"]
    T_out = (T + 2 * padding - K) // stride + 1

    x = jnp.pad(mels, ((0, 0), (0, 0), (padding, padding)))
    win = jnp.arange(T_out)[:, None] * stride + jnp.arange(K)[None, :]   # (T_out, K)
    patches = x[:, :, win]                                               # (B, Cin, T_out, K)
    patches = patches.transpose(0, 2, 1, 3).reshape(B * T_out, Cin * K)
    # TODO(synk): extract the im2col windows inside the kernel (overlapping window loads
    # on a VMEM tile) to avoid the K-fold expanded HBM round trip at production sizes.
    w_flat = w.reshape(Cout, Cin * K).T                                  # (Cin*K, Cout)

    z_dim = params["enc_w5"].shape[1]
    M = B * T_out
    tile_m = min(tile_m, _round_up(M, 8))
    patches = _pad_rows(patches.astype(F32), tile_m)
    Mp = patches.shape[0]
    CK, C = Cin * K, Cout

    out = pl.pallas_call(
        _conv_encoder_kernel,
        out_shape=jax.ShapeDtypeStruct((Mp, z_dim), F32),
        grid=(Mp // tile_m,),
        in_specs=[
            pl.BlockSpec((tile_m, CK), lambda i: (i, 0)),
            pl.BlockSpec((CK, C), lambda i: (0, 0)),          # conv weight resident
            pl.BlockSpec((5, 1, C), lambda i: (0, 0, 0)),     # LN gammas
            pl.BlockSpec((5, 1, C), lambda i: (0, 0, 0)),     # LN betas
            pl.BlockSpec((4, C, C), lambda i: (0, 0, 0)),     # encoder linears (no bias)
            pl.BlockSpec((C, z_dim), lambda i: (0, 0)),       # final linear
            pl.BlockSpec((1, z_dim), lambda i: (0, 0)),       # final bias
        ],
        out_specs=pl.BlockSpec((tile_m, z_dim), lambda i: (i, 0)),
        compiler_params=pltpu.CompilerParams(
            dimension_semantics=("parallel",), vmem_limit_bytes=VMEM_LIMIT),
    )(patches, w_flat.astype(MXU_DT), params["ln_g"], params["ln_b"],
      params["enc_ws"].astype(MXU_DT), params["enc_w5"].astype(MXU_DT),
      params["enc_b5"])
    return out[:M].reshape(B, T_out, z_dim)


# --------------------------- Fused (multi-layer) LSTM stack --------------------------- #
def _lstm_stack_kernel(*refs, n_layers, reverse):
    """Fused n_layers unidirectional LSTM over one time chunk.

    refs = (x, wih0, [wih_rest], whh, b, out, h_sc, c_sc, [act_sc])
      x:        (tile_t, B, D)       raw input chunk (projection done in-kernel)
      wih0:     (D, 4H)              layer-0 input weights
      wih_rest: (L-1, H, 4H)         input weights for layers 1..L-1 (only if L > 1)
      whh:      (L, H, 4H)           recurrent weights
      b:        (L, 1, 4H)           b_ih + b_hh per layer
      out:      (tile_t, B, H)       last layer's hidden states for the chunk
      h_sc/c_sc:(L, B, H)            carried state (VMEM, persists across grid steps)
      act_sc:   (tile_t, B, H)       inter-layer chunk activations (only if L > 1)
    PyTorch gate order (i, f, g, o), zero initial state.
    """
    if n_layers > 1:
        (x_ref, wih0_ref, wih_rest_ref, whh_ref, b_ref,
         o_ref, h_sc, c_sc, act_sc) = refs
    else:
        (x_ref, wih0_ref, whh_ref, b_ref, o_ref, h_sc, c_sc) = refs
        wih_rest_ref, act_sc = None, None

    tile_t = x_ref.shape[0]
    H = h_sc.shape[-1]

    @pl.when(pl.program_id(0) == 0)
    def _():
        h_sc[...] = jnp.zeros_like(h_sc)
        c_sc[...] = jnp.zeros_like(c_sc)

    def run_layer(layer, in_ref, wih_l, out_ref):
        whh_l = whh_ref.at[layer]          # static ref view, zero cost
        bias = b_ref[layer]                # (1, 4H)

        def step(i, carry):
            t = (tile_t - 1 - i) if reverse else i
            # x @ W_ih is off the h-dependency chain -> hides under h @ W_hh.
            gates = (jnp.dot(in_ref[t].astype(MXU_DT), wih_l[...],
                             preferred_element_type=jnp.float32)
                     + jnp.dot(h_sc[layer].astype(MXU_DT), whh_l[...],
                               preferred_element_type=jnp.float32)
                     + bias)                                      # (B, 4H)
            i_g = jax.nn.sigmoid(gates[:, 0 * H:1 * H])
            f_g = jax.nn.sigmoid(gates[:, 1 * H:2 * H])
            g_g = jnp.tanh(gates[:, 2 * H:3 * H])
            o_g = jax.nn.sigmoid(gates[:, 3 * H:4 * H])
            c = f_g * c_sc[layer] + i_g * g_g
            h = o_g * jnp.tanh(c)
            c_sc[layer] = c
            h_sc[layer] = h
            out_ref[t] = h       # safe in-place overwrite: pos t read before written
            return carry

        lax.fori_loop(0, tile_t, step, 0)

    run_layer(0, x_ref, wih0_ref, act_sc if n_layers > 1 else o_ref)
    for l in range(1, n_layers):
        run_layer(l, act_sc, wih_rest_ref.at[l - 1],
                  o_ref if l == n_layers - 1 else act_sc)


def lstm_stack(x_tm, layer_params, *, reverse=False, tile_t=32):
    """x_tm: (T, B, D) time-major -> (T, B, H).  layer_params: list of dicts with
    wih (Din, 4H), whh (H, 4H), b (1, 4H); layers 1.. must have Din == H.
    reverse=True gives the backward direction of a bidirectional LSTM with outputs
    already in natural time order (reversed chunk index_map + reversed in-chunk loop)."""
    T, B, D = x_tm.shape
    n_layers = len(layer_params)
    H = layer_params[0]["whh"].shape[0]
    tile_t = max(1, min(tile_t, T))
    Tp = _round_up(T, tile_t)
    pad = Tp - T
    if pad:
        # Forward: pad the end (pad steps come after all real steps).  Reverse: pad the
        # front (pad steps are consumed last), so the bias-fed pad steps never pollute
        # the real recurrent state; padded output rows are discarded below.
        x_tm = jnp.pad(x_tm, ((pad, 0), (0, 0), (0, 0)) if reverse
                       else ((0, pad), (0, 0), (0, 0)))
    n_chunks = Tp // tile_t
    idx = (lambda i: (n_chunks - 1 - i, 0, 0)) if reverse else (lambda i: (i, 0, 0))

    wih0 = layer_params[0]["wih"].astype(MXU_DT)
    whh = jnp.stack([p["whh"] for p in layer_params]).astype(MXU_DT)
    b = jnp.stack([p["b"] for p in layer_params]).astype(F32)

    in_specs = [pl.BlockSpec((tile_t, B, D), idx),
                pl.BlockSpec((D, 4 * H), lambda i: (0, 0))]
    args = [x_tm, wih0]
    if n_layers > 1:
        wih_rest = jnp.stack([p["wih"] for p in layer_params[1:]]).astype(MXU_DT)
        in_specs.append(pl.BlockSpec((n_layers - 1, H, 4 * H), lambda i: (0, 0, 0)))
        args.append(wih_rest)
    in_specs += [pl.BlockSpec((n_layers, H, 4 * H), lambda i: (0, 0, 0)),
                 pl.BlockSpec((n_layers, 1, 4 * H), lambda i: (0, 0, 0))]
    args += [whh, b]

    scratch = [pltpu.VMEM((n_layers, B, H), F32),     # h state
               pltpu.VMEM((n_layers, B, H), F32)]     # c state
    if n_layers > 1:
        scratch.append(pltpu.VMEM((tile_t, B, H), F32))   # inter-layer chunk activations

    out = pl.pallas_call(
        functools.partial(_lstm_stack_kernel, n_layers=n_layers, reverse=reverse),
        out_shape=jax.ShapeDtypeStruct((Tp, B, H), F32),
        grid=(n_chunks,),
        in_specs=in_specs,
        out_specs=pl.BlockSpec((tile_t, B, H), idx),
        scratch_shapes=scratch,
        compiler_params=pltpu.CompilerParams(
            dimension_semantics=("arbitrary",), vmem_limit_bytes=VMEM_LIMIT),
    )(*args)
    return out[pad:] if reverse else out[:T]


def bilstm_layer(x_tm, p_fwd, p_bwd, *, tile_t=32):
    # Independent pallas_calls (no data dependency): XLA may schedule them concurrently,
    # and on v7x they can land on the two TensorCores.
    fwd = lstm_stack(x_tm, [p_fwd], reverse=False, tile_t=tile_t)
    bwd = lstm_stack(x_tm, [p_bwd], reverse=True, tile_t=tile_t)
    return jnp.concatenate([fwd, bwd], axis=-1)


# ------------------------------- Parameter init -------------------------------------- #
def init_params(key, cfg):
    Cin, C, K = cfg["in_channels"], cfg["out_channels"], cfg["kernel_size"]
    z_dim, c_dim = cfg["z_dim"], cfg["c_dim"]
    H1, H2 = cfg["eng1_hidden"], cfg["eng2_hidden"]
    keys = iter(jax.random.split(key, 64))

    def u(shape, fan):
        s = 1.0 / float(fan) ** 0.5
        return jax.random.uniform(next(keys), shape, F32, -s, s)

    def lstm(in_dim, hid):
        return dict(
            wih=u((in_dim, 4 * hid), hid),                   # torch weight_ih_l0.T
            whh=u((hid, 4 * hid), hid),                      # torch weight_hh_l0.T
            b=u((1, 4 * hid), hid) + u((1, 4 * hid), hid),   # b_ih + b_hh
        )

    return dict(
        conv_w=u((C, Cin, K), Cin * K),
        ln_g=jnp.ones((5, 1, C), F32),
        ln_b=jnp.zeros((5, 1, C), F32),
        enc_ws=jnp.stack([u((C, C), C) for _ in range(4)]),   # stored as (in, out) = torch W.T
        enc_w5=u((C, z_dim), C),
        enc_b5=u((1, z_dim), C),
        rnn1=lstm(z_dim, c_dim),
        rnn2=lstm(c_dim, c_dim),
        rnn3=lstm(c_dim, c_dim),
        rnn4=lstm(c_dim, c_dim),
        eng1_f=lstm(c_dim, H1), eng1_b=lstm(c_dim, H1),
        eng2_f=lstm(2 * H1, H2), eng2_b=lstm(2 * H1, H2),
    )


# ------------------------------------ Forward ----------------------------------------- #
def forward(mels, params, cfg):
    tile_t = cfg.get("tile_t", 32)
    tile_m = cfg.get("tile_m", 512)
    z = conv_encoder(mels, params, cfg, tile_m=tile_m)                  # (B, T', z_dim)

    # Time-major for the whole LSTM stack: one transpose in, one transpose out.
    c = jnp.transpose(z, (1, 0, 2))                                     # (T', B, z_dim)
    c = lstm_stack(c, [params["rnn1"], params["rnn2"],
                       params["rnn3"], params["rnn4"]], tile_t=tile_t)  # fused rnn1..4
    s = bilstm_layer(c, params["eng1_f"], params["eng1_b"], tile_t=tile_t)   # (T', B, 2*H1)
    s = bilstm_layer(s, params["eng2_f"], params["eng2_b"], tile_t=tile_t)   # (T', B, 2*H2)
    s = jnp.transpose(s, (1, 2, 0))                                     # (B, 2*H2, T')
    return z, z, s


if __name__ == "__main__":
    cfg = dict(
        in_channels=8, out_channels=32, kernel_size=4, stride=2, padding=1,
        z_dim=16, c_dim=32,
        eng1_hidden=32,   # stands in for the hard-coded 512 (== c_dim)
        eng2_hidden=64,   # stands in for the hard-coded 1024 (== 2*c_dim)
        tile_t=3,         # non-divisor of T' so padded fwd/bwd chunk carry paths are hit
        tile_m=256,       # row tile for the fused conv+encoder kernel
    )
    key = jax.random.PRNGKey(0)
    k_in, k_par = jax.random.split(key)
    B, T = 2, 16
    mels = jax.random.normal(k_in, (B, cfg["in_channels"], T), dtype=F32)
    params = init_params(k_par, cfg)

    fwd = jax.jit(lambda m, p: forward(m, p, cfg))
    z1, z2, s_t = jax.block_until_ready(fwd(mels, params))

    T_out = (T + 2 * cfg["padding"] - cfg["kernel_size"]) // cfg["stride"] + 1
    assert z1.shape == (B, T_out, cfg["z_dim"])
    assert z2.shape == (B, T_out, cfg["z_dim"])
    assert s_t.shape == (B, 2 * cfg["eng2_hidden"], T_out)
    assert bool(jnp.all(jnp.isfinite(z1))) and bool(jnp.all(jnp.isfinite(s_t)))
    print("KERNEL_OK")
</pallas_src>

<mosaic_0001>
module attributes {stable_mosaic.version = 11 : i64} {
  func.func @_conv_encoder_kernel(%arg0: i32, %arg1: memref<16x32xf32, #tpu.memory_space<vmem>>, %arg2: memref<32x32xbf16, #tpu.memory_space<vmem>>, %arg3: memref<5x1x32xf32, #tpu.memory_space<vmem>>, %arg4: memref<5x1x32xf32, #tpu.memory_space<vmem>>, %arg5: memref<4x32x32xbf16, #tpu.memory_space<vmem>>, %arg6: memref<32x16xbf16, #tpu.memory_space<vmem>>, %arg7: memref<1x16xf32, #tpu.memory_space<vmem>>, %arg8: memref<16x16xf32, #tpu.memory_space<vmem>>) attributes {dimension_semantics = [#tpu.dimension_semantics<parallel>], iteration_bounds = array<i64: 1>, scalar_prefetch = 0 : i64, scratch_operands = 0 : i64, tpu.core_type = #tpu.core_type<tc>, window_params = [{transform_indices = @transform_0, window_bounds = array<i64: 16, 32>}, {pipeline_mode = #tpu.pipeline_mode<synchronous>, transform_indices = @transform_1, window_bounds = array<i64: 32, 32>}, {pipeline_mode = #tpu.pipeline_mode<synchronous>, transform_indices = @transform_2, window_bounds = array<i64: 5, 1, 32>}, {pipeline_mode = #tpu.pipeline_mode<synchronous>, transform_indices = @transform_3, window_bounds = array<i64: 5, 1, 32>}, {pipeline_mode = #tpu.pipeline_mode<synchronous>, transform_indices = @transform_4, window_bounds = array<i64: 4, 32, 32>}, {pipeline_mode = #tpu.pipeline_mode<synchronous>, transform_indices = @transform_5, window_bounds = array<i64: 32, 16>}, {pipeline_mode = #tpu.pipeline_mode<synchronous>, transform_indices = @transform_6, window_bounds = array<i64: 1, 16>}, {transform_indices = @transform_7, window_bounds = array<i64: 16, 16>}]} {
    %c0 = arith.constant 0 : index
    %c0_0 = arith.constant 0 : index
    %0 = vector.load %arg1[%c0, %c0_0] : memref<16x32xf32, #tpu.memory_space<vmem>>, vector<16x32xf32>
    %1 = arith.truncf %0 : vector<16x32xf32> to vector<16x32xbf16>
    %c0_1 = arith.constant 0 : index
    %c0_2 = arith.constant 0 : index
    %2 = vector.load %arg2[%c0_1, %c0_2] : memref<32x32xbf16, #tpu.memory_space<vmem>>, vector<32x32xbf16>
    %cst = arith.constant dense<0.000000e+00> : vector<16x32xf32>
    %3 = tpu.matmul %1, %2, %cst {dimension_numbers = #tpu.dot_dimension_numbers<[1], [0], [0], [1], [0, 0, 1, 1], [], []>} : vector<16x32xbf16>, vector<32x32xbf16>, vector<16x32xf32> -> vector<16x32xf32>
    %cst_3 = arith.constant 0.000000e+00 : f32
    %4 = vector.broadcast %cst_3 : f32 to vector<16x32xf32>
    %5 = arith.maximumf %3, %4 : vector<16x32xf32>
    %cst_4 = arith.constant dense<0.000000e+00> : vector<16xf32>
    %6 = vector.multi_reduction <add>, %5, %cst_4 [1] : vector<16x32xf32> to vector<16xf32>
    %7 = vector.shape_cast %6 : vector<16xf32> to vector<16x1xf32>
    %cst_5 = arith.constant 3.200000e+01 : f32
    %8 = vector.broadcast %cst_5 : f32 to vector<16x1xf32>
    %9 = arith.divf %7, %8 : vector<16x1xf32>
    %10 = vector.broadcast %9 : vector<16x1xf32> to vector<16x32xf32>
    %11 = arith.subf %5, %10 : vector<16x32xf32>
    %12 = arith.mulf %11, %11 : vector<16x32xf32>
    %cst_6 = arith.constant dense<0.000000e+00> : vector<16xf32>
    %13 = vector.multi_reduction <add>, %12, %cst_6 [1] : vector<16x32xf32> to vector<16xf32>
    %14 = vector.shape_cast %13 : vector<16xf32> to vector<16x1xf32>
    %cst_7 = arith.constant 3.200000e+01 : f32
    %15 = vector.broadcast %cst_7 : f32 to vector<16x1xf32>
    %16 = arith.divf %14, %15 : vector<16x1xf32>
    %17 = vector.broadcast %9 : vector<16x1xf32> to vector<16x32xf32>
    %18 = arith.subf %5, %17 : vector<16x32xf32>
    %cst_8 = arith.constant 9.99999974E-6 : f32
    %19 = vector.broadcast %cst_8 : f32 to vector<16x1xf32>
    %20 = arith.addf %16, %19 : vector<16x1xf32>
    %21 = math.rsqrt %20 : vector<16x1xf32>
    %22 = vector.broadcast %21 : vector<16x1xf32> to vector<16x32xf32>
    %23 = arith.mulf %18, %22 : vector<16x32xf32>
    %c0_9 = arith.constant 0 : index
    %c0_10 = arith.constant 0 : index
    %c0_11 = arith.constant 0 : index
    %24 = vector.load %arg3[%c0_9, %c0_10, %c0_11] : memref<5x1x32xf32, #tpu.memory_space<vmem>>, vector<1x1x32xf32>
    %25 = vector.shape_cast %24 : vector<1x1x32xf32> to vector<1x32xf32>
    %26 = vector.broadcast %25 : vector<1x32xf32> to vector<16x32xf32>
    %27 = arith.mulf %23, %26 : vector<16x32xf32>
    %c0_12 = arith.constant 0 : index
    %c0_13 = arith.constant 0 : index
    %c0_14 = arith.constant 0 : index
    %28 = vector.load %arg4[%c0_12, %c0_13, %c0_14] : memref<5x1x32xf32, #tpu.memory_space<vmem>>, vector<1x1x32xf32>
    %29 = vector.shape_cast %28 : vector<1x1x32xf32> to vector<1x32xf32>
    %30 = vector.broadcast %29 : vector<1x32xf32> to vector<16x32xf32>
    %31 = arith.addf %27, %30 : vector<16x32xf32>
    %cst_15 = arith.constant 0.000000e+00 : f32
    %32 = vector.broadcast %cst_15 : f32 to vector<16x32xf32>
    %33 = arith.maximumf %31, %32 : vector<16x32xf32>
    %34 = arith.truncf %33 : vector<16x32xf32> to vector<16x32xbf16>
    %c0_16 = arith.constant 0 : index
    %c0_17 = arith.constant 0 : index
    %c0_18 = arith.constant 0 : index
    %35 = vector.load %arg5[%c0_16, %c0_17, %c0_18] : memref<4x32x32xbf16, #tpu.memory_space<vmem>>, vector<1x32x32xbf16>
    %36 = vector.shape_cast %35 : vector<1x32x32xbf16> to vector<32x32xbf16>
    %cst_19 = arith.constant dense<0.000000e+00> : vector<16x32xf32>
    %37 = tpu.matmul %34, %36, %cst_19 {dimension_numbers = #tpu.dot_dimension_numbers<[1], [0], [0], [1], [0, 0, 1, 1], [], []>} : vector<16x32xbf16>, vector<32x32xbf16>, vector<16x32xf32> -> vector<16x32xf32>
    %cst_20 = arith.constant dense<0.000000e+00> : vector<16xf32>
    %38 = vector.multi_reduction <add>, %37, %cst_20 [1] : vector<16x32xf32> to vector<16xf32>
    %39 = vector.shape_cast %38 : vector<16xf32> to vector<16x1xf32>
    %cst_21 = arith.constant 3.200000e+01 : f32
    %40 = vector.broadcast %cst_21 : f32 to vector<16x1xf32>
    %41 = arith.divf %39, %40 : vector<16x1xf32>
    %42 = vector.broadcast %41 : vector<16x1xf32> to vector<16x32xf32>
    %43 = arith.subf %37, %42 : vector<16x32xf32>
    %44 = arith.mulf %43, %43 : vector<16x32xf32>
    %cst_22 = arith.constant dense<0.000000e+00> : vector<16xf32>
    %45 = vector.multi_reduction <add>, %44, %cst_22 [1] : vector<16x32xf32> to vector<16xf32>
    %46 = vector.shape_cast %45 : vector<16xf32> to vector<16x1xf32>
    %cst_23 = arith.constant 3.200000e+01 : f32
    %47 = vector.broadcast %cst_23 : f32 to vector<16x1xf32>
    %48 = arith.divf %46, %47 : vector<16x1xf32>
    %49 = vector.broadcast %41 : vector<16x1xf32> to vector<16x32xf32>
    %50 = arith.subf %37, %49 : vector<16x32xf32>
    %cst_24 = arith.constant 9.99999974E-6 : f32
    %51 = vector.broadcast %cst_24 : f32 to vector<16x1xf32>
    %52 = arith.addf %48, %51 : vector<16x1xf32>
    %53 = math.rsqrt %52 : vector<16x1xf32>
    %54 = vector.broadcast %53 : vector<16x1xf32> to vector<16x32xf32>
    %55 = arith.mulf %50, %54 : vector<16x32xf32>
    %c1 = arith.constant 1 : index
    %c0_25 = arith.constant 0 : index
    %c0_26 = arith.constant 0 : index
    %56 = vector.load %arg3[%c1, %c0_25, %c0_26] : memref<5x1x32xf32, #tpu.memory_space<vmem>>, vector<1x1x32xf32>
    %57 = vector.shape_cast %56 : vector<1x1x32xf32> to vector<1x32xf32>
    %58 = vector.broadcast %57 : vector<1x32xf32> to vector<16x32xf32>
    %59 = arith.mulf %55, %58 : vector<16x32xf32>
    %c1_27 = arith.constant 1 : index
    %c0_28 = arith.constant 0 : index
    %c0_29 = arith.constant 0 : index
    %60 = vector.load %arg4[%c1_27, %c0_28, %c0_29] : memref<5x1x32xf32, #tpu.memory_space<vmem>>, vector<1x1x32xf32>
    %61 = vector.shape_cast %60 : vector<1x1x32xf32> to vector<1x32xf32>
    %62 = vector.broadcast %61 : vector<1x32xf32> to vector<16x32xf32>
    %63 = arith.addf %59, %62 : vector<16x32xf32>
    %cst_30 = arith.constant 0.000000e+00 : f32
    %64 = vector.broadcast %cst_30 : f32 to vector<16x32xf32>
    %65 = arith.maximumf %63, %64 : vector<16x32xf32>
    %66 = arith.truncf %65 : vector<16x32xf32> to vector<16x32xbf16>
    %c1_31 = arith.constant 1 : index
    %c0_32 = arith.constant 0 : index
    %c0_33 = arith.constant 0 : index
    %67 = vector.load %arg5[%c1_31, %c0_32, %c0_33] : memref<4x32x32xbf16, #tpu.memory_space<vmem>>, vector<1x32x32xbf16>
    %68 = vector.shape_cast %67 : vector<1x32x32xbf16> to vector<32x32xbf16>
    %cst_34 = arith.constant dense<0.000000e+00> : vector<16x32xf32>
    %69 = tpu.matmul %66, %68, %cst_34 {dimension_numbers = #tpu.dot_dimension_numbers<[1], [0], [0], [1], [0, 0, 1, 1], [], []>} : vector<16x32xbf16>, vector<32x32xbf16>, vector<16x32xf32> -> vector<16x32xf32>
    %cst_35 = arith.constant dense<0.000000e+00> : vector<16xf32>
    %70 = vector.multi_reduction <add>, %69, %cst_35 [1] : vector<16x32xf32> to vector<16xf32>
    %71 = vector.shape_cast %70 : vector<16xf32> to vector<16x1xf32>
    %cst_36 = arith.constant 3.200000e+01 : f32
    %72 = vector.broadcast %cst_36 : f32 to vector<16x1xf32>
    %73 = arith.divf %71, %72 : vector<16x1xf32>
    %74 = vector.broadcast %73 : vector<16x1xf32> to vector<16x32xf32>
    %75 = arith.subf %69, %74 : vector<16x32xf32>
    %76 = arith.mulf %75, %75 : vector<16x32xf32>
    %cst_37 = arith.constant dense<0.000000e+00> : vector<16xf32>
    %77 = vector.multi_reduction <add>, %76, %cst_37 [1] : vector<16x32xf32> to vector<16xf32>
    %78 = vector.shape_cast %77 : vector<16xf32> to vector<16x1xf32>
    %cst_38 = arith.constant 3.200000e+01 : f32
    %79 = vector.broadcast %cst_38 : f32 to vector<16x1xf32>
    %80 = arith.divf %78, %79 : vector<16x1xf32>
    %81 = vector.broadcast %73 : vector<16x1xf32> to vector<16x32xf32>
    %82 = arith.subf %69, %81 : vector<16x32xf32>
    %cst_39 = arith.constant 9.99999974E-6 : f32
    %83 = vector.broadcast %cst_39 : f32 to vector<16x1xf32>
    %84 = arith.addf %80, %83 : vector<16x1xf32>
    %85 = math.rsqrt %84 : vector<16x1xf32>
    %86 = vector.broadcast %85 : vector<16x1xf32> to vector<16x32xf32>
    %87 = arith.mulf %82, %86 : vector<16x32xf32>
    %c2 = arith.constant 2 : index
    %c0_40 = arith.constant 0 : index
    %c0_41 = arith.constant 0 : index
    %88 = vector.load %arg3[%c2, %c0_40, %c0_41] : memref<5x1x32xf32, #tpu.memory_space<vmem>>, vector<1x1x32xf32>
    %89 = vector.shape_cast %88 : vector<1x1x32xf32> to vector<1x32xf32>
    %90 = vector.broadcast %89 : vector<1x32xf32> to vector<16x32xf32>
    %91 = arith.mulf %87, %90 : vector<16x32xf32>
    %c2_42 = arith.constant 2 : index
    %c0_43 = arith.constant 0 : index
    %c0_44 = arith.constant 0 : index
    %92 = vector.load %arg4[%c2_42, %c0_43, %c0_44] : memref<5x1x32xf32, #tpu.memory_space<vmem>>, vector<1x1x32xf32>
    %93 = vector.shape_cast %92 : vector<1x1x32xf32> to vector<1x32xf32>
    %94 = vector.broadcast %93 : vector<1x32xf32> to vector<16x32xf32>
    %95 = arith.addf %91, %94 : vector<16x32xf32>
    %cst_45 = arith.constant 0.000000e+00 : f32
    %96 = vector.broadcast %cst_45 : f32 to vector<16x32xf32>
    %97 = arith.maximumf %95, %96 : vector<16x32xf32>
    %98 = arith.truncf %97 : vector<16x32xf32> to vector<16x32xbf16>
    %c2_46 = arith.constant 2 : index
    %c0_47 = arith.constant 0 : index
    %c0_48 = arith.constant 0 : index
    %99 = vector.load %arg5[%c2_46, %c0_47, %c0_48] : memref<4x32x32xbf16, #tpu.memory_space<vmem>>, vector<1x32x32xbf16>
    %100 = vector.shape_cast %99 : vector<1x32x32xbf16> to vector<32x32xbf16>
    %cst_49 = arith.constant dense<0.000000e+00> : vector<16x32xf32>
    %101 = tpu.matmul %98, %100, %cst_49 {dimension_numbers = #tpu.dot_dimension_numbers<[1], [0], [0], [1], [0, 0, 1, 1], [], []>} : vector<16x32xbf16>, vector<32x32xbf16>, vector<16x32xf32> -> vector<16x32xf32>
    %cst_50 = arith.constant dense<0.000000e+00> : vector<16xf32>
    %102 = vector.multi_reduction <add>, %101, %cst_50 [1] : vector<16x32xf32> to vector<16xf32>
    %103 = vector.shape_cast %102 : vector<16xf32> to vector<16x1xf32>
    %cst_51 = arith.constant 3.200000e+01 : f32
    %104 = vector.broadcast %cst_51 : f32 to vector<16x1xf32>
    %105 = arith.divf %103, %104 : vector<16x1xf32>
    %106 = vector.broadcast %105 : vector<16x1xf32> to vector<16x32xf32>
    %107 = arith.subf %101, %106 : vector<16x32xf32>
    %108 = arith.mulf %107, %107 : vector<16x32xf32>
    %cst_52 = arith.constant dense<0.000000e+00> : vector<16xf32>
    %109 = vector.multi_reduction <add>, %108, %cst_52 [1] : vector<16x32xf32> to vector<16xf32>
    %110 = vector.shape_cast %109 : vector<16xf32> to vector<16x1xf32>
    %cst_53 = arith.constant 3.200000e+01 : f32
    %111 = vector.broadcast %cst_53 : f32 to vector<16x1xf32>
    %112 = arith.divf %110, %111 : vector<16x1xf32>
    %113 = vector.broadcast %105 : vector<16x1xf32> to vector<16x32xf32>
    %114 = arith.subf %101, %113 : vector<16x32xf32>
    %cst_54 = arith.constant 9.99999974E-6 : f32
    %115 = vector.broadcast %cst_54 : f32 to vector<16x1xf32>
    %116 = arith.addf %112, %115 : vector<16x1xf32>
    %117 = math.rsqrt %116 : vector<16x1xf32>
    %118 = vector.broadcast %117 : vector<16x1xf32> to vector<16x32xf32>
    %119 = arith.mulf %114, %118 : vector<16x32xf32>
    %c3 = arith.constant 3 : index
    %c0_55 = arith.constant 0 : index
    %c0_56 = arith.constant 0 : index
    %120 = vector.load %arg3[%c3, %c0_55, %c0_56] : memref<5x1x32xf32, #tpu.memory_space<vmem>>, vector<1x1x32xf32>
    %121 = vector.shape_cast %120 : vector<1x1x32xf32> to vector<1x32xf32>
    %122 = vector.broadcast %121 : vector<1x32xf32> to vector<16x32xf32>
    %123 = arith.mulf %119, %122 : vector<16x32xf32>
    %c3_57 = arith.constant 3 : index
    %c0_58 = arith.constant 0 : index
    %c0_59 = arith.constant 0 : index
    %124 = vector.load %arg4[%c3_57, %c0_58, %c0_59] : memref<5x1x32xf32, #tpu.memory_space<vmem>>, vector<1x1x32xf32>
    %125 = vector.shape_cast %124 : vector<1x1x32xf32> to vector<1x32xf32>
    %126 = vector.broadcast %125 : vector<1x32xf32> to vector<16x32xf32>
    %127 = arith.addf %123, %126 : vector<16x32xf32>
    %cst_60 = arith.constant 0.000000e+00 : f32
    %128 = vector.broadcast %cst_60 : f32 to vector<16x32xf32>
    %129 = arith.maximumf %127, %128 : vector<16x32xf32>
    %130 = arith.truncf %129 : vector<16x32xf32> to vector<16x32xbf16>
    %c3_61 = arith.constant 3 : index
    %c0_62 = arith.constant 0 : index
    %c0_63 = arith.constant 0 : index
    %131 = vector.load %arg5[%c3_61, %c0_62, %c0_63] : memref<4x32x32xbf16, #tpu.memory_space<vmem>>, vector<1x32x32xbf16>
    %132 = vector.shape_cast %131 : vector<1x32x32xbf16> to vector<32x32xbf16>
    %cst_64 = arith.constant dense<0.000000e+00> : vector<16x32xf32>
    %133 = tpu.matmul %130, %132, %cst_64 {dimension_numbers = #tpu.dot_dimension_numbers<[1], [0], [0], [1], [0, 0, 1, 1], [], []>} : vector<16x32xbf16>, vector<32x32xbf16>, vector<16x32xf32> -> vector<16x32xf32>
    %cst_65 = arith.constant dense<0.000000e+00> : vector<16xf32>
    %134 = vector.multi_reduction <add>, %133, %cst_65 [1] : vector<16x32xf32> to vector<16xf32>
    %135 = vector.shape_cast %134 : vector<16xf32> to vector<16x1xf32>
    %cst_66 = arith.constant 3.200000e+01 : f32
    %136 = vector.broadcast %cst_66 : f32 to vector<16x1xf32>
    %137 = arith.divf %135, %136 : vector<16x1xf32>
    %138 = vector.broadcast %137 : vector<16x1xf32> to vector<16x32xf32>
    %139 = arith.subf %133, %138 : vector<16x32xf32>
    %140 = arith.mulf %139, %139 : vector<16x32xf32>
    %cst_67 = arith.constant dense<0.000000e+00> : vector<16xf32>
    %141 = vector.multi_reduction <add>, %140, %cst_67 [1] : vector<16x32xf32> to vector<16xf32>
    %142 = vector.shape_cast %141 : vector<16xf32> to vector<16x1xf32>
    %cst_68 = arith.constant 3.200000e+01 : f32
    %143 = vector.broadcast %cst_68 : f32 to vector<16x1xf32>
    %144 = arith.divf %142, %143 : vector<16x1xf32>
    %145 = vector.broadcast %137 : vector<16x1xf32> to vector<16x32xf32>
    %146 = arith.subf %133, %145 : vector<16x32xf32>
    %cst_69 = arith.constant 9.99999974E-6 : f32
    %147 = vector.broadcast %cst_69 : f32 to vector<16x1xf32>
    %148 = arith.addf %144, %147 : vector<16x1xf32>
    %149 = math.rsqrt %148 : vector<16x1xf32>
    %150 = vector.broadcast %149 : vector<16x1xf32> to vector<16x32xf32>
    %151 = arith.mulf %146, %150 : vector<16x32xf32>
    %c4 = arith.constant 4 : index
    %c0_70 = arith.constant 0 : index
    %c0_71 = arith.constant 0 : index
    %152 = vector.load %arg3[%c4, %c0_70, %c0_71] : memref<5x1x32xf32, #tpu.memory_space<vmem>>, vector<1x1x32xf32>
    %153 = vector.shape_cast %152 : vector<1x1x32xf32> to vector<1x32xf32>
    %154 = vector.broadcast %153 : vector<1x32xf32> to vector<16x32xf32>
    %155 = arith.mulf %151, %154 : vector<16x32xf32>
    %c4_72 = arith.constant 4 : index
    %c0_73 = arith.constant 0 : index
    %c0_74 = arith.constant 0 : index
    %156 = vector.load %arg4[%c4_72, %c0_73, %c0_74] : memref<5x1x32xf32, #tpu.memory_space<vmem>>, vector<1x1x32xf32>
    %157 = vector.shape_cast %156 : vector<1x1x32xf32> to vector<1x32xf32>
    %158 = vector.broadcast %157 : vector<1x32xf32> to vector<16x32xf32>
    %159 = arith.addf %155, %158 : vector<16x32xf32>
    %cst_75 = arith.constant 0.000000e+00 : f32
    %160 = vector.broadcast %cst_75 : f32 to vector<16x32xf32>
    %161 = arith.maximumf %159, %160 : vector<16x32xf32>
    %162 = arith.truncf %161 : vector<16x32xf32> to vector<16x32xbf16>
    %c0_76 = arith.constant 0 : index
    %c0_77 = arith.constant 0 : index
    %163 = vector.load %arg6[%c0_76, %c0_77] : memref<32x16xbf16, #tpu.memory_space<vmem>>, vector<32x16xbf16>
    %cst_78 = arith.constant dense<0.000000e+00> : vector<16x16xf32>
    %164 = tpu.matmul %162, %163, %cst_78 {dimension_numbers = #tpu.dot_dimension_numbers<[1], [0], [0], [1], [0, 0, 1, 1], [], []>} : vector<16x32xbf16>, vector<32x16xbf16>, vector<16x16xf32> -> vector<16x16xf32>
    %c0_79 = arith.constant 0 : index
    %c0_80 = arith.constant 0 : index
    %165 = vector.load %arg7[%c0_79, %c0_80] : memref<1x16xf32, #tpu.memory_space<vmem>>, vector<1x16xf32>
    %166 = vector.broadcast %165 : vector<1x16xf32> to vector<16x16xf32>
    %167 = arith.addf %164, %166 : vector<16x16xf32>
    %c0_81 = arith.constant 0 : index
    %c0_82 = arith.constant 0 : index
    %168 = vector.load %arg8[%c0_81, %c0_82] : memref<16x16xf32, #tpu.memory_space<vmem>>, vector<16x16xf32>
    tpu.vector_store %arg8[%c0_81, %c0_82], %167 {strides = array<i32>} : memref<16x16xf32, #tpu.memory_space<vmem>>, vector<16x16xf32>,
    return
  }
  func.func @transform_0(%arg0: i32) -> (i32, i32) {
    %c0_i32 = arith.constant 0 : i32
    %c0_i32_0 = arith.constant 0 : i32
    return %arg0, %c0_i32 : i32, i32
  }
  func.func @transform_1(%arg0: i32) -> (i32, i32) {
    %c0_i32 = arith.constant 0 : i32
    %c0_i32_0 = arith.constant 0 : i32
    %c0_i32_1 = arith.constant 0 : i32
    return %c0_i32, %c0_i32_0 : i32, i32
  }
  func.func @transform_2(%arg0: i32) -> (i32, i32, i32) {
    %c0_i32 = arith.constant 0 : i32
    %c0_i32_0 = arith.constant 0 : i32
    %c0_i32_1 = arith.constant 0 : i32
    %c0_i32_2 = arith.constant 0 : i32
    return %c0_i32, %c0_i32_0, %c0_i32_1 : i32, i32, i32
  }
  func.func @transform_3(%arg0: i32) -> (i32, i32, i32) {
    %c0_i32 = arith.constant 0 : i32
    %c0_i32_0 = arith.constant 0 : i32
    %c0_i32_1 = arith.constant 0 : i32
    %c0_i32_2 = arith.constant 0 : i32
    return %c0_i32, %c0_i32_0, %c0_i32_1 : i32, i32, i32
  }
  func.func @transform_4(%arg0: i32) -> (i32, i32, i32) {
    %c0_i32 = arith.constant 0 : i32
    %c0_i32_0 = arith.constant 0 : i32
    %c0_i32_1 = arith.constant 0 : i32
    %c0_i32_2 = arith.constant 0 : i32
    return %c0_i32, %c0_i32_0, %c0_i32_1 : i32, i32, i32
  }
  func.func @transform_5(%arg0: i32) -> (i32, i32) {
    %c0_i32 = arith.constant 0 : i32
    %c0_i32_0 = arith.constant 0 : i32
    %c0_i32_1 = arith.constant 0 : i32
    return %c0_i32, %c0_i32_0 : i32, i32
  }
  func.func @transform_6(%arg0: i32) -> (i32, i32) {
    %c0_i32 = arith.constant 0 : i32
    %c0_i32_0 = arith.constant 0 : i32
    %c0_i32_1 = arith.constant 0 : i32
    return %c0_i32, %c0_i32_0 : i32, i32
  }
  func.func @transform_7(%arg0: i32) -> (i32, i32) {
    %c0_i32 = arith.constant 0 : i32
    %c0_i32_0 = arith.constant 0 : i32
    return %arg0, %c0_i32 : i32, i32
  }
}

module attributes {stable_mosaic.version = 11 : i64} {
  func.func @_lstm_stack_kernel(%arg0: i32, %arg1: memref<3x2x16xf32, #tpu.memory_space<vmem>>, %arg2: memref<16x128xbf16, #tpu.memory_space<vmem>>, %arg3: memref<3x32x128xbf16, #tpu.memory_space<vmem>>, %arg4: memref<4x32x128xbf16, #tpu.memory_space<vmem>>, %arg5: memref<4x1x128xf32, #tpu.memory_space<vmem>>, %arg6: memref<3x2x32xf32, #tpu.memory_space<vmem>>, %arg7: memref<4x2x32xf32, #tpu.memory_space<vmem>>, %arg8: memref<4x2x32xf32, #tpu.memory_space<vmem>>, %arg9: memref<3x2x32xf32, #tpu.memory_space<vmem>>) attributes {dimension_semantics = [#tpu.dimension_semantics<arbitrary>], iteration_bounds = array<i64: 3>, scalar_prefetch = 0 : i64, scratch_operands = 3 : i64, tpu.core_type = #tpu.core_type<tc>, window_params = [{transform_indices = @transform_0, window_bounds = array<i64: 3, 2, 16>}, {pipeline_mode = #tpu.pipeline_mode<synchronous>, transform_indices = @transform_1, window_bounds = array<i64: 16, 128>}, {pipeline_mode = #tpu.pipeline_mode<synchronous>, transform_indices = @transform_2, window_bounds = array<i64: 3, 32, 128>}, {pipeline_mode = #tpu.pipeline_mode<synchronous>, transform_indices = @transform_3, window_bounds = array<i64: 4, 32, 128>}, {pipeline_mode = #tpu.pipeline_mode<synchronous>, transform_indices = @transform_4, window_bounds = array<i64: 4, 1, 128>}, {transform_indices = @transform_5, window_bounds = array<i64: 3, 2, 32>}]} {
    %c0_i32 = arith.constant 0 : i32
    %0 = arith.cmpi eq, %arg0, %c0_i32 : i32
    %1 = arith.extui %0 : i1 to i32
    %c0_i32_0 = arith.constant 0 : i32
    %2 = arith.cmpi ne, %1, %c0_i32_0 : i32
    scf.if %2 {
      %cst = arith.constant 0.000000e+00 : f32
      %15 = vector.broadcast %cst : f32 to vector<4x2x32xf32>
      %c0_29 = arith.constant 0 : index
      %c0_30 = arith.constant 0 : index
      %c0_31 = arith.constant 0 : index
      %16 = vector.load %arg7[%c0_29, %c0_30, %c0_31] : memref<4x2x32xf32, #tpu.memory_space<vmem>>, vector<4x2x32xf32>
      tpu.vector_store %arg7[%c0_29, %c0_30, %c0_31], %15 {strides = array<i32>} : memref<4x2x32xf32, #tpu.memory_space<vmem>>, vector<4x2x32xf32>,
      %cst_32 = arith.constant 0.000000e+00 : f32
      %17 = vector.broadcast %cst_32 : f32 to vector<4x2x32xf32>
      %c0_33 = arith.constant 0 : index
      %c0_34 = arith.constant 0 : index
      %c0_35 = arith.constant 0 : index
      %18 = vector.load %arg8[%c0_33, %c0_34, %c0_35] : memref<4x2x32xf32, #tpu.memory_space<vmem>>, vector<4x2x32xf32>
      tpu.vector_store %arg8[%c0_33, %c0_34, %c0_35], %17 {strides = array<i32>} : memref<4x2x32xf32, #tpu.memory_space<vmem>>, vector<4x2x32xf32>,
    } else {
    }
    %c0 = arith.constant 0 : index
    %c0_1 = arith.constant 0 : index
    %c0_2 = arith.constant 0 : index
    %3 = vector.load %arg5[%c0, %c0_1, %c0_2] : memref<4x1x128xf32, #tpu.memory_space<vmem>>, vector<1x1x128xf32>
    %4 = vector.shape_cast %3 : vector<1x1x128xf32> to vector<1x128xf32>
    %c0_i32_3 = arith.constant 0 : i32
    %c0_i32_4 = arith.constant 0 : i32
    %c3_i32 = arith.constant 3 : i32
    %5 = arith.addi %c0_i32_4, %c3_i32 : i32
    %c1_i32 = arith.constant 1 : i32
    scf.for %arg10 = %c0_i32_4 to %5 step %c1_i32  : i32 {
      %15 = arith.index_cast %arg10 : i32 to index
      %c0_29 = arith.constant 0 : index
      %c0_30 = arith.constant 0 : index
      %16 = vector.load %arg1[%15, %c0_29, %c0_30] : memref<3x2x16xf32, #tpu.memory_space<vmem>>, vector<1x2x16xf32>
      %17 = vector.shape_cast %16 : vector<1x2x16xf32> to vector<2x16xf32>
      %18 = arith.truncf %17 : vector<2x16xf32> to vector<2x16xbf16>
      %c0_31 = arith.constant 0 : index
      %c0_32 = arith.constant 0 : index
      %19 = vector.load %arg2[%c0_31, %c0_32] : memref<16x128xbf16, #tpu.memory_space<vmem>>, vector<16x128xbf16>
      %cst = arith.constant dense<0.000000e+00> : vector<2x128xf32>
      %20 = tpu.matmul %18, %19, %cst {dimension_numbers = #tpu.dot_dimension_numbers<[1], [0], [0], [1], [0, 0, 1, 1], [], []>} : vector<2x16xbf16>, vector<16x128xbf16>, vector<2x128xf32> -> vector<2x128xf32>
      %c0_33 = arith.constant 0 : index
      %c0_34 = arith.constant 0 : index
      %c0_35 = arith.constant 0 : index
      %21 = vector.load %arg7[%c0_33, %c0_34, %c0_35] : memref<4x2x32xf32, #tpu.memory_space<vmem>>, vector<1x2x32xf32>
      %22 = vector.shape_cast %21 : vector<1x2x32xf32> to vector<2x32xf32>
      %23 = arith.truncf %22 : vector<2x32xf32> to vector<2x32xbf16>
      %24 = arith.index_cast %c0_i32_3 : i32 to index
      %c0_36 = arith.constant 0 : index
      %c0_37 = arith.constant 0 : index
      %25 = vector.load %arg4[%24, %c0_36, %c0_37] : memref<4x32x128xbf16, #tpu.memory_space<vmem>>, vector<1x32x128xbf16>
      %26 = vector.shape_cast %25 : vector<1x32x128xbf16> to vector<32x128xbf16>
      %cst_38 = arith.constant dense<0.000000e+00> : vector<2x128xf32>
      %27 = tpu.matmul %23, %26, %cst_38 {dimension_numbers = #tpu.dot_dimension_numbers<[1], [0], [0], [1], [0, 0, 1, 1], [], []>} : vector<2x32xbf16>, vector<32x128xbf16>, vector<2x128xf32> -> vector<2x128xf32>
      %28 = arith.addf %20, %27 : vector<2x128xf32>
      %29 = vector.broadcast %4 : vector<1x128xf32> to vector<2x128xf32>
      %30 = arith.addf %28, %29 : vector<2x128xf32>
      %31 = vector.extract_strided_slice %30 {offsets = [0, 0], sizes = [2, 32], strides = [1, 1]} : vector<2x128xf32> to vector<2x32xf32>
      %32 = arith.negf %31 : vector<2x32xf32>
      %33 = math.exp %32 : vector<2x32xf32>
      %cst_39 = arith.constant 1.000000e+00 : f32
      %34 = vector.broadcast %cst_39 : f32 to vector<2x32xf32>
      %35 = arith.addf %34, %33 : vector<2x32xf32>
      %36 = arith.divf %34, %35 : vector<2x32xf32>
      %37 = vector.extract_strided_slice %30 {offsets = [0, 32], sizes = [2, 32], strides = [1, 1]} : vector<2x128xf32> to vector<2x32xf32>
      %38 = arith.negf %37 : vector<2x32xf32>
      %39 = math.exp %38 : vector<2x32xf32>
      %cst_40 = arith.constant 1.000000e+00 : f32
      %40 = vector.broadcast %cst_40 : f32 to vector<2x32xf32>
      %41 = arith.addf %40, %39 : vector<2x32xf32>
      %42 = arith.divf %40, %41 : vector<2x32xf32>
      %43 = vector.extract_strided_slice %30 {offsets = [0, 64], sizes = [2, 32], strides = [1, 1]} : vector<2x128xf32> to vector<2x32xf32>
      %44 = math.tanh %43 : vector<2x32xf32>
      %45 = vector.extract_strided_slice %30 {offsets = [0, 96], sizes = [2, 32], strides = [1, 1]} : vector<2x128xf32> to vector<2x32xf32>
      %46 = arith.negf %45 : vector<2x32xf32>
      %47 = math.exp %46 : vector<2x32xf32>
      %cst_41 = arith.constant 1.000000e+00 : f32
      %48 = vector.broadcast %cst_41 : f32 to vector<2x32xf32>
      %49 = arith.addf %48, %47 : vector<2x32xf32>
      %50 = arith.divf %48, %49 : vector<2x32xf32>
      %c0_42 = arith.constant 0 : index
      %c0_43 = arith.constant 0 : index
      %c0_44 = arith.constant 0 : index
      %51 = vector.load %arg8[%c0_42, %c0_43, %c0_44] : memref<4x2x32xf32, #tpu.memory_space<vmem>>, vector<1x2x32xf32>
      %52 = vector.shape_cast %51 : vector<1x2x32xf32> to vector<2x32xf32>
      %53 = arith.mulf %42, %52 : vector<2x32xf32>
      %54 = arith.mulf %36, %44 : vector<2x32xf32>
      %55 = arith.addf %53, %54 : vector<2x32xf32>
      %56 = math.tanh %55 : vector<2x32xf32>
      %57 = arith.mulf %50, %56 : vector<2x32xf32>
      %c0_45 = arith.constant 0 : index
      %c0_46 = arith.constant 0 : index
      %c0_47 = arith.constant 0 : index
      %58 = vector.load %arg8[%c0_45, %c0_46, %c0_47] : memref<4x2x32xf32, #tpu.memory_space<vmem>>, vector<1x2x32xf32>
      %59 = vector.shape_cast %58 : vector<1x2x32xf32> to vector<2x32xf32>
      %60 = vector.shape_cast %55 : vector<2x32xf32> to vector<1x2x32xf32>
      tpu.vector_store %arg8[%c0_45, %c0_46, %c0_47], %60 {strides = array<i32>} : memref<4x2x32xf32, #tpu.memory_space<vmem>>, vector<1x2x32xf32>,
      %c0_48 = arith.constant 0 : index
      %c0_49 = arith.constant 0 : index
      %c0_50 = arith.constant 0 : index
      %61 = vector.load %arg7[%c0_48, %c0_49, %c0_50] : memref<4x2x32xf32, #tpu.memory_space<vmem>>, vector<1x2x32xf32>
      %62 = vector.shape_cast %61 : vector<1x2x32xf32> to vector<2x32xf32>
      %63 = vector.shape_cast %57 : vector<2x32xf32> to vector<1x2x32xf32>
      tpu.vector_store %arg7[%c0_48, %c0_49, %c0_50], %63 {strides = array<i32>} : memref<4x2x32xf32, #tpu.memory_space<vmem>>, vector<1x2x32xf32>,
      %64 = arith.index_cast %arg10 : i32 to index
      %c0_51 = arith.constant 0 : index
      %c0_52 = arith.constant 0 : index
      %65 = vector.load %arg9[%64, %c0_51, %c0_52] : memref<3x2x32xf32, #tpu.memory_space<vmem>>, vector<1x2x32xf32>
      %66 = vector.shape_cast %65 : vector<1x2x32xf32> to vector<2x32xf32>
      %67 = vector.shape_cast %57 : vector<2x32xf32> to vector<1x2x32xf32>
      tpu.vector_store %arg9[%64, %c0_51, %c0_52], %67 {strides = array<i32>} : memref<3x2x32xf32, #tpu.memory_space<vmem>>, vector<1x2x32xf32>,
    }
    %c3_i32_5 = arith.constant 3 : i32
    %c1 = arith.constant 1 : index
    %c0_6 = arith.constant 0 : index
    %c0_7 = arith.constant 0 : index
    %6 = vector.load %arg5[%c1, %c0_6, %c0_7] : memref<4x1x128xf32, #tpu.memory_space<vmem>>, vector<1x1x128xf32>
    %7 = vector.shape_cast %6 : vector<1x1x128xf32> to vector<1x128xf32>
    %c0_i32_8 = arith.constant 0 : i32
    %c1_i32_9 = arith.constant 1 : i32
    %c0_i32_10 = arith.constant 0 : i32
    %c3_i32_11 = arith.constant 3 : i32
    %8 = arith.addi %c0_i32_10, %c3_i32_11 : i32
    %c1_i32_12 = arith.constant 1 : i32
    scf.for %arg10 = %c0_i32_10 to %8 step %c1_i32_12  : i32 {
      %15 = arith.index_cast %arg10 : i32 to index
      %c0_29 = arith.constant 0 : index
      %c0_30 = arith.constant 0 : index
      %16 = vector.load %arg9[%15, %c0_29, %c0_30] : memref<3x2x32xf32, #tpu.memory_space<vmem>>, vector<1x2x32xf32>
      %17 = vector.shape_cast %16 : vector<1x2x32xf32> to vector<2x32xf32>
      %18 = arith.truncf %17 : vector<2x32xf32> to vector<2x32xbf16>
      %19 = arith.index_cast %c0_i32_8 : i32 to index
      %c0_31 = arith.constant 0 : index
      %c0_32 = arith.constant 0 : index
      %20 = vector.load %arg3[%19, %c0_31, %c0_32] : memref<3x32x128xbf16, #tpu.memory_space<vmem>>, vector<1x32x128xbf16>
      %21 = vector.shape_cast %20 : vector<1x32x128xbf16> to vector<32x128xbf16>
      %cst = arith.constant dense<0.000000e+00> : vector<2x128xf32>
      %22 = tpu.matmul %18, %21, %cst {dimension_numbers = #tpu.dot_dimension_numbers<[1], [0], [0], [1], [0, 0, 1, 1], [], []>} : vector<2x32xbf16>, vector<32x128xbf16>, vector<2x128xf32> -> vector<2x128xf32>
      %c1_33 = arith.constant 1 : index
      %c0_34 = arith.constant 0 : index
      %c0_35 = arith.constant 0 : index
      %23 = vector.load %arg7[%c1_33, %c0_34, %c0_35] : memref<4x2x32xf32, #tpu.memory_space<vmem>>, vector<1x2x32xf32>
      %24 = vector.shape_cast %23 : vector<1x2x32xf32> to vector<2x32xf32>
      %25 = arith.truncf %24 : vector<2x32xf32> to vector<2x32xbf16>
      %26 = arith.index_cast %c1_i32_9 : i32 to index
      %c0_36 = arith.constant 0 : index
      %c0_37 = arith.constant 0 : index
      %27 = vector.load %arg4[%26, %c0_36, %c0_37] : memref<4x32x128xbf16, #tpu.memory_space<vmem>>, vector<1x32x128xbf16>
      %28 = vector.shape_cast %27 : vector<1x32x128xbf16> to vector<32x128xbf16>
      %cst_38 = arith.constant dense<0.000000e+00> : vector<2x128xf32>
      %29 = tpu.matmul %25, %28, %cst_38 {dimension_numbers = #tpu.dot_dimension_numbers<[1], [0], [0], [1], [0, 0, 1, 1], [], []>} : vector<2x32xbf16>, vector<32x128xbf16>, vector<2x128xf32> -> vector<2x128xf32>
      %30 = arith.addf %22, %29 : vector<2x128xf32>
      %31 = vector.broadcast %7 : vector<1x128xf32> to vector<2x128xf32>
      %32 = arith.addf %30, %31 : vector<2x128xf32>
      %33 = vector.extract_strided_slice %32 {offsets = [0, 0], sizes = [2, 32], strides = [1, 1]} : vector<2x128xf32> to vector<2x32xf32>
      %34 = arith.negf %33 : vector<2x32xf32>
      %35 = math.exp %34 : vector<2x32xf32>
      %cst_39 = arith.constant 1.000000e+00 : f32
      %36 = vector.broadcast %cst_39 : f32 to vector<2x32xf32>
      %37 = arith.addf %36, %35 : vector<2x32xf32>
      %38 = arith.divf %36, %37 : vector<2x32xf32>
      %39 = vector.extract_strided_slice %32 {offsets = [0, 32], sizes = [2, 32], strides = [1, 1]} : vector<2x128xf32> to vector<2x32xf32>
      %40 = arith.negf %39 : vector<2x32xf32>
      %41 = math.exp %40 : vector<2x32xf32>
      %cst_40 = arith.constant 1.000000e+00 : f32
      %42 = vector.broadcast %cst_40 : f32 to vector<2x32xf32>
      %43 = arith.addf %42, %41 : vector<2x32xf32>
      %44 = arith.divf %42, %43 : vector<2x32xf32>
      %45 = vector.extract_strided_slice %32 {offsets = [0, 64], sizes = [2, 32], strides = [1, 1]} : vector<2x128xf32> to vector<2x32xf32>
      %46 = math.tanh %45 : vector<2x32xf32>
      %47 = vector.extract_strided_slice %32 {offsets = [0, 96], sizes = [2, 32], strides = [1, 1]} : vector<2x128xf32> to vector<2x32xf32>
      %48 = arith.negf %47 : vector<2x32xf32>
      %49 = math.exp %48 : vector<2x32xf32>
      %cst_41 = arith.constant 1.000000e+00 : f32
      %50 = vector.broadcast %cst_41 : f32 to vector<2x32xf32>
      %51 = arith.addf %50, %49 : vector<2x32xf32>
      %52 = arith.divf %50, %51 : vector<2x32xf32>
      %c1_42 = arith.constant 1 : index
      %c0_43 = arith.constant 0 : index
      %c0_44 = arith.constant 0 : index
      %53 = vector.load %arg8[%c1_42, %c0_43, %c0_44] : memref<4x2x32xf32, #tpu.memory_space<vmem>>, vector<1x2x32xf32>
      %54 = vector.shape_cast %53 : vector<1x2x32xf32> to vector<2x32xf32>
      %55 = arith.mulf %44, %54 : vector<2x32xf32>
      %56 = arith.mulf %38, %46 : vector<2x32xf32>
      %57 = arith.addf %55, %56 : vector<2x32xf32>
      %58 = math.tanh %57 : vector<2x32xf32>
      %59 = arith.mulf %52, %58 : vector<2x32xf32>
      %c1_45 = arith.constant 1 : index
      %c0_46 = arith.constant 0 : index
      %c0_47 = arith.constant 0 : index
      %60 = vector.load %arg8[%c1_45, %c0_46, %c0_47] : memref<4x2x32xf32, #tpu.memory_space<vmem>>, vector<1x2x32xf32>
      %61 = vector.shape_cast %60 : vector<1x2x32xf32> to vector<2x32xf32>
      %62 = vector.shape_cast %57 : vector<2x32xf32> to vector<1x2x32xf32>
      tpu.vector_store %arg8[%c1_45, %c0_46, %c0_47], %62 {strides = array<i32>} : memref<4x2x32xf32, #tpu.memory_space<vmem>>, vector<1x2x32xf32>,
      %c1_48 = arith.constant 1 : index
      %c0_49 = arith.constant 0 : index
      %c0_50 = arith.constant 0 : index
      %63 = vector.load %arg7[%c1_48, %c0_49, %c0_50] : memref<4x2x32xf32, #tpu.memory_space<vmem>>, vector<1x2x32xf32>
      %64 = vector.shape_cast %63 : vector<1x2x32xf32> to vector<2x32xf32>
      %65 = vector.shape_cast %59 : vector<2x32xf32> to vector<1x2x32xf32>
      tpu.vector_store %arg7[%c1_48, %c0_49, %c0_50], %65 {strides = array<i32>} : memref<4x2x32xf32, #tpu.memory_space<vmem>>, vector<1x2x32xf32>,
      %66 = arith.index_cast %arg10 : i32 to index
      %c0_51 = arith.constant 0 : index
      %c0_52 = arith.constant 0 : index
      %67 = vector.load %arg9[%66, %c0_51, %c0_52] : memref<3x2x32xf32, #tpu.memory_space<vmem>>, vector<1x2x32xf32>
      %68 = vector.shape_cast %67 : vector<1x2x32xf32> to vector<2x32xf32>
      %69 = vector.shape_cast %59 : vector<2x32xf32> to vector<1x2x32xf32>
      tpu.vector_store %arg9[%66, %c0_51, %c0_52], %69 {strides = array<i32>} : memref<3x2x32xf32, #tpu.memory_space<vmem>>, vector<1x2x32xf32>,
    }
    %c3_i32_13 = arith.constant 3 : i32
    %c2 = arith.constant 2 : index
    %c0_14 = arith.constant 0 : index
    %c0_15 = arith.constant 0 : index
    %9 = vector.load %arg5[%c2, %c0_14, %c0_15] : memref<4x1x128xf32, #tpu.memory_space<vmem>>, vector<1x1x128xf32>
    %10 = vector.shape_cast %9 : vector<1x1x128xf32> to vector<1x128xf32>
    %c1_i32_16 = arith.constant 1 : i32
    %c2_i32 = arith.constant 2 : i32
    %c0_i32_17 = arith.constant 0 : i32
    %c3_i32_18 = arith.constant 3 : i32
    %11 = arith.addi %c0_i32_17, %c3_i32_18 : i32
    %c1_i32_19 = arith.constant 1 : i32
    scf.for %arg10 = %c0_i32_17 to %11 step %c1_i32_19  : i32 {
      %15 = arith.index_cast %arg10 : i32 to index
      %c0_29 = arith.constant 0 : index
      %c0_30 = arith.constant 0 : index
      %16 = vector.load %arg9[%15, %c0_29, %c0_30] : memref<3x2x32xf32, #tpu.memory_space<vmem>>, vector<1x2x32xf32>
      %17 = vector.shape_cast %16 : vector<1x2x32xf32> to vector<2x32xf32>
      %18 = arith.truncf %17 : vector<2x32xf32> to vector<2x32xbf16>
      %19 = arith.index_cast %c1_i32_16 : i32 to index
      %c0_31 = arith.constant 0 : index
      %c0_32 = arith.constant 0 : index
      %20 = vector.load %arg3[%19, %c0_31, %c0_32] : memref<3x32x128xbf16, #tpu.memory_space<vmem>>, vector<1x32x128xbf16>
      %21 = vector.shape_cast %20 : vector<1x32x128xbf16> to vector<32x128xbf16>
      %cst = arith.constant dense<0.000000e+00> : vector<2x128xf32>
      %22 = tpu.matmul %18, %21, %cst {dimension_numbers = #tpu.dot_dimension_numbers<[1], [0], [0], [1], [0, 0, 1, 1], [], []>} : vector<2x32xbf16>, vector<32x128xbf16>, vector<2x128xf32> -> vector<2x128xf32>
      %c2_33 = arith.constant 2 : index
      %c0_34 = arith.constant 0 : index
      %c0_35 = arith.constant 0 : index
      %23 = vector.load %arg7[%c2_33, %c0_34, %c0_35] : memref<4x2x32xf32, #tpu.memory_space<vmem>>, vector<1x2x32xf32>
      %24 = vector.shape_cast %23 : vector<1x2x32xf32> to vector<2x32xf32>
      %25 = arith.truncf %24 : vector<2x32xf32> to vector<2x32xbf16>
      %26 = arith.index_cast %c2_i32 : i32 to index
      %c0_36 = arith.constant 0 : index
      %c0_37 = arith.constant 0 : index
      %27 = vector.load %arg4[%26, %c0_36, %c0_37] : memref<4x32x128xbf16, #tpu.memory_space<vmem>>, vector<1x32x128xbf16>
      %28 = vector.shape_cast %27 : vector<1x32x128xbf16> to vector<32x128xbf16>
      %cst_38 = arith.constant dense<0.000000e+00> : vector<2x128xf32>
      %29 = tpu.matmul %25, %28, %cst_38 {dimension_numbers = #tpu.dot_dimension_numbers<[1], [0], [0], [1], [0, 0, 1, 1], [], []>} : vector<2x32xbf16>, vector<32x128xbf16>, vector<2x128xf32> -> vector<2x128xf32>
      %30 = arith.addf %22, %29 : vector<2x128xf32>
      %31 = vector.broadcast %10 : vector<1x128xf32> to vector<2x128xf32>
      %32 = arith.addf %30, %31 : vector<2x128xf32>
      %33 = vector.extract_strided_slice %32 {offsets = [0, 0], sizes = [2, 32], strides = [1, 1]} : vector<2x128xf32> to vector<2x32xf32>
      %34 = arith.negf %33 : vector<2x32xf32>
      %35 = math.exp %34 : vector<2x32xf32>
      %cst_39 = arith.constant 1.000000e+00 : f32
      %36 = vector.broadcast %cst_39 : f32 to vector<2x32xf32>
      %37 = arith.addf %36, %35 : vector<2x32xf32>
      %38 = arith.divf %36, %37 : vector<2x32xf32>
      %39 = vector.extract_strided_slice %32 {offsets = [0, 32], sizes = [2, 32], strides = [1, 1]} : vector<2x128xf32> to vector<2x32xf32>
      %40 = arith.negf %39 : vector<2x32xf32>
      %41 = math.exp %40 : vector<2x32xf32>
      %cst_40 = arith.constant 1.000000e+00 : f32
      %42 = vector.broadcast %cst_40 : f32 to vector<2x32xf32>
      %43 = arith.addf %42, %41 : vector<2x32xf32>
      %44 = arith.divf %42, %43 : vector<2x32xf32>
      %45 = vector.extract_strided_slice %32 {offsets = [0, 64], sizes = [2, 32], strides = [1, 1]} : vector<2x128xf32> to vector<2x32xf32>
      %46 = math.tanh %45 : vector<2x32xf32>
      %47 = vector.extract_strided_slice %32 {offsets = [0, 96], sizes = [2, 32], strides = [1, 1]} : vector<2x128xf32> to vector<2x32xf32>
      %48 = arith.negf %47 : vector<2x32xf32>
      %49 = math.exp %48 : vector<2x32xf32>
      %cst_41 = arith.constant 1.000000e+00 : f32
      %50 = vector.broadcast %cst_41 : f32 to vector<2x32xf32>
      %51 = arith.addf %50, %49 : vector<2x32xf32>
      %52 = arith.divf %50, %51 : vector<2x32xf32>
      %c2_42 = arith.constant 2 : index
      %c0_43 = arith.constant 0 : index
      %c0_44 = arith.constant 0 : index
      %53 = vector.load %arg8[%c2_42, %c0_43, %c0_44] : memref<4x2x32xf32, #tpu.memory_space<vmem>>, vector<1x2x32xf32>
      %54 = vector.shape_cast %53 : vector<1x2x32xf32> to vector<2x32xf32>
      %55 = arith.mulf %44, %54 : vector<2x32xf32>
      %56 = arith.mulf %38, %46 : vector<2x32xf32>
      %57 = arith.addf %55, %56 : vector<2x32xf32>
      %58 = math.tanh %57 : vector<2x32xf32>
      %59 = arith.mulf %52, %58 : vector<2x32xf32>
      %c2_45 = arith.constant 2 : index
      %c0_46 = arith.constant 0 : index
      %c0_47 = arith.constant 0 : index
      %60 = vector.load %arg8[%c2_45, %c0_46, %c0_47] : memref<4x2x32xf32, #tpu.memory_space<vmem>>, vector<1x2x32xf32>
      %61 = vector.shape_cast %60 : vector<1x2x32xf32> to vector<2x32xf32>
      %62 = vector.shape_cast %57 : vector<2x32xf32> to vector<1x2x32xf32>
      tpu.vector_store %arg8[%c2_45, %c0_46, %c0_47], %62 {strides = array<i32>} : memref<4x2x32xf32, #tpu.memory_space<vmem>>, vector<1x2x32xf32>,
      %c2_48 = arith.constant 2 : index
      %c0_49 = arith.constant 0 : index
      %c0_50 = arith.constant 0 : index
      %63 = vector.load %arg7[%c2_48, %c0_49, %c0_50] : memref<4x2x32xf32, #tpu.memory_space<vmem>>, vector<1x2x32xf32>
      %64 = vector.shape_cast %63 : vector<1x2x32xf32> to vector<2x32xf32>
      %65 = vector.shape_cast %59 : vector<2x32xf32> to vector<1x2x32xf32>
      tpu.vector_store %arg7[%c2_48, %c0_49, %c0_50], %65 {strides = array<i32>} : memref<4x2x32xf32, #tpu.memory_space<vmem>>, vector<1x2x32xf32>,
      %66 = arith.index_cast %arg10 : i32 to index
      %c0_51 = arith.constant 0 : index
      %c0_52 = arith.constant 0 : index
      %67 = vector.load %arg9[%66, %c0_51, %c0_52] : memref<3x2x32xf32, #tpu.memory_space<vmem>>, vector<1x2x32xf32>
      %68 = vector.shape_cast %67 : vector<1x2x32xf32> to vector<2x32xf32>
      %69 = vector.shape_cast %59 : vector<2x32xf32> to vector<1x2x32xf32>
      tpu.vector_store %arg9[%66, %c0_51, %c0_52], %69 {strides = array<i32>} : memref<3x2x32xf32, #tpu.memory_space<vmem>>, vector<1x2x32xf32>,
    }
    %c3_i32_20 = arith.constant 3 : i32
    %c3 = arith.constant 3 : index
    %c0_21 = arith.constant 0 : index
    %c0_22 = arith.constant 0 : index
    %12 = vector.load %arg5[%c3, %c0_21, %c0_22] : memref<4x1x128xf32, #tpu.memory_space<vmem>>, vector<1x1x128xf32>
    %13 = vector.shape_cast %12 : vector<1x1x128xf32> to vector<1x128xf32>
    %c2_i32_23 = arith.constant 2 : i32
    %c3_i32_24 = arith.constant 3 : i32
    %c0_i32_25 = arith.constant 0 : i32
    %c3_i32_26 = arith.constant 3 : i32
    %14 = arith.addi %c0_i32_25, %c3_i32_26 : i32
    %c1_i32_27 = arith.constant 1 : i32
    scf.for %arg10 = %c0_i32_25 to %14 step %c1_i32_27  : i32 {
      %15 = arith.index_cast %arg10 : i32 to index
      %c0_29 = arith.constant 0 : index
      %c0_30 = arith.constant 0 : index
      %16 = vector.load %arg9[%15, %c0_29, %c0_30] : memref<3x2x32xf32, #tpu.memory_space<vmem>>, vector<1x2x32xf32>
      %17 = vector.shape_cast %16 : vector<1x2x32xf32> to vector<2x32xf32>
      %18 = arith.truncf %17 : vector<2x32xf32> to vector<2x32xbf16>
      %19 = arith.index_cast %c2_i32_23 : i32 to index
      %c0_31 = arith.constant 0 : index
      %c0_32 = arith.constant 0 : index
      %20 = vector.load %arg3[%19, %c0_31, %c0_32] : memref<3x32x128xbf16, #tpu.memory_space<vmem>>, vector<1x32x128xbf16>
      %21 = vector.shape_cast %20 : vector<1x32x128xbf16> to vector<32x128xbf16>
      %cst = arith.constant dense<0.000000e+00> : vector<2x128xf32>
      %22 = tpu.matmul %18, %21, %cst {dimension_numbers = #tpu.dot_dimension_numbers<[1], [0], [0], [1], [0, 0, 1, 1], [], []>} : vector<2x32xbf16>, vector<32x128xbf16>, vector<2x128xf32> -> vector<2x128xf32>
      %c3_33 = arith.constant 3 : index
      %c0_34 = arith.constant 0 : index
      %c0_35 = arith.constant 0 : index
      %23 = vector.load %arg7[%c3_33, %c0_34, %c0_35] : memref<4x2x32xf32, #tpu.memory_space<vmem>>, vector<1x2x32xf32>
      %24 = vector.shape_cast %23 : vector<1x2x32xf32> to vector<2x32xf32>
      %25 = arith.truncf %24 : vector<2x32xf32> to vector<2x32xbf16>
      %26 = arith.index_cast %c3_i32_24 : i32 to index
      %c0_36 = arith.constant 0 : index
      %c0_37 = arith.constant 0 : index
      %27 = vector.load %arg4[%26, %c0_36, %c0_37] : memref<4x32x128xbf16, #tpu.memory_space<vmem>>, vector<1x32x128xbf16>
      %28 = vector.shape_cast %27 : vector<1x32x128xbf16> to vector<32x128xbf16>
      %cst_38 = arith.constant dense<0.000000e+00> : vector<2x128xf32>
      %29 = tpu.matmul %25, %28, %cst_38 {dimension_numbers = #tpu.dot_dimension_numbers<[1], [0], [0], [1], [0, 0, 1, 1], [], []>} : vector<2x32xbf16>, vector<32x128xbf16>, vector<2x128xf32> -> vector<2x128xf32>
      %30 = arith.addf %22, %29 : vector<2x128xf32>
      %31 = vector.broadcast %13 : vector<1x128xf32> to vector<2x128xf32>
      %32 = arith.addf %30, %31 : vector<2x128xf32>
      %33 = vector.extract_strided_slice %32 {offsets = [0, 0], sizes = [2, 32], strides = [1, 1]} : vector<2x128xf32> to vector<2x32xf32>
      %34 = arith.negf %33 : vector<2x32xf32>
      %35 = math.exp %34 : vector<2x32xf32>
      %cst_39 = arith.constant 1.000000e+00 : f32
      %36 = vector.broadcast %cst_39 : f32 to vector<2x32xf32>
      %37 = arith.addf %36, %35 : vector<2x32xf32>
      %38 = arith.divf %36, %37 : vector<2x32xf32>
      %39 = vector.extract_strided_slice %32 {offsets = [0, 32], sizes = [2, 32], strides = [1, 1]} : vector<2x128xf32> to vector<2x32xf32>
      %40 = arith.negf %39 : vector<2x32xf32>
      %41 = math.exp %40 : vector<2x32xf32>
      %cst_40 = arith.constant 1.000000e+00 : f32
      %42 = vector.broadcast %cst_40 : f32 to vector<2x32xf32>
      %43 = arith.addf %42, %41 : vector<2x32xf32>
      %44 = arith.divf %42, %43 : vector<2x32xf32>
      %45 = vector.extract_strided_slice %32 {offsets = [0, 64], sizes = [2, 32], strides = [1, 1]} : vector<2x128xf32> to vector<2x32xf32>
      %46 = math.tanh %45 : vector<2x32xf32>
      %47 = vector.extract_strided_slice %32 {offsets = [0, 96], sizes = [2, 32], strides = [1, 1]} : vector<2x128xf32> to vector<2x32xf32>
      %48 = arith.negf %47 : vector<2x32xf32>
      %49 = math.exp %48 : vector<2x32xf32>
      %cst_41 = arith.constant 1.000000e+00 : f32
      %50 = vector.broadcast %cst_41 : f32 to vector<2x32xf32>
      %51 = arith.addf %50, %49 : vector<2x32xf32>
      %52 = arith.divf %50, %51 : vector<2x32xf32>
      %c3_42 = arith.constant 3 : index
      %c0_43 = arith.constant 0 : index
      %c0_44 = arith.constant 0 : index
      %53 = vector.load %arg8[%c3_42, %c0_43, %c0_44] : memref<4x2x32xf32, #tpu.memory_space<vmem>>, vector<1x2x32xf32>
      %54 = vector.shape_cast %53 : vector<1x2x32xf32> to vector<2x32xf32>
      %55 = arith.mulf %44, %54 : vector<2x32xf32>
      %56 = arith.mulf %38, %46 : vector<2x32xf32>
      %57 = arith.addf %55, %56 : vector<2x32xf32>
      %58 = math.tanh %57 : vector<2x32xf32>
      %59 = arith.mulf %52, %58 : vector<2x32xf32>
      %c3_45 = arith.constant 3 : index
      %c0_46 = arith.constant 0 : index
      %c0_47 = arith.constant 0 : index
      %60 = vector.load %arg8[%c3_45, %c0_46, %c0_47] : memref<4x2x32xf32, #tpu.memory_space<vmem>>, vector<1x2x32xf32>
      %61 = vector.shape_cast %60 : vector<1x2x32xf32> to vector<2x32xf32>
      %62 = vector.shape_cast %57 : vector<2x32xf32> to vector<1x2x32xf32>
      tpu.vector_store %arg8[%c3_45, %c0_46, %c0_47], %62 {strides = array<i32>} : memref<4x2x32xf32, #tpu.memory_space<vmem>>, vector<1x2x32xf32>,
      %c3_48 = arith.constant 3 : index
      %c0_49 = arith.constant 0 : index
      %c0_50 = arith.constant 0 : index
      %63 = vector.load %arg7[%c3_48, %c0_49, %c0_50] : memref<4x2x32xf32, #tpu.memory_space<vmem>>, vector<1x2x32xf32>
      %64 = vector.shape_cast %63 : vector<1x2x32xf32> to vector<2x32xf32>
      %65 = vector.shape_cast %59 : vector<2x32xf32> to vector<1x2x32xf32>
      tpu.vector_store %arg7[%c3_48, %c0_49, %c0_50], %65 {strides = array<i32>} : memref<4x2x32xf32, #tpu.memory_space<vmem>>, vector<1x2x32xf32>,
      %66 = arith.index_cast %arg10 : i32 to index
      %c0_51 = arith.constant 0 : index
      %c0_52 = arith.constant 0 : index
      %67 = vector.load %arg6[%66, %c0_51, %c0_52] : memref<3x2x32xf32, #tpu.memory_space<vmem>>, vector<1x2x32xf32>
      %68 = vector.shape_cast %67 : vector<1x2x32xf32> to vector<2x32xf32>
      %69 = vector.shape_cast %59 : vector<2x32xf32> to vector<1x2x32xf32>
      tpu.vector_store %arg6[%66, %c0_51, %c0_52], %69 {strides = array<i32>} : memref<3x2x32xf32, #tpu.memory_space<vmem>>, vector<1x2x32xf32>,
    }
    %c3_i32_28 = arith.constant 3 : i32
    return
  }
  func.func @transform_0(%arg0: i32) -> (i32, i32, i32) {
    %c0_i32 = arith.constant 0 : i32
    %c0_i32_0 = arith.constant 0 : i32
    %c0_i32_1 = arith.constant 0 : i32
    return %arg0, %c0_i32, %c0_i32_0 : i32, i32, i32
  }
  func.func @transform_1(%arg0: i32) -> (i32, i32) {
    %c0_i32 = arith.constant 0 : i32
    %c0_i32_0 = arith.constant 0 : i32
    %c0_i32_1 = arith.constant 0 : i32
    return %c0_i32, %c0_i32_0 : i32, i32
  }
  func.func @transform_2(%arg0: i32) -> (i32, i32, i32) {
    %c0_i32 = arith.constant 0 : i32
    %c0_i32_0 = arith.constant 0 : i32
    %c0_i32_1 = arith.constant 0 : i32
    %c0_i32_2 = arith.constant 0 : i32
    return %c0_i32, %c0_i32_0, %c0_i32_1 : i32, i32, i32
  }
  func.func @transform_3(%arg0: i32) -> (i32, i32, i32) {
    %c0_i32 = arith.constant 0 : i32
    %c0_i32_0 = arith.constant 0 : i32
    %c0_i32_1 = arith.constant 0 : i32
    %c0_i32_2 = arith.constant 0 : i32
    return %c0_i32, %c0_i32_0, %c0_i32_1 : i32, i32, i32
  }
  func.func @transform_4(%arg0: i32) -> (i32, i32, i32) {
    %c0_i32 = arith.constant 0 : i32
    %c0_i32_0 = arith.constant 0 : i32
    %c0_i32_1 = arith.constant 0 : i32
    %c0_i32_2 = arith.constant 0 : i32
    return %c0_i32, %c0_i32_0, %c0_i32_1 : i32, i32, i32
  }
  func.func @transform_5(%arg0: i32) -> (i32, i32, i32) {
    %c0_i32 = arith.constant 0 : i32
    %c0_i32_0 = arith.constant 0 : i32
    %c0_i32_1 = arith.constant 0 : i32
    return %arg0, %c0_i32, %c0_i32_0 : i32, i32, i32
  }
}

module attributes {stable_mosaic.version = 11 : i64} {
  func.func @_lstm_stack_kernel(%arg0: i32, %arg1: memref<3x2x32xf32, #tpu.memory_space<vmem>>, %arg2: memref<32x128xbf16, #tpu.memory_space<vmem>>, %arg3: memref<1x32x128xbf16, #tpu.memory_space<vmem>>, %arg4: memref<1x1x128xf32, #tpu.memory_space<vmem>>, %arg5: memref<3x2x32xf32, #tpu.memory_space<vmem>>, %arg6: memref<1x2x32xf32, #tpu.memory_space<vmem>>, %arg7: memref<1x2x32xf32, #tpu.memory_space<vmem>>) attributes {dimension_semantics = [#tpu.dimension_semantics<arbitrary>], iteration_bounds = array<i64: 3>, scalar_prefetch = 0 : i64, scratch_operands = 2 : i64, tpu.core_type = #tpu.core_type<tc>, window_params = [{transform_indices = @transform_0, window_bounds = array<i64: 3, 2, 32>}, {pipeline_mode = #tpu.pipeline_mode<synchronous>, transform_indices = @transform_1, window_bounds = array<i64: 32, 128>}, {pipeline_mode = #tpu.pipeline_mode<synchronous>, transform_indices = @transform_2, window_bounds = array<i64: 1, 32, 128>}, {pipeline_mode = #tpu.pipeline_mode<synchronous>, transform_indices = @transform_3, window_bounds = array<i64: 1, 1, 128>}, {transform_indices = @transform_4, window_bounds = array<i64: 3, 2, 32>}]} {
    %c0_i32 = arith.constant 0 : i32
    %0 = arith.cmpi eq, %arg0, %c0_i32 : i32
    %1 = arith.extui %0 : i1 to i32
    %c0_i32_0 = arith.constant 0 : i32
    %2 = arith.cmpi ne, %1, %c0_i32_0 : i32
    scf.if %2 {
      %cst = arith.constant 0.000000e+00 : f32
      %6 = vector.broadcast %cst : f32 to vector<1x2x32xf32>
      %c0_6 = arith.constant 0 : index
      %c0_7 = arith.constant 0 : index
      %c0_8 = arith.constant 0 : index
      %7 = vector.load %arg6[%c0_6, %c0_7, %c0_8] : memref<1x2x32xf32, #tpu.memory_space<vmem>>, vector<1x2x32xf32>
      tpu.vector_store %arg6[%c0_6, %c0_7, %c0_8], %6 {strides = array<i32>} : memref<1x2x32xf32, #tpu.memory_space<vmem>>, vector<1x2x32xf32>,
      %cst_9 = arith.constant 0.000000e+00 : f32
      %8 = vector.broadcast %cst_9 : f32 to vector<1x2x32xf32>
      %c0_10 = arith.constant 0 : index
      %c0_11 = arith.constant 0 : index
      %c0_12 = arith.constant 0 : index
      %9 = vector.load %arg7[%c0_10, %c0_11, %c0_12] : memref<1x2x32xf32, #tpu.memory_space<vmem>>, vector<1x2x32xf32>
      tpu.vector_store %arg7[%c0_10, %c0_11, %c0_12], %8 {strides = array<i32>} : memref<1x2x32xf32, #tpu.memory_space<vmem>>, vector<1x2x32xf32>,
    } else {
    }
    %c0 = arith.constant 0 : index
    %c0_1 = arith.constant 0 : index
    %c0_2 = arith.constant 0 : index
    %3 = vector.load %arg4[%c0, %c0_1, %c0_2] : memref<1x1x128xf32, #tpu.memory_space<vmem>>, vector<1x1x128xf32>
    %4 = vector.shape_cast %3 : vector<1x1x128xf32> to vector<1x128xf32>
    %c0_i32_3 = arith.constant 0 : i32
    %c0_i32_4 = arith.constant 0 : i32
    %c3_i32 = arith.constant 3 : i32
    %5 = arith.addi %c0_i32_4, %c3_i32 : i32
    %c1_i32 = arith.constant 1 : i32
    scf.for %arg8 = %c0_i32_4 to %5 step %c1_i32  : i32 {
      %c2_i32 = arith.constant 2 : i32
      %6 = arith.subi %c2_i32, %arg8 : i32
      %7 = arith.index_cast %6 : i32 to index
      %c0_6 = arith.constant 0 : index
      %c0_7 = arith.constant 0 : index
      %8 = vector.load %arg1[%7, %c0_6, %c0_7] : memref<3x2x32xf32, #tpu.memory_space<vmem>>, vector<1x2x32xf32>
      %9 = vector.shape_cast %8 : vector<1x2x32xf32> to vector<2x32xf32>
      %10 = arith.truncf %9 : vector<2x32xf32> to vector<2x32xbf16>
      %c0_8 = arith.constant 0 : index
      %c0_9 = arith.constant 0 : index
      %11 = vector.load %arg2[%c0_8, %c0_9] : memref<32x128xbf16, #tpu.memory_space<vmem>>, vector<32x128xbf16>
      %cst = arith.constant dense<0.000000e+00> : vector<2x128xf32>
      %12 = tpu.matmul %10, %11, %cst {dimension_numbers = #tpu.dot_dimension_numbers<[1], [0], [0], [1], [0, 0, 1, 1], [], []>} : vector<2x32xbf16>, vector<32x128xbf16>, vector<2x128xf32> -> vector<2x128xf32>
      %c0_10 = arith.constant 0 : index
      %c0_11 = arith.constant 0 : index
      %c0_12 = arith.constant 0 : index
      %13 = vector.load %arg6[%c0_10, %c0_11, %c0_12] : memref<1x2x32xf32, #tpu.memory_space<vmem>>, vector<1x2x32xf32>
      %14 = vector.shape_cast %13 : vector<1x2x32xf32> to vector<2x32xf32>
      %15 = arith.truncf %14 : vector<2x32xf32> to vector<2x32xbf16>
      %16 = arith.index_cast %c0_i32_3 : i32 to index
      %c0_13 = arith.constant 0 : index
      %c0_14 = arith.constant 0 : index
      %17 = vector.load %arg3[%16, %c0_13, %c0_14] : memref<1x32x128xbf16, #tpu.memory_space<vmem>>, vector<1x32x128xbf16>
      %18 = vector.shape_cast %17 : vector<1x32x128xbf16> to vector<32x128xbf16>
      %cst_15 = arith.constant dense<0.000000e+00> : vector<2x128xf32>
      %19 = tpu.matmul %15, %18, %cst_15 {dimension_numbers = #tpu.dot_dimension_numbers<[1], [0], [0], [1], [0, 0, 1, 1], [], []>} : vector<2x32xbf16>, vector<32x128xbf16>, vector<2x128xf32> -> vector<2x128xf32>
      %20 = arith.addf %12, %19 : vector<2x128xf32>
      %21 = vector.broadcast %4 : vector<1x128xf32> to vector<2x128xf32>
      %22 = arith.addf %20, %21 : vector<2x128xf32>
      %23 = vector.extract_strided_slice %22 {offsets = [0, 0], sizes = [2, 32], strides = [1, 1]} : vector<2x128xf32> to vector<2x32xf32>
      %24 = arith.negf %23 : vector<2x32xf32>
      %25 = math.exp %24 : vector<2x32xf32>
      %cst_16 = arith.constant 1.000000e+00 : f32
      %26 = vector.broadcast %cst_16 : f32 to vector<2x32xf32>
      %27 = arith.addf %26, %25 : vector<2x32xf32>
      %28 = arith.divf %26, %27 : vector<2x32xf32>
      %29 = vector.extract_strided_slice %22 {offsets = [0, 32], sizes = [2, 32], strides = [1, 1]} : vector<2x128xf32> to vector<2x32xf32>
      %30 = arith.negf %29 : vector<2x32xf32>
      %31 = math.exp %30 : vector<2x32xf32>
      %cst_17 = arith.constant 1.000000e+00 : f32
      %32 = vector.broadcast %cst_17 : f32 to vector<2x32xf32>
      %33 = arith.addf %32, %31 : vector<2x32xf32>
      %34 = arith.divf %32, %33 : vector<2x32xf32>
      %35 = vector.extract_strided_slice %22 {offsets = [0, 64], sizes = [2, 32], strides = [1, 1]} : vector<2x128xf32> to vector<2x32xf32>
      %36 = math.tanh %35 : vector<2x32xf32>
      %37 = vector.extract_strided_slice %22 {offsets = [0, 96], sizes = [2, 32], strides = [1, 1]} : vector<2x128xf32> to vector<2x32xf32>
      %38 = arith.negf %37 : vector<2x32xf32>
      %39 = math.exp %38 : vector<2x32xf32>
      %cst_18 = arith.constant 1.000000e+00 : f32
      %40 = vector.broadcast %cst_18 : f32 to vector<2x32xf32>
      %41 = arith.addf %40, %39 : vector<2x32xf32>
      %42 = arith.divf %40, %41 : vector<2x32xf32>
      %c0_19 = arith.constant 0 : index
      %c0_20 = arith.constant 0 : index
      %c0_21 = arith.constant 0 : index
      %43 = vector.load %arg7[%c0_19, %c0_20, %c0_21] : memref<1x2x32xf32, #tpu.memory_space<vmem>>, vector<1x2x32xf32>
      %44 = vector.shape_cast %43 : vector<1x2x32xf32> to vector<2x32xf32>
      %45 = arith.mulf %34, %44 : vector<2x32xf32>
      %46 = arith.mulf %28, %36 : vector<2x32xf32>
      %47 = arith.addf %45, %46 : vector<2x32xf32>
      %48 = math.tanh %47 : vector<2x32xf32>
      %49 = arith.mulf %42, %48 : vector<2x32xf32>
      %c0_22 = arith.constant 0 : index
      %c0_23 = arith.constant 0 : index
      %c0_24 = arith.constant 0 : index
      %50 = vector.load %arg7[%c0_22, %c0_23, %c0_24] : memref<1x2x32xf32, #tpu.memory_space<vmem>>, vector<1x2x32xf32>
      %51 = vector.shape_cast %50 : vector<1x2x32xf32> to vector<2x32xf32>
      %52 = vector.shape_cast %47 : vector<2x32xf32> to vector<1x2x32xf32>
      tpu.vector_store %arg7[%c0_22, %c0_23, %c0_24], %52 {strides = array<i32>} : memref<1x2x32xf32, #tpu.memory_space<vmem>>, vector<1x2x32xf32>,
      %c0_25 = arith.constant 0 : index
      %c0_26 = arith.constant 0 : index
      %c0_27 = arith.constant 0 : index
      %53 = vector.load %arg6[%c0_25, %c0_26, %c0_27] : memref<1x2x32xf32, #tpu.memory_space<vmem>>, vector<1x2x32xf32>
      %54 = vector.shape_cast %53 : vector<1x2x32xf32> to vector<2x32xf32>
      %55 = vector.shape_cast %49 : vector<2x32xf32> to vector<1x2x32xf32>
      tpu.vector_store %arg6[%c0_25, %c0_26, %c0_27], %55 {strides = array<i32>} : memref<1x2x32xf32, #tpu.memory_space<vmem>>, vector<1x2x32xf32>,
      %56 = arith.index_cast %6 : i32 to index
      %c0_28 = arith.constant 0 : index
      %c0_29 = arith.constant 0 : index
      %57 = vector.load %arg5[%56, %c0_28, %c0_29] : memref<3x2x32xf32, #tpu.memory_space<vmem>>, vector<1x2x32xf32>
      %58 = vector.shape_cast %57 : vector<1x2x32xf32> to vector<2x32xf32>
      %59 = vector.shape_cast %49 : vector<2x32xf32> to vector<1x2x32xf32>
      tpu.vector_store %arg5[%56, %c0_28, %c0_29], %59 {strides = array<i32>} : memref<3x2x32xf32, #tpu.memory_space<vmem>>, vector<1x2x32xf32>,
    }
    %c3_i32_5 = arith.constant 3 : i32
    return
  }
  func.func @transform_0(%arg0: i32) -> (i32, i32, i32) {
    %c2_i32 = arith.constant 2 : i32
    %0 = arith.subi %c2_i32, %arg0 : i32
    %c0_i32 = arith.constant 0 : i32
    %c0_i32_0 = arith.constant 0 : i32
    %c0_i32_1 = arith.constant 0 : i32
    return %0, %c0_i32, %c0_i32_0 : i32, i32, i32
  }
  func.func @transform_1(%arg0: i32) -> (i32, i32) {
    %c0_i32 = arith.constant 0 : i32
    %c0_i32_0 = arith.constant 0 : i32
    %c0_i32_1 = arith.constant 0 : i32
    return %c0_i32, %c0_i32_0 : i32, i32
  }
  func.func @transform_2(%arg0: i32) -> (i32, i32, i32) {
    %c0_i32 = arith.constant 0 : i32
    %c0_i32_0 = arith.constant 0 : i32
    %c0_i32_1 = arith.constant 0 : i32
    %c0_i32_2 = arith.constant 0 : i32
    return %c0_i32, %c0_i32_0, %c0_i32_1 : i32, i32, i32
  }
  func.func @transform_3(%arg0: i32) -> (i32, i32, i32) {
    %c0_i32 = arith.constant 0 : i32
    %c0_i32_0 = arith.constant 0 : i32
    %c0_i32_1 = arith.constant 0 : i32
    %c0_i32_2 = arith.constant 0 : i32
    return %c0_i32, %c0_i32_0, %c0_i32_1 : i32, i32, i32
  }
  func.func @transform_4(%arg0: i32) -> (i32, i32, i32) {
    %c2_i32 = arith.constant 2 : i32
    %0 = arith.subi %c2_i32, %arg0 : i32
    %c0_i32 = arith.constant 0 : i32
    %c0_i32_0 = arith.constant 0 : i32
    %c0_i32_1 = arith.constant 0 : i32
    return %0, %c0_i32, %c0_i32_0 : i32, i32, i32
  }
}

module attributes {stable_mosaic.version = 11 : i64} {
  func.func @_lstm_stack_kernel(%arg0: i32, %arg1: memref<3x2x32xf32, #tpu.memory_space<vmem>>, %arg2: memref<32x128xbf16, #tpu.memory_space<vmem>>, %arg3: memref<1x32x128xbf16, #tpu.memory_space<vmem>>, %arg4: memref<1x1x128xf32, #tpu.memory_space<vmem>>, %arg5: memref<3x2x32xf32, #tpu.memory_space<vmem>>, %arg6: memref<1x2x32xf32, #tpu.memory_space<vmem>>, %arg7: memref<1x2x32xf32, #tpu.memory_space<vmem>>) attributes {dimension_semantics = [#tpu.dimension_semantics<arbitrary>], iteration_bounds = array<i64: 3>, scalar_prefetch = 0 : i64, scratch_operands = 2 : i64, tpu.core_type = #tpu.core_type<tc>, window_params = [{transform_indices = @transform_0, window_bounds = array<i64: 3, 2, 32>}, {pipeline_mode = #tpu.pipeline_mode<synchronous>, transform_indices = @transform_1, window_bounds = array<i64: 32, 128>}, {pipeline_mode = #tpu.pipeline_mode<synchronous>, transform_indices = @transform_2, window_bounds = array<i64: 1, 32, 128>}, {pipeline_mode = #tpu.pipeline_mode<synchronous>, transform_indices = @transform_3, window_bounds = array<i64: 1, 1, 128>}, {transform_indices = @transform_4, window_bounds = array<i64: 3, 2, 32>}]} {
    %c0_i32 = arith.constant 0 : i32
    %0 = arith.cmpi eq, %arg0, %c0_i32 : i32
    %1 = arith.extui %0 : i1 to i32
    %c0_i32_0 = arith.constant 0 : i32
    %2 = arith.cmpi ne, %1, %c0_i32_0 : i32
    scf.if %2 {
      %cst = arith.constant 0.000000e+00 : f32
      %6 = vector.broadcast %cst : f32 to vector<1x2x32xf32>
      %c0_6 = arith.constant 0 : index
      %c0_7 = arith.constant 0 : index
      %c0_8 = arith.constant 0 : index
      %7 = vector.load %arg6[%c0_6, %c0_7, %c0_8] : memref<1x2x32xf32, #tpu.memory_space<vmem>>, vector<1x2x32xf32>
      tpu.vector_store %arg6[%c0_6, %c0_7, %c0_8], %6 {strides = array<i32>} : memref<1x2x32xf32, #tpu.memory_space<vmem>>, vector<1x2x32xf32>,
      %cst_9 = arith.constant 0.000000e+00 : f32
      %8 = vector.broadcast %cst_9 : f32 to vector<1x2x32xf32>
      %c0_10 = arith.constant 0 : index
      %c0_11 = arith.constant 0 : index
      %c0_12 = arith.constant 0 : index
      %9 = vector.load %arg7[%c0_10, %c0_11, %c0_12] : memref<1x2x32xf32, #tpu.memory_space<vmem>>, vector<1x2x32xf32>
      tpu.vector_store %arg7[%c0_10, %c0_11, %c0_12], %8 {strides = array<i32>} : memref<1x2x32xf32, #tpu.memory_space<vmem>>, vector<1x2x32xf32>,
    } else {
    }
    %c0 = arith.constant 0 : index
    %c0_1 = arith.constant 0 : index
    %c0_2 = arith.constant 0 : index
    %3 = vector.load %arg4[%c0, %c0_1, %c0_2] : memref<1x1x128xf32, #tpu.memory_space<vmem>>, vector<1x1x128xf32>
    %4 = vector.shape_cast %3 : vector<1x1x128xf32> to vector<1x128xf32>
    %c0_i32_3 = arith.constant 0 : i32
    %c0_i32_4 = arith.constant 0 : i32
    %c3_i32 = arith.constant 3 : i32
    %5 = arith.addi %c0_i32_4, %c3_i32 : i32
    %c1_i32 = arith.constant 1 : i32
    scf.for %arg8 = %c0_i32_4 to %5 step %c1_i32  : i32 {
      %6 = arith.index_cast %arg8 : i32 to index
      %c0_6 = arith.constant 0 : index
      %c0_7 = arith.constant 0 : index
      %7 = vector.load %arg1[%6, %c0_6, %c0_7] : memref<3x2x32xf32, #tpu.memory_space<vmem>>, vector<1x2x32xf32>
      %8 = vector.shape_cast %7 : vector<1x2x32xf32> to vector<2x32xf32>
      %9 = arith.truncf %8 : vector<2x32xf32> to vector<2x32xbf16>
      %c0_8 = arith.constant 0 : index
      %c0_9 = arith.constant 0 : index
      %10 = vector.load %arg2[%c0_8, %c0_9] : memref<32x128xbf16, #tpu.memory_space<vmem>>, vector<32x128xbf16>
      %cst = arith.constant dense<0.000000e+00> : vector<2x128xf32>
      %11 = tpu.matmul %9, %10, %cst {dimension_numbers = #tpu.dot_dimension_numbers<[1], [0], [0], [1], [0, 0, 1, 1], [], []>} : vector<2x32xbf16>, vector<32x128xbf16>, vector<2x128xf32> -> vector<2x128xf32>
      %c0_10 = arith.constant 0 : index
      %c0_11 = arith.constant 0 : index
      %c0_12 = arith.constant 0 : index
      %12 = vector.load %arg6[%c0_10, %c0_11, %c0_12] : memref<1x2x32xf32, #tpu.memory_space<vmem>>, vector<1x2x32xf32>
      %13 = vector.shape_cast %12 : vector<1x2x32xf32> to vector<2x32xf32>
      %14 = arith.truncf %13 : vector<2x32xf32> to vector<2x32xbf16>
      %15 = arith.index_cast %c0_i32_3 : i32 to index
      %c0_13 = arith.constant 0 : index
      %c0_14 = arith.constant 0 : index
      %16 = vector.load %arg3[%15, %c0_13, %c0_14] : memref<1x32x128xbf16, #tpu.memory_space<vmem>>, vector<1x32x128xbf16>
      %17 = vector.shape_cast %16 : vector<1x32x128xbf16> to vector<32x128xbf16>
      %cst_15 = arith.constant dense<0.000000e+00> : vector<2x128xf32>
      %18 = tpu.matmul %14, %17, %cst_15 {dimension_numbers = #tpu.dot_dimension_numbers<[1], [0], [0], [1], [0, 0, 1, 1], [], []>} : vector<2x32xbf16>, vector<32x128xbf16>, vector<2x128xf32> -> vector<2x128xf32>
      %19 = arith.addf %11, %18 : vector<2x128xf32>
      %20 = vector.broadcast %4 : vector<1x128xf32> to vector<2x128xf32>
      %21 = arith.addf %19, %20 : vector<2x128xf32>
      %22 = vector.extract_strided_slice %21 {offsets = [0, 0], sizes = [2, 32], strides = [1, 1]} : vector<2x128xf32> to vector<2x32xf32>
      %23 = arith.negf %22 : vector<2x32xf32>
      %24 = math.exp %23 : vector<2x32xf32>
      %cst_16 = arith.constant 1.000000e+00 : f32
      %25 = vector.broadcast %cst_16 : f32 to vector<2x32xf32>
      %26 = arith.addf %25, %24 : vector<2x32xf32>
      %27 = arith.divf %25, %26 : vector<2x32xf32>
      %28 = vector.extract_strided_slice %21 {offsets = [0, 32], sizes = [2, 32], strides = [1, 1]} : vector<2x128xf32> to vector<2x32xf32>
      %29 = arith.negf %28 : vector<2x32xf32>
      %30 = math.exp %29 : vector<2x32xf32>
      %cst_17 = arith.constant 1.000000e+00 : f32
      %31 = vector.broadcast %cst_17 : f32 to vector<2x32xf32>
      %32 = arith.addf %31, %30 : vector<2x32xf32>
      %33 = arith.divf %31, %32 : vector<2x32xf32>
      %34 = vector.extract_strided_slice %21 {offsets = [0, 64], sizes = [2, 32], strides = [1, 1]} : vector<2x128xf32> to vector<2x32xf32>
      %35 = math.tanh %34 : vector<2x32xf32>
      %36 = vector.extract_strided_slice %21 {offsets = [0, 96], sizes = [2, 32], strides = [1, 1]} : vector<2x128xf32> to vector<2x32xf32>
      %37 = arith.negf %36 : vector<2x32xf32>
      %38 = math.exp %37 : vector<2x32xf32>
      %cst_18 = arith.constant 1.000000e+00 : f32
      %39 = vector.broadcast %cst_18 : f32 to vector<2x32xf32>
      %40 = arith.addf %39, %38 : vector<2x32xf32>
      %41 = arith.divf %39, %40 : vector<2x32xf32>
      %c0_19 = arith.constant 0 : index
      %c0_20 = arith.constant 0 : index
      %c0_21 = arith.constant 0 : index
      %42 = vector.load %arg7[%c0_19, %c0_20, %c0_21] : memref<1x2x32xf32, #tpu.memory_space<vmem>>, vector<1x2x32xf32>
      %43 = vector.shape_cast %42 : vector<1x2x32xf32> to vector<2x32xf32>
      %44 = arith.mulf %33, %43 : vector<2x32xf32>
      %45 = arith.mulf %27, %35 : vector<2x32xf32>
      %46 = arith.addf %44, %45 : vector<2x32xf32>
      %47 = math.tanh %46 : vector<2x32xf32>
      %48 = arith.mulf %41, %47 : vector<2x32xf32>
      %c0_22 = arith.constant 0 : index
      %c0_23 = arith.constant 0 : index
      %c0_24 = arith.constant 0 : index
      %49 = vector.load %arg7[%c0_22, %c0_23, %c0_24] : memref<1x2x32xf32, #tpu.memory_space<vmem>>, vector<1x2x32xf32>
      %50 = vector.shape_cast %49 : vector<1x2x32xf32> to vector<2x32xf32>
      %51 = vector.shape_cast %46 : vector<2x32xf32> to vector<1x2x32xf32>
      tpu.vector_store %arg7[%c0_22, %c0_23, %c0_24], %51 {strides = array<i32>} : memref<1x2x32xf32, #tpu.memory_space<vmem>>, vector<1x2x32xf32>,
      %c0_25 = arith.constant 0 : index
      %c0_26 = arith.constant 0 : index
      %c0_27 = arith.constant 0 : index
      %52 = vector.load %arg6[%c0_25, %c0_26, %c0_27] : memref<1x2x32xf32, #tpu.memory_space<vmem>>, vector<1x2x32xf32>
      %53 = vector.shape_cast %52 : vector<1x2x32xf32> to vector<2x32xf32>
      %54 = vector.shape_cast %48 : vector<2x32xf32> to vector<1x2x32xf32>
      tpu.vector_store %arg6[%c0_25, %c0_26, %c0_27], %54 {strides = array<i32>} : memref<1x2x32xf32, #tpu.memory_space<vmem>>, vector<1x2x32xf32>,
      %55 = arith.index_cast %arg8 : i32 to index
      %c0_28 = arith.constant 0 : index
      %c0_29 = arith.constant 0 : index
      %56 = vector.load %arg5[%55, %c0_28, %c0_29] : memref<3x2x32xf32, #tpu.memory_space<vmem>>, vector<1x2x32xf32>
      %57 = vector.shape_cast %56 : vector<1x2x32xf32> to vector<2x32xf32>
      %58 = vector.shape_cast %48 : vector<2x32xf32> to vector<1x2x32xf32>
      tpu.vector_store %arg5[%55, %c0_28, %c0_29], %58 {strides = array<i32>} : memref<3x2x32xf32, #tpu.memory_space<vmem>>, vector<1x2x32xf32>,
    }
    %c3_i32_5 = arith.constant 3 : i32
    return
  }
  func.func @transform_0(%arg0: i32) -> (i32, i32, i32) {
    %c0_i32 = arith.constant 0 : i32
    %c0_i32_0 = arith.constant 0 : i32
    %c0_i32_1 = arith.constant 0 : i32
    return %arg0, %c0_i32, %c0_i32_0 : i32, i32, i32
  }
  func.func @transform_1(%arg0: i32) -> (i32, i32) {
    %c0_i32 = arith.constant 0 : i32
    %c0_i32_0 = arith.constant 0 : i32
    %c0_i32_1 = arith.constant 0 : i32
    return %c0_i32, %c0_i32_0 : i32, i32
  }
  func.func @transform_2(%arg0: i32) -> (i32, i32, i32) {
    %c0_i32 = arith.constant 0 : i32
    %c0_i32_0 = arith.constant 0 : i32
    %c0_i32_1 = arith.constant 0 : i32
    %c0_i32_2 = arith.constant 0 : i32
    return %c0_i32, %c0_i32_0, %c0_i32_1 : i32, i32, i32
  }
  func.func @transform_3(%arg0: i32) -> (i32, i32, i32) {
    %c0_i32 = arith.constant 0 : i32
    %c0_i32_0 = arith.constant 0 : i32
    %c0_i32_1 = arith.constant 0 : i32
    %c0_i32_2 = arith.constant 0 : i32
    return %c0_i32, %c0_i32_0, %c0_i32_1 : i32, i32, i32
  }
  func.func @transform_4(%arg0: i32) -> (i32, i32, i32) {
    %c0_i32 = arith.constant 0 : i32
    %c0_i32_0 = arith.constant 0 : i32
    %c0_i32_1 = arith.constant 0 : i32
    return %arg0, %c0_i32, %c0_i32_0 : i32, i32, i32
  }
}

module attributes {stable_mosaic.version = 11 : i64} {
  func.func @_lstm_stack_kernel(%arg0: i32, %arg1: memref<3x2x64xf32, #tpu.memory_space<vmem>>, %arg2: memref<64x256xbf16, #tpu.memory_space<vmem>>, %arg3: memref<1x64x256xbf16, #tpu.memory_space<vmem>>, %arg4: memref<1x1x256xf32, #tpu.memory_space<vmem>>, %arg5: memref<3x2x64xf32, #tpu.memory_space<vmem>>, %arg6: memref<1x2x64xf32, #tpu.memory_space<vmem>>, %arg7: memref<1x2x64xf32, #tpu.memory_space<vmem>>) attributes {dimension_semantics = [#tpu.dimension_semantics<arbitrary>], iteration_bounds = array<i64: 3>, scalar_prefetch = 0 : i64, scratch_operands = 2 : i64, tpu.core_type = #tpu.core_type<tc>, window_params = [{transform_indices = @transform_0, window_bounds = array<i64: 3, 2, 64>}, {pipeline_mode = #tpu.pipeline_mode<synchronous>, transform_indices = @transform_1, window_bounds = array<i64: 64, 256>}, {pipeline_mode = #tpu.pipeline_mode<synchronous>, transform_indices = @transform_2, window_bounds = array<i64: 1, 64, 256>}, {pipeline_mode = #tpu.pipeline_mode<synchronous>, transform_indices = @transform_3, window_bounds = array<i64: 1, 1, 256>}, {transform_indices = @transform_4, window_bounds = array<i64: 3, 2, 64>}]} {
    %c0_i32 = arith.constant 0 : i32
    %0 = arith.cmpi eq, %arg0, %c0_i32 : i32
    %1 = arith.extui %0 : i1 to i32
    %c0_i32_0 = arith.constant 0 : i32
    %2 = arith.cmpi ne, %1, %c0_i32_0 : i32
    scf.if %2 {
      %cst = arith.constant 0.000000e+00 : f32
      %6 = vector.broadcast %cst : f32 to vector<1x2x64xf32>
      %c0_6 = arith.constant 0 : index
      %c0_7 = arith.constant 0 : index
      %c0_8 = arith.constant 0 : index
      %7 = vector.load %arg6[%c0_6, %c0_7, %c0_8] : memref<1x2x64xf32, #tpu.memory_space<vmem>>, vector<1x2x64xf32>
      tpu.vector_store %arg6[%c0_6, %c0_7, %c0_8], %6 {strides = array<i32>} : memref<1x2x64xf32, #tpu.memory_space<vmem>>, vector<1x2x64xf32>,
      %cst_9 = arith.constant 0.000000e+00 : f32
      %8 = vector.broadcast %cst_9 : f32 to vector<1x2x64xf32>
      %c0_10 = arith.constant 0 : index
      %c0_11 = arith.constant 0 : index
      %c0_12 = arith.constant 0 : index
      %9 = vector.load %arg7[%c0_10, %c0_11, %c0_12] : memref<1x2x64xf32, #tpu.memory_space<vmem>>, vector<1x2x64xf32>
      tpu.vector_store %arg7[%c0_10, %c0_11, %c0_12], %8 {strides = array<i32>} : memref<1x2x64xf32, #tpu.memory_space<vmem>>, vector<1x2x64xf32>,
    } else {
    }
    %c0 = arith.constant 0 : index
    %c0_1 = arith.constant 0 : index
    %c0_2 = arith.constant 0 : index
    %3 = vector.load %arg4[%c0, %c0_1, %c0_2] : memref<1x1x256xf32, #tpu.memory_space<vmem>>, vector<1x1x256xf32>
    %4 = vector.shape_cast %3 : vector<1x1x256xf32> to vector<1x256xf32>
    %c0_i32_3 = arith.constant 0 : i32
    %c0_i32_4 = arith.constant 0 : i32
    %c3_i32 = arith.constant 3 : i32
    %5 = arith.addi %c0_i32_4, %c3_i32 : i32
    %c1_i32 = arith.constant 1 : i32
    scf.for %arg8 = %c0_i32_4 to %5 step %c1_i32  : i32 {
      %6 = arith.index_cast %arg8 : i32 to index
      %c0_6 = arith.constant 0 : index
      %c0_7 = arith.constant 0 : index
      %7 = vector.load %arg1[%6, %c0_6, %c0_7] : memref<3x2x64xf32, #tpu.memory_space<vmem>>, vector<1x2x64xf32>
      %8 = vector.shape_cast %7 : vector<1x2x64xf32> to vector<2x64xf32>
      %9 = arith.truncf %8 : vector<2x64xf32> to vector<2x64xbf16>
      %c0_8 = arith.constant 0 : index
      %c0_9 = arith.constant 0 : index
      %10 = vector.load %arg2[%c0_8, %c0_9] : memref<64x256xbf16, #tpu.memory_space<vmem>>, vector<64x256xbf16>
      %cst = arith.constant dense<0.000000e+00> : vector<2x256xf32>
      %11 = tpu.matmul %9, %10, %cst {dimension_numbers = #tpu.dot_dimension_numbers<[1], [0], [0], [1], [0, 0, 1, 1], [], []>} : vector<2x64xbf16>, vector<64x256xbf16>, vector<2x256xf32> -> vector<2x256xf32>
      %c0_10 = arith.constant 0 : index
      %c0_11 = arith.constant 0 : index
      %c0_12 = arith.constant 0 : index
      %12 = vector.load %arg6[%c0_10, %c0_11, %c0_12] : memref<1x2x64xf32, #tpu.memory_space<vmem>>, vector<1x2x64xf32>
      %13 = vector.shape_cast %12 : vector<1x2x64xf32> to vector<2x64xf32>
      %14 = arith.truncf %13 : vector<2x64xf32> to vector<2x64xbf16>
      %15 = arith.index_cast %c0_i32_3 : i32 to index
      %c0_13 = arith.constant 0 : index
      %c0_14 = arith.constant 0 : index
      %16 = vector.load %arg3[%15, %c0_13, %c0_14] : memref<1x64x256xbf16, #tpu.memory_space<vmem>>, vector<1x64x256xbf16>
      %17 = vector.shape_cast %16 : vector<1x64x256xbf16> to vector<64x256xbf16>
      %cst_15 = arith.constant dense<0.000000e+00> : vector<2x256xf32>
      %18 = tpu.matmul %14, %17, %cst_15 {dimension_numbers = #tpu.dot_dimension_numbers<[1], [0], [0], [1], [0, 0, 1, 1], [], []>} : vector<2x64xbf16>, vector<64x256xbf16>, vector<2x256xf32> -> vector<2x256xf32>
      %19 = arith.addf %11, %18 : vector<2x256xf32>
      %20 = vector.broadcast %4 : vector<1x256xf32> to vector<2x256xf32>
      %21 = arith.addf %19, %20 : vector<2x256xf32>
      %22 = vector.extract_strided_slice %21 {offsets = [0, 0], sizes = [2, 64], strides = [1, 1]} : vector<2x256xf32> to vector<2x64xf32>
      %23 = arith.negf %22 : vector<2x64xf32>
      %24 = math.exp %23 : vector<2x64xf32>
      %cst_16 = arith.constant 1.000000e+00 : f32
      %25 = vector.broadcast %cst_16 : f32 to vector<2x64xf32>
      %26 = arith.addf %25, %24 : vector<2x64xf32>
      %27 = arith.divf %25, %26 : vector<2x64xf32>
      %28 = vector.extract_strided_slice %21 {offsets = [0, 64], sizes = [2, 64], strides = [1, 1]} : vector<2x256xf32> to vector<2x64xf32>
      %29 = arith.negf %28 : vector<2x64xf32>
      %30 = math.exp %29 : vector<2x64xf32>
      %cst_17 = arith.constant 1.000000e+00 : f32
      %31 = vector.broadcast %cst_17 : f32 to vector<2x64xf32>
      %32 = arith.addf %31, %30 : vector<2x64xf32>
      %33 = arith.divf %31, %32 : vector<2x64xf32>
      %34 = vector.extract_strided_slice %21 {offsets = [0, 128], sizes = [2, 64], strides = [1, 1]} : vector<2x256xf32> to vector<2x64xf32>
      %35 = math.tanh %34 : vector<2x64xf32>
      %36 = vector.extract_strided_slice %21 {offsets = [0, 192], sizes = [2, 64], strides = [1, 1]} : vector<2x256xf32> to vector<2x64xf32>
      %37 = arith.negf %36 : vector<2x64xf32>
      %38 = math.exp %37 : vector<2x64xf32>
      %cst_18 = arith.constant 1.000000e+00 : f32
      %39 = vector.broadcast %cst_18 : f32 to vector<2x64xf32>
      %40 = arith.addf %39, %38 : vector<2x64xf32>
      %41 = arith.divf %39, %40 : vector<2x64xf32>
      %c0_19 = arith.constant 0 : index
      %c0_20 = arith.constant 0 : index
      %c0_21 = arith.constant 0 : index
      %42 = vector.load %arg7[%c0_19, %c0_20, %c0_21] : memref<1x2x64xf32, #tpu.memory_space<vmem>>, vector<1x2x64xf32>
      %43 = vector.shape_cast %42 : vector<1x2x64xf32> to vector<2x64xf32>
      %44 = arith.mulf %33, %43 : vector<2x64xf32>
      %45 = arith.mulf %27, %35 : vector<2x64xf32>
      %46 = arith.addf %44, %45 : vector<2x64xf32>
      %47 = math.tanh %46 : vector<2x64xf32>
      %48 = arith.mulf %41, %47 : vector<2x64xf32>
      %c0_22 = arith.constant 0 : index
      %c0_23 = arith.constant 0 : index
      %c0_24 = arith.constant 0 : index
      %49 = vector.load %arg7[%c0_22, %c0_23, %c0_24] : memref<1x2x64xf32, #tpu.memory_space<vmem>>, vector<1x2x64xf32>
      %50 = vector.shape_cast %49 : vector<1x2x64xf32> to vector<2x64xf32>
      %51 = vector.shape_cast %46 : vector<2x64xf32> to vector<1x2x64xf32>
      tpu.vector_store %arg7[%c0_22, %c0_23, %c0_24], %51 {strides = array<i32>} : memref<1x2x64xf32, #tpu.memory_space<vmem>>, vector<1x2x64xf32>,
      %c0_25 = arith.constant 0 : index
      %c0_26 = arith.constant 0 : index
      %c0_27 = arith.constant 0 : index
      %52 = vector.load %arg6[%c0_25, %c0_26, %c0_27] : memref<1x2x64xf32, #tpu.memory_space<vmem>>, vector<1x2x64xf32>
      %53 = vector.shape_cast %52 : vector<1x2x64xf32> to vector<2x64xf32>
      %54 = vector.shape_cast %48 : vector<2x64xf32> to vector<1x2x64xf32>
      tpu.vector_store %arg6[%c0_25, %c0_26, %c0_27], %54 {strides = array<i32>} : memref<1x2x64xf32, #tpu.memory_space<vmem>>, vector<1x2x64xf32>,
      %55 = arith.index_cast %arg8 : i32 to index
      %c0_28 = arith.constant 0 : index
      %c0_29 = arith.constant 0 : index
      %56 = vector.load %arg5[%55, %c0_28, %c0_29] : memref<3x2x64xf32, #tpu.memory_space<vmem>>, vector<1x2x64xf32>
      %57 = vector.shape_cast %56 : vector<1x2x64xf32> to vector<2x64xf32>
      %58 = vector.shape_cast %48 : vector<2x64xf32> to vector<1x2x64xf32>
      tpu.vector_store %arg5[%55, %c0_28, %c0_29], %58 {strides = array<i32>} : memref<3x2x64xf32, #tpu.memory_space<vmem>>, vector<1x2x64xf32>,
    }
    %c3_i32_5 = arith.constant 3 : i32
    return
  }
  func.func @transform_0(%arg0: i32) -> (i32, i32, i32) {
    %c0_i32 = arith.constant 0 : i32
    %c0_i32_0 = arith.constant 0 : i32
    %c0_i32_1 = arith.constant 0 : i32
    return %arg0, %c0_i32, %c0_i32_0 : i32, i32, i32
  }
  func.func @transform_1(%arg0: i32) -> (i32, i32) {
    %c0_i32 = arith.constant 0 : i32
    %c0_i32_0 = arith.constant 0 : i32
    %c0_i32_1 = arith.constant 0 : i32
    return %c0_i32, %c0_i32_0 : i32, i32
  }
  func.func @transform_2(%arg0: i32) -> (i32, i32, i32) {
    %c0_i32 = arith.constant 0 : i32
    %c0_i32_0 = arith.constant 0 : i32
    %c0_i32_1 = arith.constant 0 : i32
    %c0_i32_2 = arith.constant 0 : i32
    return %c0_i32, %c0_i32_0, %c0_i32_1 : i32, i32, i32
  }
  func.func @transform_3(%arg0: i32) -> (i32, i32, i32) {
    %c0_i32 = arith.constant 0 : i32
    %c0_i32_0 = arith.constant 0 : i32
    %c0_i32_1 = arith.constant 0 : i32
    %c0_i32_2 = arith.constant 0 : i32
    return %c0_i32, %c0_i32_0, %c0_i32_1 : i32, i32, i32
  }
  func.func @transform_4(%arg0: i32) -> (i32, i32, i32) {
    %c0_i32 = arith.constant 0 : i32
    %c0_i32_0 = arith.constant 0 : i32
    %c0_i32_1 = arith.constant 0 : i32
    return %arg0, %c0_i32, %c0_i32_0 : i32, i32, i32
  }
}

module attributes {stable_mosaic.version = 11 : i64} {
  func.func @_lstm_stack_kernel(%arg0: i32, %arg1: memref<3x2x64xf32, #tpu.memory_space<vmem>>, %arg2: memref<64x256xbf16, #tpu.memory_space<vmem>>, %arg3: memref<1x64x256xbf16, #tpu.memory_space<vmem>>, %arg4: memref<1x1x256xf32, #tpu.memory_space<vmem>>, %arg5: memref<3x2x64xf32, #tpu.memory_space<vmem>>, %arg6: memref<1x2x64xf32, #tpu.memory_space<vmem>>, %arg7: memref<1x2x64xf32, #tpu.memory_space<vmem>>) attributes {dimension_semantics = [#tpu.dimension_semantics<arbitrary>], iteration_bounds = array<i64: 3>, scalar_prefetch = 0 : i64, scratch_operands = 2 : i64, tpu.core_type = #tpu.core_type<tc>, window_params = [{transform_indices = @transform_0, window_bounds = array<i64: 3, 2, 64>}, {pipeline_mode = #tpu.pipeline_mode<synchronous>, transform_indices = @transform_1, window_bounds = array<i64: 64, 256>}, {pipeline_mode = #tpu.pipeline_mode<synchronous>, transform_indices = @transform_2, window_bounds = array<i64: 1, 64, 256>}, {pipeline_mode = #tpu.pipeline_mode<synchronous>, transform_indices = @transform_3, window_bounds = array<i64: 1, 1, 256>}, {transform_indices = @transform_4, window_bounds = array<i64: 3, 2, 64>}]} {
    %c0_i32 = arith.constant 0 : i32
    %0 = arith.cmpi eq, %arg0, %c0_i32 : i32
    %1 = arith.extui %0 : i1 to i32
    %c0_i32_0 = arith.constant 0 : i32
    %2 = arith.cmpi ne, %1, %c0_i32_0 : i32
    scf.if %2 {
      %cst = arith.constant 0.000000e+00 : f32
      %6 = vector.broadcast %cst : f32 to vector<1x2x64xf32>
      %c0_6 = arith.constant 0 : index
      %c0_7 = arith.constant 0 : index
      %c0_8 = arith.constant 0 : index
      %7 = vector.load %arg6[%c0_6, %c0_7, %c0_8] : memref<1x2x64xf32, #tpu.memory_space<vmem>>, vector<1x2x64xf32>
      tpu.vector_store %arg6[%c0_6, %c0_7, %c0_8], %6 {strides = array<i32>} : memref<1x2x64xf32, #tpu.memory_space<vmem>>, vector<1x2x64xf32>,
      %cst_9 = arith.constant 0.000000e+00 : f32
      %8 = vector.broadcast %cst_9 : f32 to vector<1x2x64xf32>
      %c0_10 = arith.constant 0 : index
      %c0_11 = arith.constant 0 : index
      %c0_12 = arith.constant 0 : index
      %9 = vector.load %arg7[%c0_10, %c0_11, %c0_12] : memref<1x2x64xf32, #tpu.memory_space<vmem>>, vector<1x2x64xf32>
      tpu.vector_store %arg7[%c0_10, %c0_11, %c0_12], %8 {strides = array<i32>} : memref<1x2x64xf32, #tpu.memory_space<vmem>>, vector<1x2x64xf32>,
    } else {
    }
    %c0 = arith.constant 0 : index
    %c0_1 = arith.constant 0 : index
    %c0_2 = arith.constant 0 : index
    %3 = vector.load %arg4[%c0, %c0_1, %c0_2] : memref<1x1x256xf32, #tpu.memory_space<vmem>>, vector<1x1x256xf32>
    %4 = vector.shape_cast %3 : vector<1x1x256xf32> to vector<1x256xf32>
    %c0_i32_3 = arith.constant 0 : i32
    %c0_i32_4 = arith.constant 0 : i32
    %c3_i32 = arith.constant 3 : i32
    %5 = arith.addi %c0_i32_4, %c3_i32 : i32
    %c1_i32 = arith.constant 1 : i32
    scf.for %arg8 = %c0_i32_4 to %5 step %c1_i32  : i32 {
      %c2_i32 = arith.constant 2 : i32
      %6 = arith.subi %c2_i32, %arg8 : i32
      %7 = arith.index_cast %6 : i32 to index
      %c0_6 = arith.constant 0 : index
      %c0_7 = arith.constant 0 : index
      %8 = vector.load %arg1[%7, %c0_6, %c0_7] : memref<3x2x64xf32, #tpu.memory_space<vmem>>, vector<1x2x64xf32>
      %9 = vector.shape_cast %8 : vector<1x2x64xf32> to vector<2x64xf32>
      %10 = arith.truncf %9 : vector<2x64xf32> to vector<2x64xbf16>
      %c0_8 = arith.constant 0 : index
      %c0_9 = arith.constant 0 : index
      %11 = vector.load %arg2[%c0_8, %c0_9] : memref<64x256xbf16, #tpu.memory_space<vmem>>, vector<64x256xbf16>
      %cst = arith.constant dense<0.000000e+00> : vector<2x256xf32>
      %12 = tpu.matmul %10, %11, %cst {dimension_numbers = #tpu.dot_dimension_numbers<[1], [0], [0], [1], [0, 0, 1, 1], [], []>} : vector<2x64xbf16>, vector<64x256xbf16>, vector<2x256xf32> -> vector<2x256xf32>
      %c0_10 = arith.constant 0 : index
      %c0_11 = arith.constant 0 : index
      %c0_12 = arith.constant 0 : index
      %13 = vector.load %arg6[%c0_10, %c0_11, %c0_12] : memref<1x2x64xf32, #tpu.memory_space<vmem>>, vector<1x2x64xf32>
      %14 = vector.shape_cast %13 : vector<1x2x64xf32> to vector<2x64xf32>
      %15 = arith.truncf %14 : vector<2x64xf32> to vector<2x64xbf16>
      %16 = arith.index_cast %c0_i32_3 : i32 to index
      %c0_13 = arith.constant 0 : index
      %c0_14 = arith.constant 0 : index
      %17 = vector.load %arg3[%16, %c0_13, %c0_14] : memref<1x64x256xbf16, #tpu.memory_space<vmem>>, vector<1x64x256xbf16>
      %18 = vector.shape_cast %17 : vector<1x64x256xbf16> to vector<64x256xbf16>
      %cst_15 = arith.constant dense<0.000000e+00> : vector<2x256xf32>
      %19 = tpu.matmul %15, %18, %cst_15 {dimension_numbers = #tpu.dot_dimension_numbers<[1], [0], [0], [1], [0, 0, 1, 1], [], []>} : vector<2x64xbf16>, vector<64x256xbf16>, vector<2x256xf32> -> vector<2x256xf32>
      %20 = arith.addf %12, %19 : vector<2x256xf32>
      %21 = vector.broadcast %4 : vector<1x256xf32> to vector<2x256xf32>
      %22 = arith.addf %20, %21 : vector<2x256xf32>
      %23 = vector.extract_strided_slice %22 {offsets = [0, 0], sizes = [2, 64], strides = [1, 1]} : vector<2x256xf32> to vector<2x64xf32>
      %24 = arith.negf %23 : vector<2x64xf32>
      %25 = math.exp %24 : vector<2x64xf32>
      %cst_16 = arith.constant 1.000000e+00 : f32
      %26 = vector.broadcast %cst_16 : f32 to vector<2x64xf32>
      %27 = arith.addf %26, %25 : vector<2x64xf32>
      %28 = arith.divf %26, %27 : vector<2x64xf32>
      %29 = vector.extract_strided_slice %22 {offsets = [0, 64], sizes = [2, 64], strides = [1, 1]} : vector<2x256xf32> to vector<2x64xf32>
      %30 = arith.negf %29 : vector<2x64xf32>
      %31 = math.exp %30 : vector<2x64xf32>
      %cst_17 = arith.constant 1.000000e+00 : f32
      %32 = vector.broadcast %cst_17 : f32 to vector<2x64xf32>
      %33 = arith.addf %32, %31 : vector<2x64xf32>
      %34 = arith.divf %32, %33 : vector<2x64xf32>
      %35 = vector.extract_strided_slice %22 {offsets = [0, 128], sizes = [2, 64], strides = [1, 1]} : vector<2x256xf32> to vector<2x64xf32>
      %36 = math.tanh %35 : vector<2x64xf32>
      %37 = vector.extract_strided_slice %22 {offsets = [0, 192], sizes = [2, 64], strides = [1, 1]} : vector<2x256xf32> to vector<2x64xf32>
      %38 = arith.negf %37 : vector<2x64xf32>
      %39 = math.exp %38 : vector<2x64xf32>
      %cst_18 = arith.constant 1.000000e+00 : f32
      %40 = vector.broadcast %cst_18 : f32 to vector<2x64xf32>
      %41 = arith.addf %40, %39 : vector<2x64xf32>
      %42 = arith.divf %40, %41 : vector<2x64xf32>
      %c0_19 = arith.constant 0 : index
      %c0_20 = arith.constant 0 : index
      %c0_21 = arith.constant 0 : index
      %43 = vector.load %arg7[%c0_19, %c0_20, %c0_21] : memref<1x2x64xf32, #tpu.memory_space<vmem>>, vector<1x2x64xf32>
      %44 = vector.shape_cast %43 : vector<1x2x64xf32> to vector<2x64xf32>
      %45 = arith.mulf %34, %44 : vector<2x64xf32>
      %46 = arith.mulf %28, %36 : vector<2x64xf32>
      %47 = arith.addf %45, %46 : vector<2x64xf32>
      %48 = math.tanh %47 : vector<2x64xf32>
      %49 = arith.mulf %42, %48 : vector<2x64xf32>
      %c0_22 = arith.constant 0 : index
      %c0_23 = arith.constant 0 : index
      %c0_24 = arith.constant 0 : index
      %50 = vector.load %arg7[%c0_22, %c0_23, %c0_24] : memref<1x2x64xf32, #tpu.memory_space<vmem>>, vector<1x2x64xf32>
      %51 = vector.shape_cast %50 : vector<1x2x64xf32> to vector<2x64xf32>
      %52 = vector.shape_cast %47 : vector<2x64xf32> to vector<1x2x64xf32>
      tpu.vector_store %arg7[%c0_22, %c0_23, %c0_24], %52 {strides = array<i32>} : memref<1x2x64xf32, #tpu.memory_space<vmem>>, vector<1x2x64xf32>,
      %c0_25 = arith.constant 0 : index
      %c0_26 = arith.constant 0 : index
      %c0_27 = arith.constant 0 : index
      %53 = vector.load %arg6[%c0_25, %c0_26, %c0_27] : memref<1x2x64xf32, #tpu.memory_space<vmem>>, vector<1x2x64xf32>
      %54 = vector.shape_cast %53 : vector<1x2x64xf32> to vector<2x64xf32>
      %55 = vector.shape_cast %49 : vector<2x64xf32> to vector<1x2x64xf32>
      tpu.vector_store %arg6[%c0_25, %c0_26, %c0_27], %55 {strides = array<i32>} : memref<1x2x64xf32, #tpu.memory_space<vmem>>, vector<1x2x64xf32>,
      %56 = arith.index_cast %6 : i32 to index
      %c0_28 = arith.constant 0 : index
      %c0_29 = arith.constant 0 : index
      %57 = vector.load %arg5[%56, %c0_28, %c0_29] : memref<3x2x64xf32, #tpu.memory_space<vmem>>, vector<1x2x64xf32>
      %58 = vector.shape_cast %57 : vector<1x2x64xf32> to vector<2x64xf32>
      %59 = vector.shape_cast %49 : vector<2x64xf32> to vector<1x2x64xf32>
      tpu.vector_store %arg5[%56, %c0_28, %c0_29], %59 {strides = array<i32>} : memref<3x2x64xf32, #tpu.memory_space<vmem>>, vector<1x2x64xf32>,
    }
    %c3_i32_5 = arith.constant 3 : i32
    return
  }
  func.func @transform_0(%arg0: i32) -> (i32, i32, i32) {
    %c2_i32 = arith.constant 2 : i32
    %0 = arith.subi %c2_i32, %arg0 : i32
    %c0_i32 = arith.constant 0 : i32
    %c0_i32_0 = arith.constant 0 : i32
    %c0_i32_1 = arith.constant 0 : i32
    return %0, %c0_i32, %c0_i32_0 : i32, i32, i32
  }
  func.func @transform_1(%arg0: i32) -> (i32, i32) {
    %c0_i32 = arith.constant 0 : i32
    %c0_i32_0 = arith.constant 0 : i32
    %c0_i32_1 = arith.constant 0 : i32
    return %c0_i32, %c0_i32_0 : i32, i32
  }
  func.func @transform_2(%arg0: i32) -> (i32, i32, i32) {
    %c0_i32 = arith.constant 0 : i32
    %c0_i32_0 = arith.constant 0 : i32
    %c0_i32_1 = arith.constant 0 : i32
    %c0_i32_2 = arith.constant 0 : i32
    return %c0_i32, %c0_i32_0, %c0_i32_1 : i32, i32, i32
  }
  func.func @transform_3(%arg0: i32) -> (i32, i32, i32) {
    %c0_i32 = arith.constant 0 : i32
    %c0_i32_0 = arith.constant 0 : i32
    %c0_i32_1 = arith.constant 0 : i32
    %c0_i32_2 = arith.constant 0 : i32
    return %c0_i32, %c0_i32_0, %c0_i32_1 : i32, i32, i32
  }
  func.func @transform_4(%arg0: i32) -> (i32, i32, i32) {
    %c2_i32 = arith.constant 2 : i32
    %0 = arith.subi %c2_i32, %arg0 : i32
    %c0_i32 = arith.constant 0 : i32
    %c0_i32_0 = arith.constant 0 : i32
    %c0_i32_1 = arith.constant 0 : i32
    return %0, %c0_i32, %c0_i32_0 : i32, i32, i32
  }
}

</mosaic_0001>

<bundles_post_ra>
// kernel: _lambda_.9
= control target key start
LH: loop header
LB: loop body
LE: loop exit
PB: predicated region body
PF: predicated region fallthrough
CT: control target
= control target key end

     0   :  { %s593_s15 = smov 0   ;;  %s647_s0 = inlined_call_operand.vmem [shape: f32[9,2,32], index: 0, kind: input, shape index: {}]   ;;  %s648_s1 = inlined_call_operand.vmem [shape: bf16[32,128], index: 1, kind: input, shape index: {}]   ;;  %s649_s2 = inlined_call_operand.vmem [shape: bf16[1,32,128], index: 2, kind: input, shape index: {}]   ;;  %s650_s3 = inlined_call_operand.vmem [shape: f32[1,1,128], index: 3, kind: input, shape index: {}]   ;;  %s651_s4 = inlined_call_operand.vmem [shape: f32[9,2,32], index: 4, kind: output, shape index: {}]  }
   0x1 LB: > { %s471_s16 = sadd.s32 4294967295, %s556_s15   ;;  %p475_p0 = scmp.ge.s32.totalorder %s556_s15, 1  ;;  %s556_s15 = sphi %s593_s15, %s14_s15  }
   0x2   : > { %p169_p1 = scmp.lt.s32.totalorder %s556_s15, 4 }
   0x4   : > { %p170_p2 = pnand %p475_p0, %p169_p1 }
   0x5   : > { %s197_s17 = ssub.s32 (!%p170_p2), 2, %s471_s16  ;;  %p478_p4 = scmp.ne.s32.totalorder (!%p170_p2), %s471_s16, 0 }
   0x6   : > { %173 = sbr.rel (%p170_p2) target bundleno = 736 (0x2e0), region = 36 }
   0x7   : > { %s198_s18 = smul.u32 (!%p170_p2), 3, %s197_s17 }
   0x9   : > { %p199_p3 = scmp.lt.s32.totalorder (!%p170_p2), %s198_s18, 8 }
   0xd   : > { %s653_s18 = smov (!%p199_p3, %s198_s18), 8  ;;  %217 = sbr.rel (%p478_p4) target bundleno = 20 (0x14), region = 40 }
   0xe   : > { %s476_s19 = sshll.u32 %s653_s18, 1  ;;  %vm218_vm0 = vcmask (!%p478_p4), 254976   ;;  %v562_v0 = vmov (!%p478_p4), 0.0  }
   0xf   : > { %s604_s22 = scalar_lea.vmem %s647_s0, %s476_s19  ;;  %s609_s25 = scalar_lea.vmem %s651_s4, %s476_s19  ;;  %219 = vst.msk [vmem:[#allocation2] sm:$0x3] (!%p478_p4), %vm218_vm0, %v562_v0  ;;  %220 = vst.msk [vmem:[#allocation3] sm:$0x3] (!%p478_p4), %vm218_vm0, %v562_v0 }
  0x14 PF: > { %v614_v1 = vld [vmem:[%s650_s3] ss:$0 sm:$0xff]  ;;  %s616_s28 = smov 0  }
  0x15 LB: >> { %v534_v2 = vld [vmem:[%s649_s2] sm:$0xff]   ;;  %v563_v3 = vmov 0.0   ;;  %v536_v5 = vld [vmem:[%s649_s2 + $0x8] sm:$0xff]   ;;  %vm564_vm1 = vmmov 0   ;;  %s228_s11 = ssub.s32 2, %s560_s28  ;;  %vm255_vm2 = vcmask 261120   ;;  %s560_s28 = sphi %s616_s28, %s227_s28  }
  0x16   : >> { %496 = vmatprep.subr.bf16.mxu0 %v563_v3  ;;  %504 = vmatprep.subr.bf16.mxu1 %v563_v3  ;;  %v535_v4 = vld [vmem:[%s648_s1] sm:$0xff]   ;;  %v537_v6 = vld [vmem:[%s648_s1 + $0x8] sm:$0xff]   ;;  %s634_s12 = sshll.u32 %s228_s11, 1  ;;  %s565_s14 = smov 64   ;;  %vm394_vm3 = vcmask 254976  }
  0x17   : >> { %497 = vmatpush3.bf16.msra.mxu0 %v534_v2  ;;  %500 = vmatprep.mubr.msk.bf16.mxu0 %vm564_vm1, %v563_v3  ;;  %v237_v7 = vld [vmem:[#allocation2] sm:$0x3]  ;;  %s230_s13 = scalar_lea.vmem %s604_s22, %s634_s12  ;;  %v368_v22 = vld [vmem:[#allocation3] sm:$0x3]  ;;  %s566_s16 = smov 32  }
  0x18   : >> { %505 = vmatpush3.bf16.msra.mxu1 %v535_v4  ;;  %498 = vmatprep.subr.bf16.mxu0 %v563_v3  ;;  %v238_v8 = vpack.c.bf16 %v237_v7, %v237_v7  ;;  %v231_v9 = vld [vmem:[%s230_s13] sm:$0x3]  ;;  %s567_s17 = smov 96   ;;  %s401_s18 = scalar_lea.vmem %s609_s25, %s634_s12 }
  0x19   : >> { %506 = vmatprep.subr.bf16.mxu1 %v563_v3  ;;  %508 = vmatprep.mubr.msk.bf16.mxu1 %vm564_vm1, %v563_v3  ;;  %v232_v10 = vpack.c.bf16 %v231_v9, %v231_v9  ;;  %s227_s28 = sadd.s32 1, %s560_s28  }
  0x1a   : >> { %p224_p5 = scmp.ge.s32.totalorder %s227_s28, 3  }
  0x1b   : >> { %499 = vmatpush3.bf16.msra.mxu0 %v536_v5 }
  0x1c   : >> { %507 = vmatpush3.bf16.msra.mxu1 %v537_v6 }
  0x1e   : >> { %501 = vmatmul.mubr.msk.bf16.vlgmr.msra.gmra.mrb[0].mxu0 %vm255_vm2, %v238_v8 }
  0x1f   : >> { %509 = vmatmul.mubr.msk.bf16.vlgmr.msra.gmra.mrb[0].mxu1 %vm255_vm2, %v232_v10 }
  0xf1   : >> { %v293_v11 = vpop.f32.mrb[0].mxu0 }
  0xf2   : >> { %v348_v12 = vpop.f32.mrb[0].mxu1  ;;  %v502_v13 = vpop.f32.mrb[1].mxu0 }
  0xf3   : >> { %v349_v14 = vadd.f32 %v348_v12, %v293_v11  ;;  %v510_v15 = vpop.f32.mrb[1].mxu1  ;;  %v296_v16 = vpop.f32.mrb[2].mxu0 }
  0xf4   : >> { %v351_v17 = vpop.f32.mrb[2].mxu1  ;;  %v503_v18 = vpop.f32.mrb[3].mxu0 }
  0xf5   : >> { %v360_v19 = vadd.f32 %v614_v1, %v349_v14  ;;  %v511_v20 = vpop.f32.mrb[3].mxu1 }
  0xf7   : >> { %538 = vtanh.f32 %v360_v19  ;;  %v487_v23 = vmul.f32 -1.442695, %v360_v19 }
  0xf9   : >> { %540 = vpow2.f32 %v487_v23 }
 0x101   : >> { %v539_v21 = vpop.eup %538 }
 0x102   : >> { %375 = vrot.lane.b32.xlu0 %v539_v21, %s565_s14 }
 0x103   : >> { %v541_v24 = vpop.eup %540 }
 0x104   : >> { %v364_v25 = vadd.f32 1.0, %v541_v24 }
 0x106   : >> { %370 = vrot.lane.b32.xlu0 %v368_v22, %s566_s16  ;;  %542 = vrcp.f32 %v364_v25 }
 0x110   : >> { %v543_v26 = vpop.eup %542 }
 0x174   : >> { %v376_v27 = vpop.permute.xlu0 %375 }
 0x175   : >> { %v378_v28 = vmul.f32 %v543_v26, %v376_v27 }
 0x177   : >> { %380 = vrot.lane.b32.xlu1 %v378_v28, %s566_s16 }
 0x178   : >> { %v371_v29 = vpop.permute.xlu0 %370 }
 0x179   : >> { %v373_v30 = vmul.f32 %v543_v26, %v371_v29 }
 0x1e9   : >> { %v381_v31 = vpop.permute.xlu1 %380 }
 0x1ea   : >> { %v383_v32 = vadd.f32 %v381_v31, %v373_v30 }
 0x1ec   : >> { %544 = vtanh.f32 %v383_v32  ;;  %391 = vrot.lane.b32.xlu0 %v383_v32, %s567_s17 }
 0x1f6   : >> { %v545_v33 = vpop.eup %544 }
 0x1f7   : >> { %386 = vrot.lane.b32.xlu1 %v545_v33, %s565_s14 }
 0x25e   : >> { %v392_v34 = vpop.permute.xlu0 %391 }
 0x25f   : >> { %395 = vst.msk [vmem:[#allocation3] sm:$0x3] %vm394_vm3, %v392_v34 }
 0x269   : >> { %v387_v35 = vpop.permute.xlu1 %386 }
 0x26a   : >> { %v389_v36 = vmul.f32 %v543_v26, %v387_v35 }
 0x26c   : >> { %397 = vrot.lane.b32.xlu1 %v389_v36, %s566_s16 }
 0x2d9   : > { %226 = sbr.rel (!%p224_p5) target bundleno = 21 (0x15), region = 79 }
 0x2de   : >> { %v398_v37 = vpop.permute.xlu1 %397 }
 0x2df   : >> { %400 = vst.msk [vmem:[#allocation2] sm:$0x3] %vm394_vm3, %v398_v37  ;;  %402 = vst.msk [vmem:[%s401_s18] sm:$0x3] %vm394_vm3, %v398_v37 }
 0x2e0 PF: > { %s14_s15 = sadd.s32 1, %s556_s15  }
 0x2e1   : > { %p11_p6 = scmp.ge.s32.totalorder %s14_s15, 5  }
 0x2e3   :  { %13 = sbr.rel (!%p11_p6) target bundleno = 1 (0x1), region = 90 }

// kernel: _lambda_.8
= control target key start
LH: loop header
LB: loop body
LE: loop exit
PB: predicated region body
PF: predicated region fallthrough
CT: control target
= control target key end

     0   :  { %s577_s15 = smov 0   ;;  %s631_s0 = inlined_call_operand.vmem [shape: f32[9,2,32], index: 0, kind: input, shape index: {}]   ;;  %s632_s1 = inlined_call_operand.vmem [shape: bf16[32,128], index: 1, kind: input, shape index: {}]   ;;  %s633_s2 = inlined_call_operand.vmem [shape: bf16[1,32,128], index: 2, kind: input, shape index: {}]   ;;  %s634_s3 = inlined_call_operand.vmem [shape: f32[1,1,128], index: 3, kind: input, shape index: {}]   ;;  %s635_s4 = inlined_call_operand.vmem [shape: f32[9,2,32], index: 4, kind: output, shape index: {}]  }
   0x1 LB: > { %s455_s16 = sadd.s32 4294967295, %s540_s15   ;;  %p459_p0 = scmp.ge.s32.totalorder %s540_s15, 1  ;;  %s540_s15 = sphi %s577_s15, %s14_s15  }
   0x2   : > { %p163_p1 = scmp.lt.s32.totalorder %s540_s15, 4 }
   0x4   : > { %p164_p2 = pnand %p459_p0, %p163_p1 }
   0x5   : > { %s189_s17 = smul.u32 (!%p164_p2), 3, %s455_s16  ;;  %p462_p4 = scmp.ne.s32.totalorder (!%p164_p2), %s455_s16, 0 }
   0x6   : > { %167 = sbr.rel (%p164_p2) target bundleno = 736 (0x2e0), region = 36 }
   0x7   : > { %p190_p3 = scmp.lt.s32.totalorder (!%p164_p2), %s189_s17, 8 }
   0xd   : > { %s637_s17 = smov (!%p190_p3, %s189_s17), 8  ;;  %205 = sbr.rel (%p462_p4) target bundleno = 20 (0x14), region = 40 }
   0xe   : > { %s460_s18 = sshll.u32 %s637_s17, 1  ;;  %vm206_vm0 = vcmask (!%p462_p4), 254976   ;;  %v546_v0 = vmov (!%p462_p4), 0.0  }
   0xf   : > { %s588_s21 = scalar_lea.vmem %s631_s0, %s460_s18  ;;  %s593_s24 = scalar_lea.vmem %s635_s4, %s460_s18  ;;  %207 = vst.msk [vmem:[#allocation2] sm:$0x3] (!%p462_p4), %vm206_vm0, %v546_v0  ;;  %208 = vst.msk [vmem:[#allocation3] sm:$0x3] (!%p462_p4), %vm206_vm0, %v546_v0 }
  0x14 PF: > { %v598_v1 = vld [vmem:[%s634_s3] ss:$0 sm:$0xff]  ;;  %s600_s27 = smov 0  }
  0x15 LB: >> { %v518_v2 = vld [vmem:[%s633_s2] sm:$0xff]   ;;  %v547_v3 = vmov 0.0   ;;  %v520_v5 = vld [vmem:[%s633_s2 + $0x8] sm:$0xff]   ;;  %vm548_vm1 = vmmov 0   ;;  %s463_s10 = sshll.u32 %s544_s27, 1  ;;  %vm242_vm2 = vcmask 261120   ;;  %s544_s27 = sphi %s600_s27, %s215_s27  }
  0x16   : >> { %480 = vmatprep.subr.bf16.mxu0 %v547_v3  ;;  %488 = vmatprep.subr.bf16.mxu1 %v547_v3  ;;  %v519_v4 = vld [vmem:[%s632_s1] sm:$0xff]   ;;  %v521_v6 = vld [vmem:[%s632_s1 + $0x8] sm:$0xff]   ;;  %s217_s11 = scalar_lea.vmem %s588_s21, %s463_s10  ;;  %s549_s12 = smov 64   ;;  %vm381_vm3 = vcmask 254976  }
  0x17   : >> { %481 = vmatpush3.bf16.msra.mxu0 %v518_v2  ;;  %484 = vmatprep.mubr.msk.bf16.mxu0 %vm548_vm1, %v547_v3  ;;  %v224_v7 = vld [vmem:[#allocation2] sm:$0x3]  ;;  %v355_v22 = vld [vmem:[#allocation3] sm:$0x3]  ;;  %s550_s13 = smov 32   ;;  %s551_s14 = smov 96  }
  0x18   : >> { %489 = vmatpush3.bf16.msra.mxu1 %v519_v4  ;;  %482 = vmatprep.subr.bf16.mxu0 %v547_v3  ;;  %v225_v8 = vpack.c.bf16 %v224_v7, %v224_v7  ;;  %v218_v9 = vld [vmem:[%s217_s11] sm:$0x3]  ;;  %s388_s16 = scalar_lea.vmem %s593_s24, %s463_s10  ;;  %s215_s27 = sadd.s32 1, %s544_s27  }
  0x19   : >> { %490 = vmatprep.subr.bf16.mxu1 %v547_v3  ;;  %492 = vmatprep.mubr.msk.bf16.mxu1 %vm548_vm1, %v547_v3  ;;  %v219_v10 = vpack.c.bf16 %v218_v9, %v218_v9  ;;  %p212_p5 = scmp.ge.s32.totalorder %s215_s27, 3  }
  0x1b   : >> { %483 = vmatpush3.bf16.msra.mxu0 %v520_v5 }
  0x1c   : >> { %491 = vmatpush3.bf16.msra.mxu1 %v521_v6 }
  0x1e   : >> { %485 = vmatmul.mubr.msk.bf16.vlgmr.msra.gmra.mrb[0].mxu0 %vm242_vm2, %v225_v8 }
  0x1f   : >> { %493 = vmatmul.mubr.msk.bf16.vlgmr.msra.gmra.mrb[0].mxu1 %vm242_vm2, %v219_v10 }
  0xf1   : >> { %v280_v11 = vpop.f32.mrb[0].mxu0 }
  0xf2   : >> { %v335_v12 = vpop.f32.mrb[0].mxu1  ;;  %v486_v13 = vpop.f32.mrb[1].mxu0 }
  0xf3   : >> { %v336_v14 = vadd.f32 %v335_v12, %v280_v11  ;;  %v494_v15 = vpop.f32.mrb[1].mxu1  ;;  %v283_v16 = vpop.f32.mrb[2].mxu0 }
  0xf4   : >> { %v338_v17 = vpop.f32.mrb[2].mxu1  ;;  %v487_v18 = vpop.f32.mrb[3].mxu0 }
  0xf5   : >> { %v347_v19 = vadd.f32 %v598_v1, %v336_v14  ;;  %v495_v20 = vpop.f32.mrb[3].mxu1 }
  0xf7   : >> { %522 = vtanh.f32 %v347_v19  ;;  %v471_v23 = vmul.f32 -1.442695, %v347_v19 }
  0xf9   : >> { %524 = vpow2.f32 %v471_v23 }
 0x101   : >> { %v523_v21 = vpop.eup %522 }
 0x102   : >> { %362 = vrot.lane.b32.xlu0 %v523_v21, %s549_s12 }
 0x103   : >> { %v525_v24 = vpop.eup %524 }
 0x104   : >> { %v351_v25 = vadd.f32 1.0, %v525_v24 }
 0x106   : >> { %357 = vrot.lane.b32.xlu0 %v355_v22, %s550_s13  ;;  %526 = vrcp.f32 %v351_v25 }
 0x110   : >> { %v527_v26 = vpop.eup %526 }
 0x174   : >> { %v363_v27 = vpop.permute.xlu0 %362 }
 0x175   : >> { %v365_v28 = vmul.f32 %v527_v26, %v363_v27 }
 0x177   : >> { %367 = vrot.lane.b32.xlu1 %v365_v28, %s550_s13 }
 0x178   : >> { %v358_v29 = vpop.permute.xlu0 %357 }
 0x179   : >> { %v360_v30 = vmul.f32 %v527_v26, %v358_v29 }
 0x1e9   : >> { %v368_v31 = vpop.permute.xlu1 %367 }
 0x1ea   : >> { %v370_v32 = vadd.f32 %v368_v31, %v360_v30 }
 0x1ec   : >> { %528 = vtanh.f32 %v370_v32  ;;  %378 = vrot.lane.b32.xlu0 %v370_v32, %s551_s14 }
 0x1f6   : >> { %v529_v33 = vpop.eup %528 }
 0x1f7   : >> { %373 = vrot.lane.b32.xlu1 %v529_v33, %s549_s12 }
 0x25e   : >> { %v379_v34 = vpop.permute.xlu0 %378 }
 0x25f   : >> { %382 = vst.msk [vmem:[#allocation3] sm:$0x3] %vm381_vm3, %v379_v34 }
 0x269   : >> { %v374_v35 = vpop.permute.xlu1 %373 }
 0x26a   : >> { %v376_v36 = vmul.f32 %v527_v26, %v374_v35 }
 0x26c   : >> { %384 = vrot.lane.b32.xlu1 %v376_v36, %s550_s13 }
 0x2d9   : > { %214 = sbr.rel (!%p212_p5) target bundleno = 21 (0x15), region = 79 }
 0x2de   : >> { %v385_v37 = vpop.permute.xlu1 %384 }
 0x2df   : >> { %387 = vst.msk [vmem:[#allocation2] sm:$0x3] %vm381_vm3, %v385_v37  ;;  %389 = vst.msk [vmem:[%s388_s16] sm:$0x3] %vm381_vm3, %v385_v37 }
 0x2e0 PF: > { %s14_s15 = sadd.s32 1, %s540_s15  }
 0x2e1   : > { %p11_p6 = scmp.ge.s32.totalorder %s14_s15, 5  }
 0x2e3   :  { %13 = sbr.rel (!%p11_p6) target bundleno = 1 (0x1), region = 90 }

// kernel: _lambda_.6
= control target key start
LH: loop header
LB: loop body
LE: loop exit
PB: predicated region body
PF: predicated region fallthrough
CT: control target
= control target key end

     0   :  { %v803_v0 = vmov 0.0   ;;  %vm804_vm0 = vmmov 0   ;;  %vm46_vm1 = vcmask 261120   ;;  %vm647_vm2 = vcmask 130048   ;;  %s976_s1 = inlined_call_operand.vmem [shape: bf16[32,32], index: 1, kind: input, shape index: {}]   ;;  %s977_s0 = inlined_call_operand.vmem [shape: f32[16,32], index: 0, kind: input, shape index: {}]   ;;  %s978_s4 = inlined_call_operand.vmem [shape: bf16[4,32,32], index: 4, kind: input, shape index: {}]   ;;  %s979_s2 = inlined_call_operand.vmem [shape: f32[5,1,32], index: 2, kind: input, shape index: {}]   ;;  %s980_s3 = inlined_call_operand.vmem [shape: f32[5,1,32], index: 3, kind: input, shape index: {}]   ;;  %s981_s5 = inlined_call_operand.vmem [shape: bf16[32,16], index: 5, kind: input, shape index: {}]   ;;  %s982_s6 = inlined_call_operand.vmem [shape: f32[1,16], index: 6, kind: input, shape index: {}]   ;;  %s983_s7 = inlined_call_operand.vmem [shape: f32[16,16], index: 7, kind: output, shape index: {}]  }
   0x1   :  { %721 = vmatprep.subr.bf16.mxu0 %v803_v0  ;;  %v771_v1 = vld [vmem:[%s976_s1] sm:$0xff]   ;;  %725 = vmatprep.mubr.msk.bf16.mxu0 %vm804_vm0, %v803_v0  ;;  %v772_v2 = vld [vmem:[%s976_s1 + $0x8] sm:$0xff]   ;;  %v775_v61 = vld [vmem:[%s978_s4 + $0x10] sm:$0xff]  }
   0x2   :  { %729 = vmatprep.subr.bf16.mxu1 %v803_v0  ;;  %733 = vmatprep.mubr.msk.bf16.mxu1 %vm804_vm0, %v803_v0  ;;  %v27_v3 = vld [vmem:[%s977_s0] sm:$0xff]  ;;  %v28_v4 = vld [vmem:[%s977_s0 + $0x8] sm:$0xff]  ;;  %v776_v62 = vld [vmem:[%s978_s4 + $0x18] sm:$0xff]  }
   0x3   :  { %722 = vmatpush3.bf16.msra.mxu0 %v771_v1  ;;  %v29_v5 = vpack.c.bf16 %v28_v4, %v27_v3  ;;  %v773_v24 = vld [vmem:[%s978_s4] sm:$0xff]   ;;  %v774_v25 = vld [vmem:[%s978_s4 + $0x8] sm:$0xff]  }
   0x4   :  { %723 = vmatprep.subr.bf16.mxu0 %v803_v0  ;;  %730 = vmatpush3.bf16.msra.mxu1 %v773_v24  ;;  %v657_v33 = vld [vmem:[%s979_s2] ss:$0 sm:$0xff] }
   0x5   :  { %731 = vmatprep.subr.bf16.mxu1 %v803_v0  ;;  %v658_v37 = vld [vmem:[%s980_s3] ss:$0 sm:$0xff] }
   0x7   :  { %724 = vmatpush3.bf16.msra.mxu0 %v772_v2 }
   0x8   :  { %737 = vmatprep.subr.bf16.mxu0 %v803_v0  ;;  %732 = vmatpush3.bf16.msra.mxu1 %v774_v25 }
   0x9   :  { %745 = vmatprep.subr.bf16.mxu1 %v803_v0 }
   0xa   :  { %726 = vmatmul.mubr.msk.bf16.vlgmr.msra.gmra.mrb[0].mxu0 %vm46_vm1, %v29_v5 }
   0xb   :  { %741 = vmatprep.mubr.msk.bf16.mxu0 %vm804_vm0, %v803_v0  ;;  %738 = vmatpush3.bf16.msra.mxu0 %v775_v61 }
   0xc   :  { %739 = vmatprep.subr.bf16.mxu0 %v803_v0 }
   0xf   :  { %740 = vmatpush3.bf16.msra.mxu0 %v776_v62 }
  0x10   :  { %753 = vmatprep.subr.bf16.mxu0 %v803_v0 }
  0xdd   :  { %v84_v6 = vpop.f32.mrb[0].mxu0 }
  0xde   :  { %v91_v7 = vmax.f32 %v84_v6, 0.0  ;;  %v727_v8 = vpop.f32.mrb[1].mxu0 }
  0xdf   :  { %v87_v9 = vpop.f32.mrb[2].mxu0 }
  0xe0   :  { %v92_v10 = vmax.f32 %v87_v9, 0.0  ;;  %v728_v11 = vpop.f32.mrb[3].mxu0  ;;  %v93_v12 = vsel %vm46_vm1, %v91_v7, 0.0 }
  0xe1   :  { %94 = vadd.xlane.f32.xlu0 %v93_v12 }
  0xe2   :  { %v96_v13 = vsel %vm46_vm1, %v92_v10, 0.0 }
  0xe5   :  { %97 = vadd.xlane.f32.xlu0 %v96_v13 }
 0x16e   :  { %v95_v14 = vpop.xlane.xlu0 %94 }
 0x16f   :  { %v100_v15 = vmul.f32 0.03125, %v95_v14 }
 0x171   :  { %v102_v16 = vsub.f32 %v91_v7, %v100_v15  ;;  %v663_v7 = vld [vmem:[%s979_s2 + $0x1] ss:$0 sm:$0xff] }
 0x172   :  { %v98_v17 = vpop.xlane.xlu0 %97 }
 0x173   :  { %v101_v18 = vmul.f32 0.03125, %v98_v17  ;;  %v104_v19 = vmul.f32 %v102_v16, %v102_v16 }
 0x175   :  { %v103_v20 = vsub.f32 %v92_v10, %v101_v18  ;;  %v106_v21 = vsel %vm46_vm1, %v104_v19, 0.0  ;;  %v665_v10 = vld [vmem:[%s980_s3 + $0x1] ss:$0 sm:$0xff] }
 0x176   :  { %107 = vadd.xlane.f32.xlu1 %v106_v21 }
 0x177   :  { %v105_v22 = vmul.f32 %v103_v20, %v103_v20 }
 0x179   :  { %v109_v23 = vsel %vm46_vm1, %v105_v22, 0.0 }
 0x17a   :  { %110 = vadd.xlane.f32.xlu1 %v109_v23 }
 0x203   :  { %v108_v26 = vpop.xlane.xlu1 %107 }
 0x204   :  { %v112_v27 = vmul.f32 0.03125, %v108_v26 }
 0x206   :  { %v114_v28 = vadd.f32 1e-05, %v112_v27 }
 0x207   :  { %v111_v29 = vpop.xlane.xlu1 %110 }
 0x208   :  { %783 = vrsqrt.f32 %v114_v28  ;;  %v113_v30 = vmul.f32 0.03125, %v111_v29 }
 0x20a   :  { %v115_v31 = vadd.f32 1e-05, %v113_v30 }
 0x20c   :  { %785 = vrsqrt.f32 %v115_v31 }
 0x212   :  { %v784_v32 = vpop.eup %783 }
 0x213   :  { %v118_v34 = vmul.f32 %v784_v32, %v102_v16 }
 0x215   :  { %v127_v35 = vmul.f32 %v657_v33, %v118_v34 }
 0x216   :  { %v786_v36 = vpop.eup %785 }
 0x217   :  { %v119_v38 = vmul.f32 %v786_v36, %v103_v20  ;;  %v136_v40 = vadd.f32 %v658_v37, %v127_v35  ;;  %v777_v35 = vld [vmem:[%s978_s4 + $0x20] sm:$0xff]   ;;  %v778_v36 = vld [vmem:[%s978_s4 + $0x28] sm:$0xff]  }
 0x219   :  { %v128_v39 = vmul.f32 %v657_v33, %v119_v38  ;;  %v138_v42 = vmax.f32 %v136_v40, 0.0 }
 0x21b   :  { %v137_v41 = vadd.f32 %v658_v37, %v128_v39 }
 0x21d   :  { %v139_v43 = vmax.f32 %v137_v41, 0.0 }
 0x21f   :  { %v140_v44 = vpack.c.bf16 %v139_v43, %v138_v42 }
 0x221   :  { %734 = vmatmul.mubr.msk.bf16.vlgmr.msra.gmra.mrb[0].mxu1 %vm46_vm1, %v140_v44  ;;  %v674_v44 = vld [vmem:[%s979_s2 + $0x2] ss:$0 sm:$0xff] }
 0x222   :  { %749 = vmatprep.mubr.msk.bf16.mxu1 %vm804_vm0, %v803_v0  ;;  %746 = vmatpush3.bf16.msra.mxu1 %v777_v35 }
 0x223   :  { %747 = vmatprep.subr.bf16.mxu1 %v803_v0 }
 0x226   :  { %748 = vmatpush3.bf16.msra.mxu1 %v778_v36 }
 0x227   :  { %761 = vmatprep.subr.bf16.mxu1 %v803_v0 }
 0x2f4   :  { %v194_v45 = vpop.f32.mrb[0].mxu1 }
 0x2f5   :  { %v735_v46 = vpop.f32.mrb[1].mxu1  ;;  %v201_v47 = vsel %vm46_vm1, %v194_v45, 0.0 }
 0x2f6   :  { %202 = vadd.xlane.f32.xlu0 %v201_v47  ;;  %v197_v48 = vpop.f32.mrb[2].mxu1  ;;  %v676_v47 = vld [vmem:[%s980_s3 + $0x2] ss:$0 sm:$0xff] }
 0x2f7   :  { %v736_v49 = vpop.f32.mrb[3].mxu1  ;;  %v204_v50 = vsel %vm46_vm1, %v197_v48, 0.0 }
 0x2f8   :  { %205 = vadd.xlane.f32.xlu1 %v204_v50 }
 0x383   :  { %v203_v51 = vpop.xlane.xlu0 %202 }
 0x384   :  { %v207_v52 = vmul.f32 0.03125, %v203_v51 }
 0x385   :  { %v206_v53 = vpop.xlane.xlu1 %205 }
 0x386   :  { %v209_v54 = vsub.f32 %v194_v45, %v207_v52  ;;  %v208_v55 = vmul.f32 0.03125, %v206_v53 }
 0x388   :  { %v210_v56 = vsub.f32 %v197_v48, %v208_v55  ;;  %v211_v57 = vmul.f32 %v209_v54, %v209_v54 }
 0x38a   :  { %v213_v58 = vsel %vm46_vm1, %v211_v57, 0.0  ;;  %v212_v59 = vmul.f32 %v210_v56, %v210_v56 }
 0x38b   :  { %214 = vadd.xlane.f32.xlu0 %v213_v58 }
 0x38c   :  { %v216_v60 = vsel %vm46_vm1, %v212_v59, 0.0 }
 0x38d   :  { %217 = vadd.xlane.f32.xlu1 %v216_v60 }
 0x418   :  { %v215_v63 = vpop.xlane.xlu0 %214 }
 0x419   :  { %v219_v1 = vmul.f32 0.03125, %v215_v63 }
 0x41a   :  { %v218_v2 = vpop.xlane.xlu1 %217 }
 0x41b   :  { %v221_v3 = vadd.f32 1e-05, %v219_v1  ;;  %v220_v4 = vmul.f32 0.03125, %v218_v2 }
 0x41d   :  { %787 = vrsqrt.f32 %v221_v3  ;;  %v222_v5 = vadd.f32 1e-05, %v220_v4 }
 0x41f   :  { %789 = vrsqrt.f32 %v222_v5 }
 0x427   :  { %v788_v6 = vpop.eup %787 }
 0x428   :  { %v225_v8 = vmul.f32 %v788_v6, %v209_v54 }
 0x429   :  { %v790_v9 = vpop.eup %789 }
 0x42a   :  { %v235_v11 = vmul.f32 %v663_v7, %v225_v8  ;;  %v226_v12 = vmul.f32 %v790_v9, %v210_v56  ;;  %v779_v9 = vld [vmem:[%s978_s4 + $0x30] sm:$0xff]  }
 0x42c   :  { %v236_v13 = vmul.f32 %v663_v7, %v226_v12  ;;  %v245_v14 = vadd.f32 %v665_v10, %v235_v11 }
 0x42e   :  { %v246_v15 = vadd.f32 %v665_v10, %v236_v13  ;;  %v247_v16 = vmax.f32 %v245_v14, 0.0  ;;  %v780_v10 = vld [vmem:[%s978_s4 + $0x38] sm:$0xff]  }
 0x430   :  { %v248_v17 = vmax.f32 %v246_v15, 0.0 }
 0x432   :  { %v249_v18 = vpack.c.bf16 %v248_v17, %v247_v16 }
 0x434   :  { %742 = vmatmul.mubr.msk.bf16.vlgmr.msra.gmra.mrb[4].mxu0 %vm46_vm1, %v249_v18  ;;  %v685_v18 = vld [vmem:[%s979_s2 + $0x3] ss:$0 sm:$0xff] }
 0x435   :  { %757 = vmatprep.mubr.msk.bf16.mxu0 %vm804_vm0, %v803_v0  ;;  %754 = vmatpush3.bf16.msra.mxu0 %v779_v9 }
 0x436   :  { %755 = vmatprep.subr.bf16.mxu0 %v803_v0 }
 0x439   :  { %756 = vmatpush3.bf16.msra.mxu0 %v780_v10 }
 0x507   :  { %v304_v19 = vpop.f32.mrb[4].mxu0 }
 0x508   :  { %v743_v20 = vpop.f32.mrb[5].mxu0  ;;  %v311_v21 = vsel %vm46_vm1, %v304_v19, 0.0 }
 0x509   :  { %312 = vadd.xlane.f32.xlu0 %v311_v21  ;;  %v307_v22 = vpop.f32.mrb[6].mxu0  ;;  %v687_v21 = vld [vmem:[%s980_s3 + $0x3] ss:$0 sm:$0xff] }
 0x50a   :  { %v744_v23 = vpop.f32.mrb[7].mxu0  ;;  %v314_v24 = vsel %vm46_vm1, %v307_v22, 0.0 }
 0x50b   :  { %315 = vadd.xlane.f32.xlu1 %v314_v24 }
 0x596   :  { %v313_v25 = vpop.xlane.xlu0 %312 }
 0x597   :  { %v317_v26 = vmul.f32 0.03125, %v313_v25 }
 0x598   :  { %v316_v27 = vpop.xlane.xlu1 %315 }
 0x599   :  { %v319_v28 = vsub.f32 %v304_v19, %v317_v26  ;;  %v318_v29 = vmul.f32 0.03125, %v316_v27 }
 0x59b   :  { %v320_v30 = vsub.f32 %v307_v22, %v318_v29  ;;  %v321_v31 = vmul.f32 %v319_v28, %v319_v28 }
 0x59d   :  { %v323_v32 = vsel %vm46_vm1, %v321_v31, 0.0  ;;  %v322_v33 = vmul.f32 %v320_v30, %v320_v30 }
 0x59e   :  { %324 = vadd.xlane.f32.xlu0 %v323_v32 }
 0x59f   :  { %v326_v34 = vsel %vm46_vm1, %v322_v33, 0.0 }
 0x5a0   :  { %327 = vadd.xlane.f32.xlu1 %v326_v34 }
 0x62b   :  { %v325_v37 = vpop.xlane.xlu0 %324 }
 0x62c   :  { %v329_v38 = vmul.f32 0.03125, %v325_v37 }
 0x62d   :  { %v328_v39 = vpop.xlane.xlu1 %327 }
 0x62e   :  { %v331_v40 = vadd.f32 1e-05, %v329_v38  ;;  %v330_v41 = vmul.f32 0.03125, %v328_v39 }
 0x630   :  { %791 = vrsqrt.f32 %v331_v40  ;;  %v332_v42 = vadd.f32 1e-05, %v330_v41 }
 0x632   :  { %793 = vrsqrt.f32 %v332_v42 }
 0x63a   :  { %v792_v43 = vpop.eup %791 }
 0x63b   :  { %v335_v45 = vmul.f32 %v792_v43, %v319_v28 }
 0x63c   :  { %v794_v46 = vpop.eup %793 }
 0x63d   :  { %v345_v48 = vmul.f32 %v674_v44, %v335_v45  ;;  %v336_v49 = vmul.f32 %v794_v46, %v320_v30  ;;  %v781_v46 = vld [vmem:[%s981_s5] sm:$0xff]  }
 0x63f   :  { %v346_v50 = vmul.f32 %v674_v44, %v336_v49  ;;  %v355_v51 = vadd.f32 %v676_v47, %v345_v48 }
 0x641   :  { %v356_v52 = vadd.f32 %v676_v47, %v346_v50  ;;  %v357_v53 = vmax.f32 %v355_v51, 0.0  ;;  %v782_v47 = vld [vmem:[%s981_s5 + $0x8] sm:$0xff]  }
 0x643   :  { %v358_v54 = vmax.f32 %v356_v52, 0.0 }
 0x645   :  { %v359_v55 = vpack.c.bf16 %v358_v54, %v357_v53 }
 0x647   :  { %750 = vmatmul.mubr.msk.bf16.vlgmr.msra.gmra.mrb[4].mxu1 %vm46_vm1, %v359_v55  ;;  %v696_v55 = vld [vmem:[%s979_s2 + $0x4] ss:$0 sm:$0xff] }
 0x648   :  { %765 = vmatprep.mubr.msk.bf16.mxu1 %vm804_vm0, %v803_v0  ;;  %762 = vmatpush3.bf16.msra.mxu1 %v781_v46 }
 0x649   :  { %763 = vmatprep.subr.bf16.mxu1 %v803_v0  ;;  %v698_v0 = vld [vmem:[%s980_s3 + $0x4] ss:$0 sm:$0xff] }
 0x64c   :  { %764 = vmatpush3.bf16.msra.mxu1 %v782_v47 }
 0x71a   :  { %v414_v56 = vpop.f32.mrb[4].mxu1 }
 0x71b   :  { %v751_v57 = vpop.f32.mrb[5].mxu1  ;;  %v421_v58 = vsel %vm46_vm1, %v414_v56, 0.0 }
 0x71c   :  { %422 = vadd.xlane.f32.xlu0 %v421_v58  ;;  %v417_v59 = vpop.f32.mrb[6].mxu1 }
 0x71d   :  { %v752_v60 = vpop.f32.mrb[7].mxu1  ;;  %v424_v61 = vsel %vm46_vm1, %v417_v59, 0.0 }
 0x71e   :  { %425 = vadd.xlane.f32.xlu1 %v424_v61 }
 0x7a9   :  { %v423_v62 = vpop.xlane.xlu0 %422 }
 0x7aa   :  { %v427_v63 = vmul.f32 0.03125, %v423_v62 }
 0x7ab   :  { %v426_v1 = vpop.xlane.xlu1 %425 }
 0x7ac   :  { %v429_v2 = vsub.f32 %v414_v56, %v427_v63  ;;  %v428_v3 = vmul.f32 0.03125, %v426_v1 }
 0x7ae   :  { %v430_v4 = vsub.f32 %v417_v59, %v428_v3  ;;  %v431_v5 = vmul.f32 %v429_v2, %v429_v2  ;;  %v699_v3 = vld [vmem:[%s982_s6] ss:$0 sm:$0xff] }
 0x7b0   :  { %v433_v6 = vsel %vm46_vm1, %v431_v5, 0.0  ;;  %v432_v7 = vmul.f32 %v430_v4, %v430_v4 }
 0x7b1   :  { %434 = vadd.xlane.f32.xlu0 %v433_v6 }
 0x7b2   :  { %v436_v8 = vsel %vm46_vm1, %v432_v7, 0.0 }
 0x7b3   :  { %437 = vadd.xlane.f32.xlu1 %v436_v8 }
 0x83e   :  { %v435_v11 = vpop.xlane.xlu0 %434 }
 0x83f   :  { %v439_v12 = vmul.f32 0.03125, %v435_v11 }
 0x840   :  { %v438_v13 = vpop.xlane.xlu1 %437 }
 0x841   :  { %v441_v14 = vadd.f32 1e-05, %v439_v12  ;;  %v440_v15 = vmul.f32 0.03125, %v438_v13 }
 0x843   :  { %795 = vrsqrt.f32 %v441_v14  ;;  %v442_v16 = vadd.f32 1e-05, %v440_v15 }
 0x845   :  { %797 = vrsqrt.f32 %v442_v16 }
 0x84d   :  { %v796_v17 = vpop.eup %795 }
 0x84e   :  { %v445_v19 = vmul.f32 %v796_v17, %v429_v2 }
 0x84f   :  { %v798_v20 = vpop.eup %797 }
 0x850   :  { %v455_v22 = vmul.f32 %v685_v18, %v445_v19  ;;  %v446_v23 = vmul.f32 %v798_v20, %v430_v4 }
 0x852   :  { %v456_v24 = vmul.f32 %v685_v18, %v446_v23  ;;  %v465_v25 = vadd.f32 %v687_v21, %v455_v22 }
 0x854   :  { %v466_v26 = vadd.f32 %v687_v21, %v456_v24  ;;  %v467_v27 = vmax.f32 %v465_v25, 0.0 }
 0x856   :  { %v468_v28 = vmax.f32 %v466_v26, 0.0 }
 0x858   :  { %v469_v29 = vpack.c.bf16 %v468_v28, %v467_v27 }
 0x85a   :  { %758 = vmatmul.mubr.msk.bf16.vlgmr.msra.gmra.mrb[8].mxu0 %vm46_vm1, %v469_v29 }
 0x92d   :  { %v524_v30 = vpop.f32.mrb[8].mxu0 }
 0x92e   :  { %v759_v31 = vpop.f32.mrb[9].mxu0  ;;  %v531_v32 = vsel %vm46_vm1, %v524_v30, 0.0 }
 0x92f   :  { %532 = vadd.xlane.f32.xlu0 %v531_v32  ;;  %v527_v33 = vpop.f32.mrb[10].mxu0 }
 0x930   :  { %v760_v34 = vpop.f32.mrb[11].mxu0  ;;  %v534_v35 = vsel %vm46_vm1, %v527_v33, 0.0 }
 0x931   :  { %535 = vadd.xlane.f32.xlu1 %v534_v35 }
 0x9bc   :  { %v533_v36 = vpop.xlane.xlu0 %532 }
 0x9bd   :  { %v537_v37 = vmul.f32 0.03125, %v533_v36 }
 0x9be   :  { %v536_v38 = vpop.xlane.xlu1 %535 }
 0x9bf   :  { %v539_v39 = vsub.f32 %v524_v30, %v537_v37  ;;  %v538_v40 = vmul.f32 0.03125, %v536_v38 }
 0x9c1   :  { %v540_v41 = vsub.f32 %v527_v33, %v538_v40  ;;  %v541_v42 = vmul.f32 %v539_v39, %v539_v39 }
 0x9c3   :  { %v543_v43 = vsel %vm46_vm1, %v541_v42, 0.0  ;;  %v542_v44 = vmul.f32 %v540_v41, %v540_v41 }
 0x9c4   :  { %544 = vadd.xlane.f32.xlu0 %v543_v43 }
 0x9c5   :  { %v546_v45 = vsel %vm46_vm1, %v542_v44, 0.0 }
 0x9c6   :  { %547 = vadd.xlane.f32.xlu1 %v546_v45 }
 0xa51   :  { %v545_v48 = vpop.xlane.xlu0 %544 }
 0xa52   :  { %v549_v49 = vmul.f32 0.03125, %v545_v48 }
 0xa53   :  { %v548_v50 = vpop.xlane.xlu1 %547 }
 0xa54   :  { %v551_v51 = vadd.f32 1e-05, %v549_v49  ;;  %v550_v52 = vmul.f32 0.03125, %v548_v50 }
 0xa56   :  { %799 = vrsqrt.f32 %v551_v51  ;;  %v552_v53 = vadd.f32 1e-05, %v550_v52 }
 0xa58   :  { %801 = vrsqrt.f32 %v552_v53 }
 0xa60   :  { %v800_v54 = vpop.eup %799 }
 0xa61   :  { %v555_v56 = vmul.f32 %v800_v54, %v539_v39 }
 0xa62   :  { %v802_v57 = vpop.eup %801 }
 0xa63   :  { %v565_v58 = vmul.f32 %v696_v55, %v555_v56  ;;  %v556_v59 = vmul.f32 %v802_v57, %v540_v41 }
 0xa65   :  { %v566_v60 = vmul.f32 %v696_v55, %v556_v59  ;;  %v575_v61 = vadd.f32 %v698_v0, %v565_v58 }
 0xa67   :  { %v576_v62 = vadd.f32 %v698_v0, %v566_v60  ;;  %v577_v63 = vmax.f32 %v575_v61, 0.0 }
 0xa69   :  { %v578_v1 = vmax.f32 %v576_v62, 0.0 }
 0xa6b   :  { %v579_v2 = vpack.c.bf16 %v578_v1, %v577_v63 }
 0xa6d   :  { %766 = vmatmul.mubr.msk.bf16.vlgmr.msra.gmra.mrb[8].mxu1 %vm46_vm1, %v579_v2 }
 0xb40   :  { %v640_v4 = vpop.f32.mrb[8].mxu1 }
 0xb41   :  { %v641_v5 = vadd.f32 %v699_v3, %v640_v4  ;;  %v767_v6 = vpop.f32.mrb[9].mxu1 }
 0xb42   :  { %v643_v7 = vpop.f32.mrb[10].mxu1 }
 0xb43   :  { %648 = vst.msk [vmem:[%s983_s7] sm:$0xff] %vm647_vm2, %v641_v5  ;;  %v644_v8 = vadd.f32 %v699_v3, %v643_v7  ;;  %v768_v9 = vpop.f32.mrb[11].mxu1 }
 0xb45   :  { %649 = vst.msk [vmem:[%s983_s7 + $0x8] sm:$0xff] %vm647_vm2, %v644_v8 }

// kernel: _lambda_.7
= control target key start
LH: loop header
LB: loop body
LE: loop exit
PB: predicated region body
PF: predicated region fallthrough
CT: control target
= control target key end

     0   :  { %s1411_s18 = smov 0   ;;  %s1574_s0 = inlined_call_operand.vmem [shape: f32[9,2,16], index: 0, kind: input, shape index: {}]   ;;  %s1575_s1 = inlined_call_operand.vmem [shape: bf16[16,128], index: 1, kind: input, shape index: {}]   ;;  %s1576_s2 = inlined_call_operand.vmem [shape: bf16[3,32,128], index: 2, kind: input, shape index: {}]   ;;  %s1577_s3 = inlined_call_operand.vmem [shape: bf16[4,32,128], index: 3, kind: input, shape index: {}]   ;;  %s1578_s4 = inlined_call_operand.vmem [shape: f32[4,1,128], index: 4, kind: input, shape index: {}]   ;;  %s1579_s5 = inlined_call_operand.vmem [shape: f32[9,2,32], index: 5, kind: output, shape index: {}]  }
   0x1 LB: > { %s1059_s19 = sadd.s32 4294967295, %s1342_s18   ;;  %p1063_p0 = scmp.ge.s32.totalorder %s1342_s18, 1  ;;  %s1342_s18 = sphi %s1411_s18, %s15_s18  }
   0x2   : > { %p188_p1 = scmp.lt.s32.totalorder %s1342_s18, 4 }
   0x4   : > { %p189_p2 = pnand %p1063_p0, %p188_p1 }
   0x5   : > { %s216_s20 = smul.u32 (!%p189_p2), 3, %s1059_s19  ;;  %p1066_p4 = scmp.ne.s32.totalorder (!%p189_p2), %s1059_s19, 0 }
   0x6   : > { %192 = sbr.rel (%p189_p2) target bundleno = 2880 (0xb40), region = 40 }
   0x7   : > { %p217_p3 = scmp.lt.s32.totalorder (!%p189_p2), %s216_s20, 8 }
   0xd   : > { %s1581_s20 = smov (!%p217_p3, %s216_s20), 8  ;;  %232 = sbr.rel (%p1066_p4) target bundleno = 20 (0x14), region = 44 }
   0xe   : > { %s1064_s21 = sshll.u32 %s1581_s20, 1  ;;  %vm233_vm0 = vcmask (!%p1066_p4), 254976   ;;  %v1360_v0 = vmov (!%p1066_p4), 0.0  }
   0xf   : > { %s1422_s24 = scalar_lea.vmem %s1574_s0, %s1064_s21  ;;  %s1427_s27 = scalar_lea.vmem %s1579_s5, %s1064_s21  ;;  %234 = vst.msk [vmem:[#allocation2] sm:$0x3] (!%p1066_p4), %vm233_vm0, %v1360_v0  ;;  %235 = vst.msk [vmem:[#allocation2 + $0x2] sm:$0x3] (!%p1066_p4), %vm233_vm0, %v1360_v0 }
  0x10   : > { %236 = vst.msk [vmem:[#allocation2 + $0x4] sm:$0x3] (!%p1066_p4), %vm233_vm0, %v1360_v0  ;;  %237 = vst.msk [vmem:[#allocation2 + $0x6] sm:$0x3] (!%p1066_p4), %vm233_vm0, %v1360_v0 }
  0x11   : > { %238 = vst.msk [vmem:[#allocation3] sm:$0x3] (!%p1066_p4), %vm233_vm0, %v1360_v0  ;;  %239 = vst.msk [vmem:[#allocation3 + $0x2] sm:$0x3] (!%p1066_p4), %vm233_vm0, %v1360_v0 }
  0x12   : > { %240 = vst.msk [vmem:[#allocation3 + $0x4] sm:$0x3] (!%p1066_p4), %vm233_vm0, %v1360_v0  ;;  %241 = vst.msk [vmem:[#allocation3 + $0x6] sm:$0x3] (!%p1066_p4), %vm233_vm0, %v1360_v0 }
  0x14 PF: > { %v1432_v1 = vld [vmem:[%s1578_s4] ss:$0 sm:$0xff]  ;;  %s1434_s30 = smov 0  }
  0x15 LB: >> { %v1273_v2 = vld [vmem:[%s1577_s3] sm:$0xff]   ;;  %v1361_v3 = vmov 0.0   ;;  %vm1362_vm1 = vmmov 0   ;;  %v1275_v5 = vld [vmem:[%s1577_s3 + $0x8] sm:$0xff]   ;;  %s1067_s12 = sshll.u32 %s1346_s30, 1  ;;  %vm323_vm2 = vcmask 130048   ;;  %s1346_s30 = sphi %s1434_s30, %s248_s30  }
  0x16   : >> { %1150 = vmatprep.subr.bf16.mxu0 %v1361_v3  ;;  %1158 = vmatprep.subr.bf16.mxu1 %v1361_v3  ;;  %v1274_v4 = vld [vmem:[%s1575_s1] sm:$0xff]   ;;  %s250_s13 = scalar_lea.vmem %s1422_s24, %s1067_s12  ;;  %vm273_vm3 = vcmask 261120   ;;  %s1363_s14 = smov 64   ;;  %vm407_vm4 = vcmask 254976  }
  0x17   : >> { %1151 = vmatpush3.bf16.msra.mxu0 %v1273_v2  ;;  %1160 = vmatprep.mubr.msk.bf16.mxu1 %vm1362_vm1, %v1361_v3  ;;  %v255_v6 = vld [vmem:[#allocation2] sm:$0x3]  ;;  %s1364_s15 = smov 32   ;;  %s1365_s16 = smov 96  }
  0x18   : >> { %1159 = vmatpush3.bf16.msra.mxu1 %v1274_v4  ;;  %1152 = vmatprep.subr.bf16.mxu0 %v1361_v3  ;;  %v251_v7 = vld [vmem:[%s250_s13] sm:$0x3]  ;;  %v256_v9 = vpack.c.bf16 %v255_v6, %v255_v6  ;;  %v381_v21 = vld [vmem:[#allocation3] sm:$0x3]  ;;  %s414_s17 = scalar_lea.vmem [#allocation4], %s1067_s12  ;;  %s248_s30 = sadd.s32 1, %s1346_s30  }
  0x19   : >> { %1154 = vmatprep.mubr.msk.bf16.mxu0 %vm1362_vm1, %v1361_v3  ;;  %v252_v8 = vpack.c.bf16 %v251_v7, %v251_v7  ;;  %p245_p5 = scmp.ge.s32.totalorder %s248_s30, 3  }
  0x1a   : > { %v1465_v37 = vld [vmem:[%s1578_s4 + $0x1] ss:$0 sm:$0xff] (%p245_p5)  ;;  %s1467_s21 = smov (%p245_p5), 0  }
  0x1b   : >> { %1153 = vmatpush3.bf16.msra.mxu0 %v1275_v5  ;;  %1161 = vmatmul.mubr.msk.bf16.vlgmr.msra.gmra.mrb[0].mxu1 %vm323_vm2, %v252_v8 }
  0x1e   : >> { %1155 = vmatmul.mubr.msk.bf16.vlgmr.msra.gmra.mrb[0].mxu0 %vm273_vm3, %v256_v9 }
  0xee   : >> { %v361_v10 = vpop.f32.mrb[0].mxu1 }
  0xef   : >> { %v1162_v11 = vpop.f32.mrb[1].mxu1 }
  0xf0   : >> { %v364_v12 = vpop.f32.mrb[2].mxu1 }
  0xf1   : >> { %v311_v13 = vpop.f32.mrb[0].mxu0  ;;  %v1163_v15 = vpop.f32.mrb[3].mxu1 }
  0xf2   : >> { %v362_v14 = vadd.f32 %v361_v10, %v311_v13  ;;  %v1156_v16 = vpop.f32.mrb[1].mxu0 }
  0xf3   : >> { %v314_v17 = vpop.f32.mrb[2].mxu0 }
  0xf4   : >> { %v373_v18 = vadd.f32 %v1432_v1, %v362_v14  ;;  %v1157_v19 = vpop.f32.mrb[3].mxu0 }
  0xf6   : >> { %1276 = vtanh.f32 %v373_v18  ;;  %v1074_v22 = vmul.f32 -1.442695, %v373_v18 }
  0xf8   : >> { %1278 = vpow2.f32 %v1074_v22 }
 0x100   : >> { %v1277_v20 = vpop.eup %1276 }
 0x101   : >> { %388 = vrot.lane.b32.xlu0 %v1277_v20, %s1363_s14 }
 0x102   : >> { %v1279_v23 = vpop.eup %1278 }
 0x103   : >> { %v377_v24 = vadd.f32 1.0, %v1279_v23 }
 0x105   : >> { %383 = vrot.lane.b32.xlu0 %v381_v21, %s1364_s15  ;;  %1280 = vrcp.f32 %v377_v24 }
 0x10f   : >> { %v1281_v25 = vpop.eup %1280 }
 0x173   : >> { %v389_v26 = vpop.permute.xlu0 %388 }
 0x174   : >> { %v391_v27 = vmul.f32 %v1281_v25, %v389_v26 }
 0x176   : >> { %393 = vrot.lane.b32.xlu1 %v391_v27, %s1364_s15 }
 0x177   : >> { %v384_v28 = vpop.permute.xlu0 %383 }
 0x178   : >> { %v386_v29 = vmul.f32 %v1281_v25, %v384_v28 }
 0x1e8   : >> { %v394_v30 = vpop.permute.xlu1 %393 }
 0x1e9   : >> { %v396_v31 = vadd.f32 %v394_v30, %v386_v29 }
 0x1eb   : >> { %1282 = vtanh.f32 %v396_v31  ;;  %404 = vrot.lane.b32.xlu0 %v396_v31, %s1365_s16 }
 0x1f5   : >> { %v1283_v32 = vpop.eup %1282 }
 0x1f6   : >> { %399 = vrot.lane.b32.xlu1 %v1283_v32, %s1363_s14 }
 0x25d   : >> { %v405_v33 = vpop.permute.xlu0 %404 }
 0x25e   : >> { %408 = vst.msk [vmem:[#allocation3] sm:$0x3] %vm407_vm4, %v405_v33 }
 0x268   : >> { %v400_v34 = vpop.permute.xlu1 %399 }
 0x269   : >> { %v402_v35 = vmul.f32 %v1281_v25, %v400_v34 }
 0x26b   : >> { %410 = vrot.lane.b32.xlu1 %v402_v35, %s1364_s15 }
 0x2d8   : > { %247 = sbr.rel (!%p245_p5) target bundleno = 21 (0x15), region = 122 }
 0x2dd   : >> { %v411_v36 = vpop.permute.xlu1 %410 }
 0x2de   : >> { %413 = vst.msk [vmem:[#allocation2] sm:$0x3] %vm407_vm4, %v411_v36  ;;  %415 = vst.msk [vmem:[%s414_s17] sm:$0x3] %vm407_vm4, %v411_v36 }
 0x2df LB: >> { %v1284_v38 = vld [vmem:[%s1577_s3 + $0x10] sm:$0xff]   ;;  %v1366_v39 = vmov 0.0   ;;  %v1285_v40 = vld [vmem:[%s1576_s2] sm:$0xff]   ;;  %v1286_v41 = vld [vmem:[%s1577_s3 + $0x18] sm:$0xff]   ;;  %vm1367_vm5 = vmmov 0   ;;  %s1076_s29 = sshll.u32 %s1350_s21, 1  ;;  %s1350_s21 = sphi %s1467_s21, %s423_s21  }
 0x2e0   : >> { %1164 = vmatprep.subr.bf16.mxu0 %v1366_v39  ;;  %1172 = vmatprep.subr.bf16.mxu1 %v1366_v39  ;;  %v1287_v42 = vld [vmem:[%s1576_s2 + $0x8] sm:$0xff]   ;;  %v433_v43 = vld [vmem:[#allocation2 + $0x2] sm:$0x3]  ;;  %s1485_s7 = scalar_lea.vmem [#allocation4], %s1076_s29  ;;  %s1368_s8 = smov 64  }
 0x2e1   : >> { %1165 = vmatpush3.bf16.msra.mxu0 %v1284_v38  ;;  %1168 = vmatprep.mubr.msk.bf16.mxu0 %vm1367_vm5, %v1366_v39  ;;  %v434_v45 = vpack.c.bf16 %v433_v43, %v433_v43  ;;  %v566_v58 = vld [vmem:[#allocation3 + $0x2] sm:$0x3]  ;;  %s1369_s9 = smov 32   ;;  %s1370_s10 = smov 96  }
 0x2e2   : >> { %1173 = vmatpush3.bf16.msra.mxu1 %v1285_v40  ;;  %1166 = vmatprep.subr.bf16.mxu0 %v1366_v39  ;;  %s423_s21 = sadd.s32 1, %s1350_s21  }
 0x2e3   : >> { %1174 = vmatprep.subr.bf16.mxu1 %v1366_v39  ;;  %1176 = vmatprep.mubr.msk.bf16.mxu1 %vm1367_vm5, %v1366_v39  ;;  %p420_p6 = scmp.ge.s32.totalorder %s423_s21, 3  }
 0x2e4   : > { %v1501_v10 = vld [vmem:[%s1578_s4 + $0x2] ss:$0 sm:$0xff] (%p420_p6)  ;;  %s1503_s13 = smov (%p420_p6), 0  }
 0x2e5   : >> { %v426_v44 = vld [vmem:[%s1485_s7] sm:$0x3]  ;;  %1167 = vmatpush3.bf16.msra.mxu0 %v1286_v41 }
 0x2e6   : >> { %v427_v46 = vpack.c.bf16 %v426_v44, %v426_v44  ;;  %1175 = vmatpush3.bf16.msra.mxu1 %v1287_v42 }
 0x2e8   : >> { %1169 = vmatmul.mubr.msk.bf16.vlgmr.msra.gmra.mrb[0].mxu0 %vm273_vm3, %v434_v45 }
 0x2e9   : >> { %1177 = vmatmul.mubr.msk.bf16.vlgmr.msra.gmra.mrb[0].mxu1 %vm273_vm3, %v427_v46 }
 0x3bb   : >> { %v490_v47 = vpop.f32.mrb[0].mxu0 }
 0x3bc   : >> { %v545_v48 = vpop.f32.mrb[0].mxu1  ;;  %v1170_v49 = vpop.f32.mrb[1].mxu0 }
 0x3bd   : >> { %v546_v50 = vadd.f32 %v545_v48, %v490_v47  ;;  %v1178_v51 = vpop.f32.mrb[1].mxu1  ;;  %v493_v52 = vpop.f32.mrb[2].mxu0 }
 0x3be   : >> { %v548_v53 = vpop.f32.mrb[2].mxu1  ;;  %v1171_v54 = vpop.f32.mrb[3].mxu0 }
 0x3bf   : >> { %v557_v55 = vadd.f32 %v1465_v37, %v546_v50  ;;  %v1179_v56 = vpop.f32.mrb[3].mxu1 }
 0x3c1   : >> { %1288 = vtanh.f32 %v557_v55  ;;  %v1088_v59 = vmul.f32 -1.442695, %v557_v55 }
 0x3c3   : >> { %1290 = vpow2.f32 %v1088_v59 }
 0x3cb   : >> { %v1289_v57 = vpop.eup %1288 }
 0x3cc   : >> { %573 = vrot.lane.b32.xlu0 %v1289_v57, %s1368_s8 }
 0x3cd   : >> { %v1291_v60 = vpop.eup %1290 }
 0x3ce   : >> { %v561_v61 = vadd.f32 1.0, %v1291_v60 }
 0x3d0   : >> { %568 = vrot.lane.b32.xlu0 %v566_v58, %s1369_s9  ;;  %1292 = vrcp.f32 %v561_v61 }
 0x3da   : >> { %v1293_v62 = vpop.eup %1292 }
 0x43e   : >> { %v574_v63 = vpop.permute.xlu0 %573 }
 0x43f   : >> { %v576_v0 = vmul.f32 %v1293_v62, %v574_v63 }
 0x441   : >> { %578 = vrot.lane.b32.xlu1 %v576_v0, %s1369_s9 }
 0x442   : >> { %v569_v1 = vpop.permute.xlu0 %568 }
 0x443   : >> { %v571_v2 = vmul.f32 %v1293_v62, %v569_v1 }
 0x4b3   : >> { %v579_v3 = vpop.permute.xlu1 %578 }
 0x4b4   : >> { %v581_v4 = vadd.f32 %v579_v3, %v571_v2 }
 0x4b6   : >> { %1294 = vtanh.f32 %v581_v4  ;;  %589 = vrot.lane.b32.xlu0 %v581_v4, %s1370_s10 }
 0x4c0   : >> { %v1295_v5 = vpop.eup %1294 }
 0x4c1   : >> { %584 = vrot.lane.b32.xlu1 %v1295_v5, %s1368_s8 }
 0x528   : >> { %v590_v6 = vpop.permute.xlu0 %589 }
 0x529   : >> { %593 = vst.msk [vmem:[#allocation3 + $0x2] sm:$0x3] %vm407_vm4, %v590_v6 }
 0x533   : >> { %v585_v7 = vpop.permute.xlu1 %584 }
 0x534   : >> { %v587_v8 = vmul.f32 %v1293_v62, %v585_v7 }
 0x536   : >> { %595 = vrot.lane.b32.xlu1 %v587_v8, %s1369_s9 }
 0x5a3   : > { %422 = sbr.rel (!%p420_p6) target bundleno = 735 (0x2df), region = 133 }
 0x5a8   : >> { %v596_v9 = vpop.permute.xlu1 %595 }
 0x5a9   : >> { %598 = vst.msk [vmem:[#allocation2 + $0x2] sm:$0x3] %vm407_vm4, %v596_v9  ;;  %599 = vst.msk [vmem:[%s1485_s7] sm:$0x3] %vm407_vm4, %v596_v9 }
 0x5aa LB: >> { %v1296_v11 = vld [vmem:[%s1577_s3 + $0x20] sm:$0xff]   ;;  %v1371_v12 = vmov 0.0   ;;  %v1297_v13 = vld [vmem:[%s1576_s2 + $0x10] sm:$0xff]   ;;  %v1298_v14 = vld [vmem:[%s1577_s3 + $0x28] sm:$0xff]   ;;  %vm1372_vm6 = vmmov 0   ;;  %s1090_s21 = sshll.u32 %s1354_s13, 1  ;;  %s1354_s13 = sphi %s1503_s13, %s607_s13  }
 0x5ab   : >> { %1180 = vmatprep.subr.bf16.mxu0 %v1371_v12  ;;  %1188 = vmatprep.subr.bf16.mxu1 %v1371_v12  ;;  %v1299_v15 = vld [vmem:[%s1576_s2 + $0x18] sm:$0xff]   ;;  %v618_v16 = vld [vmem:[#allocation2 + $0x4] sm:$0x3]  ;;  %s1521_s24 = scalar_lea.vmem [#allocation4], %s1090_s21  ;;  %s1373_s25 = smov 64  }
 0x5ac   : >> { %1181 = vmatpush3.bf16.msra.mxu0 %v1296_v11  ;;  %1184 = vmatprep.mubr.msk.bf16.mxu0 %vm1372_vm6, %v1371_v12  ;;  %v619_v18 = vpack.c.bf16 %v618_v16, %v618_v16  ;;  %v751_v31 = vld [vmem:[#allocation3 + $0x4] sm:$0x3]  ;;  %s1374_s26 = smov 32   ;;  %s1375_s28 = smov 96  }
 0x5ad   : >> { %1189 = vmatpush3.bf16.msra.mxu1 %v1297_v13  ;;  %1182 = vmatprep.subr.bf16.mxu0 %v1371_v12  ;;  %s607_s13 = sadd.s32 1, %s1354_s13  }
 0x5ae   : >> { %1190 = vmatprep.subr.bf16.mxu1 %v1371_v12  ;;  %1192 = vmatprep.mubr.msk.bf16.mxu1 %vm1372_vm6, %v1371_v12  ;;  %p604_p7 = scmp.ge.s32.totalorder %s607_s13, 3  }
 0x5af   : > { %v1537_v47 = vld [vmem:[%s1578_s4 + $0x3] ss:$0 sm:$0xff] (%p604_p7)  ;;  %s1539_s6 = smov (%p604_p7), 0  }
 0x5b0   : >> { %v610_v17 = vld [vmem:[%s1521_s24] sm:$0x3]  ;;  %1183 = vmatpush3.bf16.msra.mxu0 %v1298_v14 }
 0x5b1   : >> { %v611_v19 = vpack.c.bf16 %v610_v17, %v610_v17  ;;  %1191 = vmatpush3.bf16.msra.mxu1 %v1299_v15 }
 0x5b3   : >> { %1185 = vmatmul.mubr.msk.bf16.vlgmr.msra.gmra.mrb[0].mxu0 %vm273_vm3, %v619_v18 }
 0x5b4   : >> { %1193 = vmatmul.mubr.msk.bf16.vlgmr.msra.gmra.mrb[0].mxu1 %vm273_vm3, %v611_v19 }
 0x686   : >> { %v675_v20 = vpop.f32.mrb[0].mxu0 }
 0x687   : >> { %v730_v21 = vpop.f32.mrb[0].mxu1  ;;  %v1186_v22 = vpop.f32.mrb[1].mxu0 }
 0x688   : >> { %v731_v23 = vadd.f32 %v730_v21, %v675_v20  ;;  %v1194_v24 = vpop.f32.mrb[1].mxu1  ;;  %v678_v25 = vpop.f32.mrb[2].mxu0 }
 0x689   : >> { %v733_v26 = vpop.f32.mrb[2].mxu1  ;;  %v1187_v27 = vpop.f32.mrb[3].mxu0 }
 0x68a   : >> { %v742_v28 = vadd.f32 %v1501_v10, %v731_v23  ;;  %v1195_v29 = vpop.f32.mrb[3].mxu1 }
 0x68c   : >> { %1300 = vtanh.f32 %v742_v28  ;;  %v1106_v32 = vmul.f32 -1.442695, %v742_v28 }
 0x68e   : >> { %1302 = vpow2.f32 %v1106_v32 }
 0x696   : >> { %v1301_v30 = vpop.eup %1300 }
 0x697   : >> { %758 = vrot.lane.b32.xlu0 %v1301_v30, %s1373_s25 }
 0x698   : >> { %v1303_v33 = vpop.eup %1302 }
 0x699   : >> { %v746_v34 = vadd.f32 1.0, %v1303_v33 }
 0x69b   : >> { %753 = vrot.lane.b32.xlu0 %v751_v31, %s1374_s26  ;;  %1304 = vrcp.f32 %v746_v34 }
 0x6a5   : >> { %v1305_v35 = vpop.eup %1304 }
 0x709   : >> { %v759_v36 = vpop.permute.xlu0 %758 }
 0x70a   : >> { %v761_v37 = vmul.f32 %v1305_v35, %v759_v36 }
 0x70c   : >> { %763 = vrot.lane.b32.xlu1 %v761_v37, %s1374_s26 }
 0x70d   : >> { %v754_v38 = vpop.permute.xlu0 %753 }
 0x70e   : >> { %v756_v39 = vmul.f32 %v1305_v35, %v754_v38 }
 0x77e   : >> { %v764_v40 = vpop.permute.xlu1 %763 }
 0x77f   : >> { %v766_v41 = vadd.f32 %v764_v40, %v756_v39 }
 0x781   : >> { %1306 = vtanh.f32 %v766_v41  ;;  %774 = vrot.lane.b32.xlu0 %v766_v41, %s1375_s28 }
 0x78b   : >> { %v1307_v42 = vpop.eup %1306 }
 0x78c   : >> { %769 = vrot.lane.b32.xlu1 %v1307_v42, %s1373_s25 }
 0x7f3   : >> { %v775_v43 = vpop.permute.xlu0 %774 }
 0x7f4   : >> { %778 = vst.msk [vmem:[#allocation3 + $0x4] sm:$0x3] %vm407_vm4, %v775_v43 }
 0x7fe   : >> { %v770_v44 = vpop.permute.xlu1 %769 }
 0x7ff   : >> { %v772_v45 = vmul.f32 %v1305_v35, %v770_v44 }
 0x801   : >> { %780 = vrot.lane.b32.xlu1 %v772_v45, %s1374_s26 }
 0x86e   : > { %606 = sbr.rel (!%p604_p7) target bundleno = 1450 (0x5aa), region = 144 }
 0x873   : >> { %v781_v46 = vpop.permute.xlu1 %780 }
 0x874   : >> { %783 = vst.msk [vmem:[#allocation2 + $0x4] sm:$0x3] %vm407_vm4, %v781_v46  ;;  %784 = vst.msk [vmem:[%s1521_s24] sm:$0x3] %vm407_vm4, %v781_v46 }
 0x875 LB: >> { %v1308_v48 = vld [vmem:[%s1577_s3 + $0x30] sm:$0xff]   ;;  %v1376_v49 = vmov 0.0   ;;  %v1309_v50 = vld [vmem:[%s1576_s2 + $0x20] sm:$0xff]   ;;  %v1310_v51 = vld [vmem:[%s1577_s3 + $0x38] sm:$0xff]   ;;  %vm1377_vm7 = vmmov 0   ;;  %s1108_s13 = sshll.u32 %s1358_s6, 1  ;;  %s1358_s6 = sphi %s1539_s6, %s792_s6  }
 0x876   : >> { %1196 = vmatprep.subr.bf16.mxu0 %v1376_v49  ;;  %1204 = vmatprep.subr.bf16.mxu1 %v1376_v49  ;;  %v1311_v52 = vld [vmem:[%s1576_s2 + $0x28] sm:$0xff]   ;;  %v803_v53 = vld [vmem:[#allocation2 + $0x6] sm:$0x3]  ;;  %s794_s16 = scalar_lea.vmem [#allocation4], %s1108_s13  ;;  %s1378_s17 = smov 64  }
 0x877   : >> { %1197 = vmatpush3.bf16.msra.mxu0 %v1308_v48  ;;  %1200 = vmatprep.mubr.msk.bf16.mxu0 %vm1377_vm7, %v1376_v49  ;;  %v804_v55 = vpack.c.bf16 %v803_v53, %v803_v53  ;;  %v936_v4 = vld [vmem:[#allocation3 + $0x6] sm:$0x3]  ;;  %s1379_s19 = smov 32   ;;  %s1380_s20 = smov 96  }
 0x878   : >> { %1205 = vmatpush3.bf16.msra.mxu1 %v1309_v50  ;;  %1198 = vmatprep.subr.bf16.mxu0 %v1376_v49  ;;  %s969_s21 = scalar_lea.vmem %s1427_s27, %s1108_s13  ;;  %s792_s6 = sadd.s32 1, %s1358_s6  }
 0x879   : >> { %1206 = vmatprep.subr.bf16.mxu1 %v1376_v49  ;;  %1208 = vmatprep.mubr.msk.bf16.mxu1 %vm1377_vm7, %v1376_v49  ;;  %p789_p8 = scmp.ge.s32.totalorder %s792_s6, 3  }
 0x87b   : >> { %v795_v54 = vld [vmem:[%s794_s16] sm:$0x3]  ;;  %1199 = vmatpush3.bf16.msra.mxu0 %v1310_v51 }
 0x87c   : >> { %v796_v56 = vpack.c.bf16 %v795_v54, %v795_v54  ;;  %1207 = vmatpush3.bf16.msra.mxu1 %v1311_v52 }
 0x87e   : >> { %1201 = vmatmul.mubr.msk.bf16.vlgmr.msra.gmra.mrb[0].mxu0 %vm273_vm3, %v804_v55 }
 0x87f   : >> { %1209 = vmatmul.mubr.msk.bf16.vlgmr.msra.gmra.mrb[0].mxu1 %vm273_vm3, %v796_v56 }
 0x951   : >> { %v860_v57 = vpop.f32.mrb[0].mxu0 }
 0x952   : >> { %v915_v58 = vpop.f32.mrb[0].mxu1  ;;  %v1202_v59 = vpop.f32.mrb[1].mxu0 }
 0x953   : >> { %v916_v60 = vadd.f32 %v915_v58, %v860_v57  ;;  %v1210_v61 = vpop.f32.mrb[1].mxu1  ;;  %v863_v62 = vpop.f32.mrb[2].mxu0 }
 0x954   : >> { %v918_v63 = vpop.f32.mrb[2].mxu1  ;;  %v1203_v0 = vpop.f32.mrb[3].mxu0 }
 0x955   : >> { %v927_v1 = vadd.f32 %v1537_v47, %v916_v60  ;;  %v1211_v2 = vpop.f32.mrb[3].mxu1 }
 0x957   : >> { %1312 = vtanh.f32 %v927_v1  ;;  %v1124_v5 = vmul.f32 -1.442695, %v927_v1 }
 0x959   : >> { %1314 = vpow2.f32 %v1124_v5 }
 0x961   : >> { %v1313_v3 = vpop.eup %1312 }
 0x962   : >> { %943 = vrot.lane.b32.xlu0 %v1313_v3, %s1378_s17 }
 0x963   : >> { %v1315_v6 = vpop.eup %1314 }
 0x964   : >> { %v931_v7 = vadd.f32 1.0, %v1315_v6 }
 0x966   : >> { %938 = vrot.lane.b32.xlu0 %v936_v4, %s1379_s19  ;;  %1316 = vrcp.f32 %v931_v7 }
 0x970   : >> { %v1317_v8 = vpop.eup %1316 }
 0x9d4   : >> { %v944_v9 = vpop.permute.xlu0 %943 }
 0x9d5   : >> { %v946_v10 = vmul.f32 %v1317_v8, %v944_v9 }
 0x9d7   : >> { %948 = vrot.lane.b32.xlu1 %v946_v10, %s1379_s19 }
 0x9d8   : >> { %v939_v11 = vpop.permute.xlu0 %938 }
 0x9d9   : >> { %v941_v12 = vmul.f32 %v1317_v8, %v939_v11 }
 0xa49   : >> { %v949_v13 = vpop.permute.xlu1 %948 }
 0xa4a   : >> { %v951_v14 = vadd.f32 %v949_v13, %v941_v12 }
 0xa4c   : >> { %1318 = vtanh.f32 %v951_v14  ;;  %959 = vrot.lane.b32.xlu0 %v951_v14, %s1380_s20 }
 0xa56   : >> { %v1319_v15 = vpop.eup %1318 }
 0xa57   : >> { %954 = vrot.lane.b32.xlu1 %v1319_v15, %s1378_s17 }
 0xabe   : >> { %v960_v16 = vpop.permute.xlu0 %959 }
 0xabf   : >> { %963 = vst.msk [vmem:[#allocation3 + $0x6] sm:$0x3] %vm407_vm4, %v960_v16 }
 0xac9   : >> { %v955_v17 = vpop.permute.xlu1 %954 }
 0xaca   : >> { %v957_v18 = vmul.f32 %v1317_v8, %v955_v17 }
 0xacc   : >> { %965 = vrot.lane.b32.xlu1 %v957_v18, %s1379_s19 }
 0xb39   : > { %791 = sbr.rel (!%p789_p8) target bundleno = 2165 (0x875), region = 155 }
 0xb3e   : >> { %v966_v19 = vpop.permute.xlu1 %965 }
 0xb3f   : >> { %968 = vst.msk [vmem:[#allocation2 + $0x6] sm:$0x3] %vm407_vm4, %v966_v19  ;;  %970 = vst.msk [vmem:[%s969_s21] sm:$0x3] %vm407_vm4, %v966_v19 }
 0xb40 PF: > { %s15_s18 = sadd.s32 1, %s1342_s18  }
 0xb41   : > { %p12_p9 = scmp.ge.s32.totalorder %s15_s18, 5  }
 0xb43   :  { %14 = sbr.rel (!%p12_p9) target bundleno = 1 (0x1), region = 166 }

// kernel: _lambda_.10
= control target key start
LH: loop header
LB: loop body
LE: loop exit
PB: predicated region body
PF: predicated region fallthrough
CT: control target
= control target key end

     0   :  { %s655_s15 = smov 0   ;;  %s750_s0 = inlined_call_operand.vmem [shape: f32[9,2,64], index: 0, kind: input, shape index: {}]   ;;  %s751_s1 = inlined_call_operand.vmem [shape: bf16[64,256], index: 1, kind: input, shape index: {}]   ;;  %s752_s2 = inlined_call_operand.vmem [shape: bf16[1,64,256], index: 2, kind: input, shape index: {}]   ;;  %s753_s3 = inlined_call_operand.vmem [shape: f32[1,1,256], index: 3, kind: input, shape index: {}]   ;;  %s754_s4 = inlined_call_operand.vmem [shape: f32[9,2,64], index: 4, kind: output, shape index: {}]  }
   0x1 LB: > { %s525_s16 = sadd.s32 4294967295, %s621_s15   ;;  %p529_p0 = scmp.ge.s32.totalorder %s621_s15, 1  ;;  %s621_s15 = sphi %s655_s15, %s14_s15  }
   0x2   : > { %p163_p1 = scmp.lt.s32.totalorder %s621_s15, 4 }
   0x4   : > { %p164_p2 = pnand %p529_p0, %p163_p1 }
   0x5   : > { %s189_s17 = smul.u32 (!%p164_p2), 3, %s525_s16  ;;  %p532_p4 = scmp.ne.s32.totalorder (!%p164_p2), %s525_s16, 0 }
   0x6   : > { %167 = sbr.rel (%p164_p2) target bundleno = 529 (0x211), region = 36 }
   0x7   : > { %p190_p3 = scmp.lt.s32.totalorder (!%p164_p2), %s189_s17, 8 }
   0xd   : > { %s756_s17 = smov (!%p190_p3, %s189_s17), 8  ;;  %205 = sbr.rel (%p532_p4) target bundleno = 20 (0x14), region = 40 }
   0xe   : > { %s530_s18 = sshll.u32 %s756_s17, 1  ;;  %vm206_vm0 = vcmask (!%p532_p4), 517120   ;;  %v627_v0 = vmov (!%p532_p4), 0.0  }
   0xf   : > { %s666_s21 = scalar_lea.vmem %s750_s0, %s530_s18  ;;  %s671_s24 = scalar_lea.vmem %s754_s4, %s530_s18  ;;  %207 = vst.msk [vmem:[#allocation2] sm:$0x3] (!%p532_p4), %vm206_vm0, %v627_v0  ;;  %208 = vst.msk [vmem:[#allocation3] sm:$0x3] (!%p532_p4), %vm206_vm0, %v627_v0 }
  0x14 PF: > { %v676_v1 = vld [vmem:[%s753_s3] sm:$0x3]  ;;  %s678_s27 = smov 0  }
  0x15 LB: >> { %v575_v2 = vld [vmem:[%s752_s2 + $0x4] ss:$8 sps:$4 sm:$0xff]   ;;  %v628_v4 = vmov 0   ;;  %v579_v5 = vld [vmem:[%s752_s2] ss:$8 sps:$4 sm:$0xff]   ;;  %s533_s22 = sshll.u32 %s625_s27, 1  ;;  %v408_v24 = vlaneseq  ;;  %s625_s27 = sphi %s678_s27, %s215_s27  }
  0x16   : >> { %v577_v3 = vld [vmem:[%s751_s1 + $0x4] ss:$8 sps:$4 sm:$0xff]   ;;  %314 = vmatprep.mubr.bf16.mxu0 %v628_v4  ;;  %398 = vmatprep.mubr.bf16.mxu1 %v628_v4  ;;  %v580_v6 = vld [vmem:[%s751_s1] ss:$8 sps:$4 sm:$0xff]   ;;  %v581_v7 = vld [vmem:[%s752_s2 + $0x14] ss:$8 sps:$4 sm:$0xff]   ;;  %s217_s9 = scalar_lea.vmem %s666_s21, %s533_s22  ;;  %s458_s16 = scalar_lea.vmem %s671_s24, %s533_s22 }
  0x17   : >> { %282 = vmatprep.subr.bf16.mxu0 %v575_v2  ;;  %366 = vmatprep.subr.bf16.mxu1 %v577_v3  ;;  %v583_v8 = vld [vmem:[%s751_s1 + $0x14] ss:$8 sps:$4 sm:$0xff]   ;;  %v585_v9 = vld [vmem:[%s752_s2 + $0x10] ss:$8 sps:$4 sm:$0xff]   ;;  %v587_v11 = vld [vmem:[%s752_s2 + $0x24] ss:$8 sps:$4 sm:$0xff]  }
  0x18   : >> { %283 = vmatpush1.bf16.msra.mxu0 %v579_v5  ;;  %367 = vmatpush1.bf16.msra.mxu1 %v580_v6  ;;  %v586_v10 = vld [vmem:[%s751_s1 + $0x10] ss:$8 sps:$4 sm:$0xff]   ;;  %v589_v12 = vld [vmem:[%s751_s1 + $0x24] ss:$8 sps:$4 sm:$0xff]   ;;  %v591_v13 = vld [vmem:[%s752_s2 + $0x20] ss:$8 sps:$4 sm:$0xff]  }
  0x19   : >> { %284 = vmatprep.subr.bf16.mxu0 %v581_v7  ;;  %368 = vmatprep.subr.bf16.mxu1 %v583_v8  ;;  %v592_v14 = vld [vmem:[%s751_s1 + $0x20] ss:$8 sps:$4 sm:$0xff]   ;;  %v593_v15 = vld [vmem:[%s752_s2 + $0x34] ss:$8 sps:$4 sm:$0xff]   ;;  %v597_v17 = vld [vmem:[%s752_s2 + $0x30] ss:$8 sps:$4 sm:$0xff]  }
  0x1a   : >> { %v595_v16 = vld [vmem:[%s751_s1 + $0x34] ss:$8 sps:$4 sm:$0xff]   ;;  %v433_v18 = vld [vmem:[#allocation3] sm:$0x3]  ;;  %v598_v19 = vld [vmem:[%s751_s1 + $0x30] ss:$8 sps:$4 sm:$0xff]  }
  0x1b   : >> { %v228_v20 = vld [vmem:[#allocation2] sm:$0x3]  ;;  %s629_s14 = smov 64   ;;  %vm278_vm1 = vcmask 523264   ;;  %v409_v25 = vshrl.u32 %v408_v24, 7  ;;  %vm451_vm2 = vcmask 517120  }
  0x1c   : >> { %285 = vmatpush1.bf16.msra.mxu0 %v585_v9  ;;  %369 = vmatpush1.bf16.msra.mxu1 %v586_v10  ;;  %v218_v21 = vld [vmem:[%s217_s9] sm:$0x3]  ;;  %v229_v22 = vpack.c.bf16 %v228_v20, %v228_v20  ;;  %s215_s27 = sadd.s32 1, %s625_s27  }
  0x1d   : >> { %286 = vmatprep.subr.bf16.mxu0 %v587_v11  ;;  %370 = vmatprep.subr.bf16.mxu1 %v589_v12  ;;  %v219_v23 = vpack.c.bf16 %v218_v21, %v218_v21  ;;  %v410_v26 = vsub.s32 0, %v409_v25  ;;  %v414_v40 = vsub.s32 1, %v409_v25  ;;  %p212_p5 = scmp.ge.s32.totalorder %s215_s27, 3  }
  0x1e   : >> { %435 = vrot.lane.b32.xlu0 %v433_v18, %s629_s14 }
  0x1f   : >> { %v411_v27 = vrot.slane %v676_v1, %v410_v26  ;;  %v415_v41 = vrot.slane %v676_v1, %v414_v40 }
  0x20   : >> { %287 = vmatpush1.bf16.msra.mxu0 %v591_v13  ;;  %371 = vmatpush1.bf16.msra.mxu1 %v592_v14 }
  0x21   : >> { %288 = vmatprep.subr.bf16.mxu0 %v593_v15  ;;  %372 = vmatprep.subr.bf16.mxu1 %v595_v16 }
  0x24   : >> { %289 = vmatpush1.bf16.msra.mxu0 %v597_v17  ;;  %373 = vmatpush1.bf16.msra.mxu1 %v598_v19 }
  0x27   : >> { %542 = vmatmul.mubr.msk.bf16.vlgmr.msra.gmra.mrb[0].mxu0 %vm278_vm1, %v229_v22  ;;  %551 = vmatmul.mubr.msk.bf16.vlgmr.msra.gmra.mrb[0].mxu1 %vm278_vm1, %v219_v23 }
  0x90   : >> { %v436_v50 = vpop.permute.xlu0 %435 }
  0xfa   : >> { %v316_v28 = vpop.f32.mrb[0].mxu0  ;;  %v400_v29 = vpop.f32.mrb[0].mxu1 }
  0xfb   : >> { %v401_v30 = vadd.f32 %v400_v29, %v316_v28  ;;  %v318_v31 = vpop.f32.mrb[1].mxu0  ;;  %v402_v32 = vpop.f32.mrb[1].mxu1 }
  0xfc   : >> { %v403_v33 = vadd.f32 %v402_v32, %v318_v31  ;;  %v320_v34 = vpop.f32.mrb[2].mxu0  ;;  %v404_v35 = vpop.f32.mrb[2].mxu1 }
  0xfd   : >> { %v418_v36 = vadd.f32 %v411_v27, %v401_v30  ;;  %v321_v37 = vpop.f32.mrb[3].mxu0  ;;  %v405_v38 = vpop.f32.mrb[3].mxu1 }
  0xfe   : >> { %v419_v42 = vadd.f32 %v415_v41, %v403_v33 }
  0xff   : >> { %v552_v39 = vmul.f32 -1.442695, %v418_v36 }
 0x100   : >> { %v553_v48 = vmul.f32 -1.442695, %v419_v42 }
 0x101   : >> { %599 = vpow2.f32 %v552_v39 }
 0x102   : >> { %601 = vtanh.f32 %v419_v42 }
 0x10b   : >> { %v600_v43 = vpop.eup %599 }
 0x10c   : >> { %v423_v44 = vadd.f32 1.0, %v600_v43  ;;  %v602_v45 = vpop.eup %601 }
 0x10e   : >> { %603 = vrcp.f32 %v423_v44 }
 0x10f   : >> { %605 = vpow2.f32 %v553_v48 }
 0x118   : >> { %v604_v46 = vpop.eup %603 }
 0x119   : >> { %v439_v47 = vmul.f32 %v604_v46, %v602_v45  ;;  %v606_v49 = vpop.eup %605  ;;  %v438_v52 = vmul.f32 %v604_v46, %v436_v50 }
 0x11a   : >> { %v430_v51 = vadd.f32 1.0, %v606_v49 }
 0x11b   : >> { %441 = vrot.lane.b32.xlu0 %v439_v47, %s629_s14 }
 0x11c   : >> { %607 = vrcp.f32 %v430_v51 }
 0x126   : >> { %v608_v55 = vpop.eup %607 }
 0x18d   : >> { %v442_v53 = vpop.permute.xlu0 %441 }
 0x18e   : >> { %v444_v54 = vadd.f32 %v442_v53, %v438_v52 }
 0x190   : >> { %609 = vtanh.f32 %v444_v54  ;;  %448 = vrot.lane.b32.xlu1 %v444_v54, %s629_s14 }
 0x19a   : >> { %v610_v56 = vpop.eup %609 }
 0x19b   : >> { %v446_v57 = vmul.f32 %v610_v56, %v608_v55 }
 0x19d   : >> { %454 = vrot.lane.b32.xlu1 %v446_v57, %s629_s14 }
 0x202   : >> { %v449_v58 = vpop.permute.xlu1 %448 }
 0x203   : >> { %452 = vst.msk [vmem:[#allocation3] sm:$0x3] %vm451_vm2, %v449_v58 }
 0x20a   : > { %214 = sbr.rel (!%p212_p5) target bundleno = 21 (0x15), region = 79 }
 0x20f   : >> { %v455_v59 = vpop.permute.xlu1 %454 }
 0x210   : >> { %457 = vst.msk [vmem:[#allocation2] sm:$0x3] %vm451_vm2, %v455_v59  ;;  %459 = vst.msk [vmem:[%s458_s16] sm:$0x3] %vm451_vm2, %v455_v59 }
 0x211 PF: > { %s14_s15 = sadd.s32 1, %s621_s15  }
 0x212   : > { %p11_p6 = scmp.ge.s32.totalorder %s14_s15, 5  }
 0x214   :  { %13 = sbr.rel (!%p11_p6) target bundleno = 1 (0x1), region = 90 }

// kernel: _lambda_.11
= control target key start
LH: loop header
LB: loop body
LE: loop exit
PB: predicated region body
PF: predicated region fallthrough
CT: control target
= control target key end

     0   :  { %s671_s15 = smov 0   ;;  %s766_s0 = inlined_call_operand.vmem [shape: f32[9,2,64], index: 0, kind: input, shape index: {}]   ;;  %s767_s1 = inlined_call_operand.vmem [shape: bf16[64,256], index: 1, kind: input, shape index: {}]   ;;  %s768_s2 = inlined_call_operand.vmem [shape: bf16[1,64,256], index: 2, kind: input, shape index: {}]   ;;  %s769_s3 = inlined_call_operand.vmem [shape: f32[1,1,256], index: 3, kind: input, shape index: {}]   ;;  %s770_s4 = inlined_call_operand.vmem [shape: f32[9,2,64], index: 4, kind: output, shape index: {}]  }
   0x1 LB: > { %s541_s16 = sadd.s32 4294967295, %s637_s15   ;;  %p545_p0 = scmp.ge.s32.totalorder %s637_s15, 1  ;;  %s637_s15 = sphi %s671_s15, %s14_s15  }
   0x2   : > { %p169_p1 = scmp.lt.s32.totalorder %s637_s15, 4 }
   0x4   : > { %p170_p2 = pnand %p545_p0, %p169_p1 }
   0x5   : > { %s197_s17 = ssub.s32 (!%p170_p2), 2, %s541_s16  ;;  %p548_p4 = scmp.ne.s32.totalorder (!%p170_p2), %s541_s16, 0 }
   0x6   : > { %173 = sbr.rel (%p170_p2) target bundleno = 529 (0x211), region = 36 }
   0x7   : > { %s198_s18 = smul.u32 (!%p170_p2), 3, %s197_s17 }
   0x9   : > { %p199_p3 = scmp.lt.s32.totalorder (!%p170_p2), %s198_s18, 8 }
   0xd   : > { %s772_s18 = smov (!%p199_p3, %s198_s18), 8  ;;  %217 = sbr.rel (%p548_p4) target bundleno = 20 (0x14), region = 40 }
   0xe   : > { %s546_s19 = sshll.u32 %s772_s18, 1  ;;  %vm218_vm0 = vcmask (!%p548_p4), 517120   ;;  %v643_v0 = vmov (!%p548_p4), 0.0  }
   0xf   : > { %s682_s22 = scalar_lea.vmem %s766_s0, %s546_s19  ;;  %s687_s25 = scalar_lea.vmem %s770_s4, %s546_s19  ;;  %219 = vst.msk [vmem:[#allocation2] sm:$0x3] (!%p548_p4), %vm218_vm0, %v643_v0  ;;  %220 = vst.msk [vmem:[#allocation3] sm:$0x3] (!%p548_p4), %vm218_vm0, %v643_v0 }
  0x14 PF: > { %v692_v1 = vld [vmem:[%s769_s3] sm:$0x3]  ;;  %s694_s28 = smov 0  }
  0x15 LB: >> { %v591_v2 = vld [vmem:[%s768_s2 + $0x4] ss:$8 sps:$4 sm:$0xff]   ;;  %v644_v4 = vmov 0   ;;  %v595_v5 = vld [vmem:[%s768_s2] ss:$8 sps:$4 sm:$0xff]   ;;  %s228_s13 = ssub.s32 2, %s641_s28  ;;  %v421_v24 = vlaneseq  ;;  %s641_s28 = sphi %s694_s28, %s227_s28  }
  0x16   : >> { %v593_v3 = vld [vmem:[%s767_s1 + $0x4] ss:$8 sps:$4 sm:$0xff]   ;;  %327 = vmatprep.mubr.bf16.mxu0 %v644_v4  ;;  %411 = vmatprep.mubr.bf16.mxu1 %v644_v4  ;;  %v596_v6 = vld [vmem:[%s767_s1] ss:$8 sps:$4 sm:$0xff]   ;;  %v597_v7 = vld [vmem:[%s768_s2 + $0x14] ss:$8 sps:$4 sm:$0xff]  }
  0x17   : >> { %295 = vmatprep.subr.bf16.mxu0 %v591_v2  ;;  %379 = vmatprep.subr.bf16.mxu1 %v593_v3  ;;  %v599_v8 = vld [vmem:[%s767_s1 + $0x14] ss:$8 sps:$4 sm:$0xff]   ;;  %v601_v9 = vld [vmem:[%s768_s2 + $0x10] ss:$8 sps:$4 sm:$0xff]   ;;  %v603_v11 = vld [vmem:[%s768_s2 + $0x24] ss:$8 sps:$4 sm:$0xff]  }
  0x18   : >> { %296 = vmatpush1.bf16.msra.mxu0 %v595_v5  ;;  %380 = vmatpush1.bf16.msra.mxu1 %v596_v6  ;;  %v602_v10 = vld [vmem:[%s767_s1 + $0x10] ss:$8 sps:$4 sm:$0xff]   ;;  %s727_s24 = sshll.u32 %s228_s13, 1  ;;  %v605_v12 = vld [vmem:[%s767_s1 + $0x24] ss:$8 sps:$4 sm:$0xff]   ;;  %s645_s17 = smov 64  }
  0x19   : >> { %297 = vmatprep.subr.bf16.mxu0 %v597_v7  ;;  %381 = vmatprep.subr.bf16.mxu1 %v599_v8  ;;  %v607_v13 = vld [vmem:[%s768_s2 + $0x20] ss:$8 sps:$4 sm:$0xff]   ;;  %v609_v15 = vld [vmem:[%s768_s2 + $0x34] ss:$8 sps:$4 sm:$0xff]   ;;  %s230_s11 = scalar_lea.vmem %s682_s22, %s727_s24  ;;  %v613_v17 = vld [vmem:[%s768_s2 + $0x30] ss:$8 sps:$4 sm:$0xff]   ;;  %s471_s18 = scalar_lea.vmem %s687_s25, %s727_s24 }
  0x1a   : >> { %v608_v14 = vld [vmem:[%s767_s1 + $0x20] ss:$8 sps:$4 sm:$0xff]   ;;  %v611_v16 = vld [vmem:[%s767_s1 + $0x34] ss:$8 sps:$4 sm:$0xff]   ;;  %v614_v19 = vld [vmem:[%s767_s1 + $0x30] ss:$8 sps:$4 sm:$0xff]  }
  0x1b   : >> { %v446_v18 = vld [vmem:[#allocation3] sm:$0x3]  ;;  %v241_v20 = vld [vmem:[#allocation2] sm:$0x3]  ;;  %vm291_vm1 = vcmask 523264   ;;  %v422_v25 = vshrl.u32 %v421_v24, 7 }
  0x1c   : >> { %298 = vmatpush1.bf16.msra.mxu0 %v601_v9  ;;  %382 = vmatpush1.bf16.msra.mxu1 %v602_v10  ;;  %v231_v21 = vld [vmem:[%s230_s11] sm:$0x3]  ;;  %v242_v22 = vpack.c.bf16 %v241_v20, %v241_v20  ;;  %vm464_vm2 = vcmask 517120   ;;  %s227_s28 = sadd.s32 1, %s641_s28  }
  0x1d   : >> { %299 = vmatprep.subr.bf16.mxu0 %v603_v11  ;;  %383 = vmatprep.subr.bf16.mxu1 %v605_v12  ;;  %v232_v23 = vpack.c.bf16 %v231_v21, %v231_v21  ;;  %v423_v26 = vsub.s32 0, %v422_v25  ;;  %v427_v40 = vsub.s32 1, %v422_v25  ;;  %p224_p5 = scmp.ge.s32.totalorder %s227_s28, 3  }
  0x1e   : >> { %448 = vrot.lane.b32.xlu0 %v446_v18, %s645_s17 }
  0x1f   : >> { %v424_v27 = vrot.slane %v692_v1, %v423_v26  ;;  %v428_v41 = vrot.slane %v692_v1, %v427_v40 }
  0x20   : >> { %300 = vmatpush1.bf16.msra.mxu0 %v607_v13  ;;  %384 = vmatpush1.bf16.msra.mxu1 %v608_v14 }
  0x21   : >> { %301 = vmatprep.subr.bf16.mxu0 %v609_v15  ;;  %385 = vmatprep.subr.bf16.mxu1 %v611_v16 }
  0x24   : >> { %302 = vmatpush1.bf16.msra.mxu0 %v613_v17  ;;  %386 = vmatpush1.bf16.msra.mxu1 %v614_v19 }
  0x27   : >> { %558 = vmatmul.mubr.msk.bf16.vlgmr.msra.gmra.mrb[0].mxu0 %vm291_vm1, %v242_v22  ;;  %567 = vmatmul.mubr.msk.bf16.vlgmr.msra.gmra.mrb[0].mxu1 %vm291_vm1, %v232_v23 }
  0x90   : >> { %v449_v50 = vpop.permute.xlu0 %448 }
  0xfa   : >> { %v329_v28 = vpop.f32.mrb[0].mxu0  ;;  %v413_v29 = vpop.f32.mrb[0].mxu1 }
  0xfb   : >> { %v414_v30 = vadd.f32 %v413_v29, %v329_v28  ;;  %v331_v31 = vpop.f32.mrb[1].mxu0  ;;  %v415_v32 = vpop.f32.mrb[1].mxu1 }
  0xfc   : >> { %v416_v33 = vadd.f32 %v415_v32, %v331_v31  ;;  %v333_v34 = vpop.f32.mrb[2].mxu0  ;;  %v417_v35 = vpop.f32.mrb[2].mxu1 }
  0xfd   : >> { %v431_v36 = vadd.f32 %v424_v27, %v414_v30  ;;  %v334_v37 = vpop.f32.mrb[3].mxu0  ;;  %v418_v38 = vpop.f32.mrb[3].mxu1 }
  0xfe   : >> { %v432_v42 = vadd.f32 %v428_v41, %v416_v33 }
  0xff   : >> { %v568_v39 = vmul.f32 -1.442695, %v431_v36 }
 0x100   : >> { %v569_v48 = vmul.f32 -1.442695, %v432_v42 }
 0x101   : >> { %615 = vpow2.f32 %v568_v39 }
 0x102   : >> { %617 = vtanh.f32 %v432_v42 }
 0x10b   : >> { %v616_v43 = vpop.eup %615 }
 0x10c   : >> { %v436_v44 = vadd.f32 1.0, %v616_v43  ;;  %v618_v45 = vpop.eup %617 }
 0x10e   : >> { %619 = vrcp.f32 %v436_v44 }
 0x10f   : >> { %621 = vpow2.f32 %v569_v48 }
 0x118   : >> { %v620_v46 = vpop.eup %619 }
 0x119   : >> { %v452_v47 = vmul.f32 %v620_v46, %v618_v45  ;;  %v622_v49 = vpop.eup %621  ;;  %v451_v52 = vmul.f32 %v620_v46, %v449_v50 }
 0x11a   : >> { %v443_v51 = vadd.f32 1.0, %v622_v49 }
 0x11b   : >> { %454 = vrot.lane.b32.xlu0 %v452_v47, %s645_s17 }
 0x11c   : >> { %623 = vrcp.f32 %v443_v51 }
 0x126   : >> { %v624_v55 = vpop.eup %623 }
 0x18d   : >> { %v455_v53 = vpop.permute.xlu0 %454 }
 0x18e   : >> { %v457_v54 = vadd.f32 %v455_v53, %v451_v52 }
 0x190   : >> { %625 = vtanh.f32 %v457_v54  ;;  %461 = vrot.lane.b32.xlu1 %v457_v54, %s645_s17 }
 0x19a   : >> { %v626_v56 = vpop.eup %625 }
 0x19b   : >> { %v459_v57 = vmul.f32 %v626_v56, %v624_v55 }
 0x19d   : >> { %467 = vrot.lane.b32.xlu1 %v459_v57, %s645_s17 }
 0x202   : >> { %v462_v58 = vpop.permute.xlu1 %461 }
 0x203   : >> { %465 = vst.msk [vmem:[#allocation3] sm:$0x3] %vm464_vm2, %v462_v58 }
 0x20a   : > { %226 = sbr.rel (!%p224_p5) target bundleno = 21 (0x15), region = 79 }
 0x20f   : >> { %v468_v59 = vpop.permute.xlu1 %467 }
 0x210   : >> { %470 = vst.msk [vmem:[#allocation2] sm:$0x3] %vm464_vm2, %v468_v59  ;;  %472 = vst.msk [vmem:[%s471_s18] sm:$0x3] %vm464_vm2, %v468_v59 }
 0x211 PF: > { %s14_s15 = sadd.s32 1, %s637_s15  }
 0x212   : > { %p11_p6 = scmp.ge.s32.totalorder %s14_s15, 5  }
 0x214   :  { %13 = sbr.rel (!%p11_p6) target bundleno = 1 (0x1), region = 90 }

</bundles_post_ra>
